<compile_context>
chip_gen: v7x
topology: tpu7x:2x2x1
jax: 0.10.0
libtpu: 0.0.40
codegen_flags: <defaults>
</compile_context>

<pallas_src>
import functools

import jax
import jax.numpy as jnp
from jax import lax
from jax.experimental import pallas as pl
from jax.experimental.pallas import tpu as pltpu


def _sigmoid(x):
    # single EUP op instead of exp (EUP) + full-precision divide (VPU)
    return 0.5 * (jnp.tanh(0.5 * x) + 1.0)


def _pick_tile(B, cap=128):
    """Largest multiple-of-8 divisor of B that is <= cap and leaves >= 2 blocks
    (so the 'parallel' batch axis can use both v7x TensorCores).  Falls back to
    the full batch (full-dim block exception) for small B."""
    best = None
    for cand in range(8, min(cap, B // 2) + 1, 8):
        if B % cand == 0:
            best = cand
    return best if best is not None else B


# ---------------------------------------------------------------------------
# Kernel 1: LSTM over the whole sequence (time unrolled), emits last hidden h
# ---------------------------------------------------------------------------

def lstm_kernel(x_ref, w_ref, b_ref, hlast_ref):
    """x_ref:(tb,S,D) bf16   w_ref:(2D,4D) bf16 stacked [W_ih^T;W_hh^T]
       b_ref:(1,4D) f32 folded bias   hlast_ref:(tb,D) f32 last hidden state."""
    tb, S, D = x_ref.shape
    h = jnp.zeros((tb, D), jnp.float32)
    c = jnp.zeros((tb, D), jnp.float32)
    w = w_ref[...]
    b = b_ref[...]
    for s in range(S):  # S is small & static -> full unroll for LLO scheduling
        xh = jnp.concatenate([x_ref[:, s, :], h.astype(jnp.bfloat16)], axis=-1)
        gates = jnp.dot(xh, w, preferred_element_type=jnp.float32) + b
        # PyTorch gate order: i, f, g, o
        i = _sigmoid(gates[:, 0:D])
        f = _sigmoid(gates[:, D:2 * D])
        g = jnp.tanh(gates[:, 2 * D:3 * D])
        o = _sigmoid(gates[:, 3 * D:4 * D])
        c = f * c + i * g
        h = o * jnp.tanh(c)
    hlast_ref[...] = h.astype(hlast_ref.dtype)


def lstm_last_hidden(q_bsd, w_stack, bias, tb):
    B, S, D = q_bsd.shape
    G = 4 * D
    vmem_bytes = int(1.25 * (
        2 * (2 * D) * G * 2          # stacked bf16 weights (double-buffered)
        + 2 * tb * S * D * 2         # bf16 input block (double-buffered)
        + 2 * tb * D * 4             # f32 output block (double-buffered)
        + 2 * G * 4                  # bias
        + 8 * tb * G                 # f32 gates / h / c live values (approx)
    ))
    vmem_bytes = max(32 << 20, min(64 << 20, vmem_bytes))
    return pl.pallas_call(
        lstm_kernel,
        out_shape=jax.ShapeDtypeStruct((B, D), jnp.float32),
        grid_spec=pltpu.PrefetchScalarGridSpec(
            num_scalar_prefetch=0,
            grid=(B // tb,),
            in_specs=[
                pl.BlockSpec((tb, S, D), lambda bi: (bi, 0, 0)),
                # TODO(synk): pipeline_mode=pl.Buffered(1) on the weight spec
                # would halve the resident-weight VMEM footprint (matters for
                # feat_dim >= ~1024 under v5e's default scoped VMEM).
                pl.BlockSpec((2 * D, G), lambda bi: (0, 0)),
                pl.BlockSpec((1, G), lambda bi: (0, 0)),
            ],
            out_specs=pl.BlockSpec((tb, D), lambda bi: (bi, 0)),
        ),
        compiler_params=pltpu.CompilerParams(
            dimension_semantics=("parallel",),
            vmem_limit_bytes=vmem_bytes,
        ),
    )(q_bsd, w_stack, bias)


# ---------------------------------------------------------------------------
# Kernel 2: fused memory read (normalize + attention + pooling) + margin loss
# ---------------------------------------------------------------------------

def memory_read_kernel(h_ref, key_ref, valmem_ref, valin_ref,
                       out_ref, loss_ref, min_scr, max_scr, *, margin):
    """h_ref:(tb,D) f32   key_ref:(M,D) f32   valmem_ref:(M,S) f32
       valin_ref:(tb,S,Dv) bf16   out_ref:(tb,Dv) f32   loss_ref:(1,1) f32
       min_scr/max_scr:(1,M) f32 scratch accumulating min/max over batch."""
    bi = pl.program_id(0)
    nb = pl.num_programs(0)
    eps = 1e-12

    @pl.when(bi == 0)
    def _():
        min_scr[...] = jnp.full_like(min_scr, jnp.inf)
        max_scr[...] = jnp.full_like(max_scr, -jnp.inf)

    q = h_ref[...]                                                    # (tb, D)
    qn = q / jnp.maximum(jnp.sqrt(jnp.sum(q * q, axis=1, keepdims=True)), eps)

    key = key_ref[...]                                                # (M, D)
    # F.normalize(key.t(), dim=1): each feature-column of `key` is unit-norm;
    # fold the per-column norms into q instead of materializing a scaled key.
    dnorm = jnp.maximum(
        jnp.sqrt(jnp.sum(key * key, axis=0, keepdims=True)), eps)     # (1, D)
    qs = (qn / dnorm).astype(jnp.bfloat16)

    sim = lax.dot_general(qs, key.astype(jnp.bfloat16),
                          (((1,), (1,)), ((), ())),
                          preferred_element_type=jnp.float32)          # (tb, M)
    sim = sim - jnp.max(sim, axis=1, keepdims=True)
    e = jnp.exp(sim)
    r_att = e * pl.reciprocal(jnp.sum(e, axis=1, keepdims=True), approx=True)

    logits = jnp.dot(r_att.astype(jnp.bfloat16),
                     valmem_ref[...].astype(jnp.bfloat16),
                     preferred_element_type=jnp.float32)               # (tb, S)
    logits = logits - jnp.max(logits, axis=1, keepdims=True)
    er = jnp.exp(logits)
    read = er * pl.reciprocal(jnp.sum(er, axis=1, keepdims=True), approx=True)

    # out[b, :] = sum_s read[b, s] * valin[b, s, :]   (S small -> unrolled VPU)
    S = valin_ref.shape[1]
    acc = jnp.zeros(out_ref.shape, jnp.float32)
    for s in range(S):
        acc = acc + read[:, s:s + 1] * valin_ref[:, s, :].astype(jnp.float32)
    out_ref[...] = acc.astype(out_ref.dtype)

    # running per-memory-slot min/max over the batch for the margin loss
    min_scr[...] = jnp.minimum(min_scr[...],
                               jnp.min(r_att, axis=0, keepdims=True))
    max_scr[...] = jnp.maximum(max_scr[...],
                               jnp.max(r_att, axis=0, keepdims=True))

    @pl.when(bi == nb - 1)
    def _():
        dist = min_scr[...] - max_scr[...] + margin                    # (1, M)
        relu_d = jnp.maximum(dist, 0.0)
        M = relu_d.shape[1]
        loss_ref[...] = jnp.sum(relu_d, axis=1, keepdims=True) * (1.0 / M)


def memory_read(h_last, key_mem, val_mem, v_bsd, margin, tb):
    B, D = h_last.shape
    M = key_mem.shape[0]
    S, Dv = v_bsd.shape[1], v_bsd.shape[2]
    return pl.pallas_call(
        functools.partial(memory_read_kernel, margin=float(margin)),
        out_shape=(
            jax.ShapeDtypeStruct((B, Dv), jnp.float32),
            jax.ShapeDtypeStruct((1, 1), jnp.float32),
        ),
        grid_spec=pltpu.PrefetchScalarGridSpec(
            num_scalar_prefetch=0,
            grid=(B // tb,),
            in_specs=[
                pl.BlockSpec((tb, D), lambda bi: (bi, 0)),
                pl.BlockSpec((M, D), lambda bi: (0, 0)),
                pl.BlockSpec((M, S), lambda bi: (0, 0)),
                pl.BlockSpec((tb, S, Dv), lambda bi: (bi, 0, 0)),
            ],
            out_specs=[
                pl.BlockSpec((tb, Dv), lambda bi: (bi, 0)),
                pl.BlockSpec((1, 1), lambda bi: (0, 0)),
            ],
            scratch_shapes=[
                pltpu.VMEM((1, M), jnp.float32),
                pltpu.VMEM((1, M), jnp.float32),
            ],
        ),
        compiler_params=pltpu.CompilerParams(
            # loss min/max accumulates across batch tiles -> sequential axis
            dimension_semantics=("arbitrary",),
        ),
    )(h_last, key_mem, val_mem, v_bsd)


# ---------------------------------------------------------------------------
# TemporalMemory forward
# ---------------------------------------------------------------------------

@functools.partial(jax.jit, static_argnames=("seq_len", "margin"))
def temporal_memory_forward(query, val, key_mem, val_mem,
                            w_ih, w_hh, b_ih, b_hh,
                            seq_len=6, margin=1.0):
    """Equivalent of TemporalMemory.forward(query, val).

    query: (B*S, D), val: (B*S, Dv), key_mem: (M, D), val_mem: (M, S)
    w_ih, w_hh: (4D, D) PyTorch LSTM weights (gate order i,f,g,o); b_*: (4D,)
    """
    BS, D = query.shape
    assert BS % seq_len == 0
    B = BS // seq_len
    Dv = val.shape[1]

    # keep the natural (B, S, D) layout (no HBM transpose); bf16 once -> halves
    # the per-block input DMA of both kernels
    q_bsd = query.reshape(B, seq_len, D).astype(jnp.bfloat16)
    v_bsd = val.reshape(B, seq_len, Dv).astype(jnp.bfloat16)

    # one-time parameter prep: stacked/transposed bf16 weights + folded bias so
    # every LSTM step is one (tb, 2D) x (2D, 4D) MXU matmul
    w_stack = jnp.concatenate([w_ih.T, w_hh.T], axis=0).astype(jnp.bfloat16)
    bias = (b_ih + b_hh).reshape(1, 4 * D).astype(jnp.float32)

    tb = _pick_tile(B, cap=128)
    assert B % tb == 0 and (tb % 8 == 0 or tb == B)

    # TODO(synk): for feat_dim >= ~1400 the resident (2D,4D) bf16 weights exceed
    # v7x's 64 MiB VMEM; add a gate-dim (4D) grid axis with a (tb,4D) f32 gate
    # accumulator for that regime.
    h_last = lstm_last_hidden(q_bsd, w_stack, bias, tb)

    tb2 = _pick_tile(B, cap=256)
    out, mem_trip = memory_read(h_last, key_mem, val_mem, v_bsd, margin, tb2)
    return {"out": out, "loss": {"mem_trip": mem_trip[0, 0]}}


# ---------------------------------------------------------------------------
# Pure-JAX reference (f32, high-precision matmuls)
# ---------------------------------------------------------------------------

def reference_forward(query, val, key_mem, val_mem, w_ih, w_hh, b_ih, b_hh,
                      seq_len, margin):
    with jax.default_matmul_precision("float32"):
        BS, D = query.shape
        B = BS // seq_len
        q = jnp.transpose(query.reshape(B, seq_len, D), (1, 0, 2))
        h = jnp.zeros((B, D), jnp.float32)
        c = jnp.zeros((B, D), jnp.float32)
        for s in range(seq_len):
            gates = q[s] @ w_ih.T + h @ w_hh.T + b_ih + b_hh
            i, f, g, o = jnp.split(gates, 4, axis=1)
            i = jax.nn.sigmoid(i)
            f = jax.nn.sigmoid(f)
            g = jnp.tanh(g)
            o = jax.nn.sigmoid(o)
            c = f * c + i * g
            h = o * jnp.tanh(c)
        qn = h / jnp.maximum(jnp.linalg.norm(h, axis=1, keepdims=True), 1e-12)
        kt = key_mem.T
        ktn = kt / jnp.maximum(jnp.linalg.norm(kt, axis=1, keepdims=True), 1e-12)
        sim = qn @ ktn
        r_att = jax.nn.softmax(sim, axis=1)
        read = jax.nn.softmax(r_att @ val_mem, axis=1)
        v = val.reshape(B, seq_len, -1)
        out = jnp.einsum("bs,bsd->bd", read, v)
        dist = jnp.min(r_att, axis=0) - jnp.max(r_att, axis=0) + margin
        mem_trip = jnp.mean(jnp.maximum(dist, 0.0))
        return out, mem_trip


# ---------------------------------------------------------------------------
# main
# ---------------------------------------------------------------------------

if __name__ == "__main__":
    ks = jax.random.split(jax.random.PRNGKey(0), 8)

    B, S, D, M, Dv = 8, 6, 128, 128, 128   # small test shapes
    margin = 1.0
    bound = 1.0 / (D ** 0.5)

    query = jax.random.normal(ks[0], (B * S, D), jnp.float32)
    val_in = jax.random.normal(ks[1], (B * S, Dv), jnp.float32)
    key_mem = jax.random.normal(ks[2], (M, D), jnp.float32)        # self.key
    val_mem = jax.random.uniform(ks[3], (M, S), jnp.float32)       # self.val
    w_ih = jax.random.uniform(ks[4], (4 * D, D), jnp.float32, -bound, bound)
    w_hh = jax.random.uniform(ks[5], (4 * D, D), jnp.float32, -bound, bound)
    b_ih = jax.random.uniform(ks[6], (4 * D,), jnp.float32, -bound, bound)
    b_hh = jax.random.uniform(ks[7], (4 * D,), jnp.float32, -bound, bound)

    res = temporal_memory_forward(query, val_in, key_mem, val_mem,
                                  w_ih, w_hh, b_ih, b_hh,
                                  seq_len=S, margin=margin)
    out = jax.block_until_ready(res["out"])
    mem_trip = jax.block_until_ready(res["loss"]["mem_trip"])

    ref_out, ref_trip = reference_forward(query, val_in, key_mem, val_mem,
                                          w_ih, w_hh, b_ih, b_hh, S, margin)

    assert out.shape == (B, Dv), out.shape
    err_o = float(jnp.max(jnp.abs(out - ref_out)))
    err_l = float(jnp.abs(mem_trip - ref_trip))
    # bf16 inputs + bf16 MXU operands (f32 accumulation) vs f32 reference
    assert err_o < 3e-2, err_o
    assert err_l < 3e-2, err_l

    print("KERNEL_OK")
</pallas_src>

<mosaic_0001>
module attributes {stable_mosaic.version = 11 : i64} {
  func.func @lstm_kernel(%arg0: i32, %arg1: memref<8x6x128xbf16, #tpu.memory_space<vmem>>, %arg2: memref<256x512xbf16, #tpu.memory_space<vmem>>, %arg3: memref<1x512xf32, #tpu.memory_space<vmem>>, %arg4: memref<8x128xf32, #tpu.memory_space<vmem>>) attributes {dimension_semantics = [#tpu.dimension_semantics<parallel>], iteration_bounds = array<i64: 1>, scalar_prefetch = 0 : i64, scratch_operands = 0 : i64, tpu.core_type = #tpu.core_type<tc>, window_params = [{transform_indices = @transform_0, window_bounds = array<i64: 8, 6, 128>}, {pipeline_mode = #tpu.pipeline_mode<synchronous>, transform_indices = @transform_1, window_bounds = array<i64: 256, 512>}, {pipeline_mode = #tpu.pipeline_mode<synchronous>, transform_indices = @transform_2, window_bounds = array<i64: 1, 512>}, {transform_indices = @transform_3, window_bounds = array<i64: 8, 128>}]} {
    %cst = arith.constant 0.000000e+00 : f32
    %0 = vector.broadcast %cst : f32 to vector<8x128xf32>
    %cst_0 = arith.constant 0.000000e+00 : f32
    %1 = vector.broadcast %cst_0 : f32 to vector<8x128xf32>
    %c0 = arith.constant 0 : index
    %c0_1 = arith.constant 0 : index
    %2 = vector.load %arg2[%c0, %c0_1] : memref<256x512xbf16, #tpu.memory_space<vmem>>, vector<256x512xbf16>
    %c0_2 = arith.constant 0 : index
    %c0_3 = arith.constant 0 : index
    %3 = vector.load %arg3[%c0_2, %c0_3] : memref<1x512xf32, #tpu.memory_space<vmem>>, vector<1x512xf32>
    %c0_4 = arith.constant 0 : index
    %c0_5 = arith.constant 0 : index
    %c0_6 = arith.constant 0 : index
    %4 = vector.load %arg1[%c0_4, %c0_5, %c0_6] : memref<8x6x128xbf16, #tpu.memory_space<vmem>>, vector<8x1x128xbf16>
    %5 = vector.shape_cast %4 : vector<8x1x128xbf16> to vector<8x128xbf16>
    %6 = arith.truncf %0 : vector<8x128xf32> to vector<8x128xbf16>
    %7 = tpu.concatenate %5, %6 in 1 : vector<8x128xbf16>, vector<8x128xbf16> -> vector<8x256xbf16>
    %cst_7 = arith.constant dense<0.000000e+00> : vector<8x512xf32>
    %8 = tpu.matmul %7, %2, %cst_7 {dimension_numbers = #tpu.dot_dimension_numbers<[1], [0], [0], [1], [0, 0, 1, 1], [], []>} : vector<8x256xbf16>, vector<256x512xbf16>, vector<8x512xf32> -> vector<8x512xf32>
    %9 = vector.broadcast %3 : vector<1x512xf32> to vector<8x512xf32>
    %10 = arith.addf %8, %9 : vector<8x512xf32>
    %11 = vector.extract_strided_slice %10 {offsets = [0, 0], sizes = [8, 128], strides = [1, 1]} : vector<8x512xf32> to vector<8x128xf32>
    %cst_8 = arith.constant 5.000000e-01 : f32
    %12 = vector.broadcast %cst_8 : f32 to vector<8x128xf32>
    %13 = arith.mulf %12, %11 : vector<8x128xf32>
    %14 = math.tanh %13 : vector<8x128xf32>
    %cst_9 = arith.constant 1.000000e+00 : f32
    %15 = vector.broadcast %cst_9 : f32 to vector<8x128xf32>
    %16 = arith.addf %14, %15 : vector<8x128xf32>
    %cst_10 = arith.constant 5.000000e-01 : f32
    %17 = vector.broadcast %cst_10 : f32 to vector<8x128xf32>
    %18 = arith.mulf %17, %16 : vector<8x128xf32>
    %19 = vector.extract_strided_slice %10 {offsets = [0, 128], sizes = [8, 128], strides = [1, 1]} : vector<8x512xf32> to vector<8x128xf32>
    %cst_11 = arith.constant 5.000000e-01 : f32
    %20 = vector.broadcast %cst_11 : f32 to vector<8x128xf32>
    %21 = arith.mulf %20, %19 : vector<8x128xf32>
    %22 = math.tanh %21 : vector<8x128xf32>
    %cst_12 = arith.constant 1.000000e+00 : f32
    %23 = vector.broadcast %cst_12 : f32 to vector<8x128xf32>
    %24 = arith.addf %22, %23 : vector<8x128xf32>
    %cst_13 = arith.constant 5.000000e-01 : f32
    %25 = vector.broadcast %cst_13 : f32 to vector<8x128xf32>
    %26 = arith.mulf %25, %24 : vector<8x128xf32>
    %27 = vector.extract_strided_slice %10 {offsets = [0, 256], sizes = [8, 128], strides = [1, 1]} : vector<8x512xf32> to vector<8x128xf32>
    %28 = math.tanh %27 : vector<8x128xf32>
    %29 = vector.extract_strided_slice %10 {offsets = [0, 384], sizes = [8, 128], strides = [1, 1]} : vector<8x512xf32> to vector<8x128xf32>
    %cst_14 = arith.constant 5.000000e-01 : f32
    %30 = vector.broadcast %cst_14 : f32 to vector<8x128xf32>
    %31 = arith.mulf %30, %29 : vector<8x128xf32>
    %32 = math.tanh %31 : vector<8x128xf32>
    %cst_15 = arith.constant 1.000000e+00 : f32
    %33 = vector.broadcast %cst_15 : f32 to vector<8x128xf32>
    %34 = arith.addf %32, %33 : vector<8x128xf32>
    %cst_16 = arith.constant 5.000000e-01 : f32
    %35 = vector.broadcast %cst_16 : f32 to vector<8x128xf32>
    %36 = arith.mulf %35, %34 : vector<8x128xf32>
    %37 = arith.mulf %26, %1 : vector<8x128xf32>
    %38 = arith.mulf %18, %28 : vector<8x128xf32>
    %39 = arith.addf %37, %38 : vector<8x128xf32>
    %40 = math.tanh %39 : vector<8x128xf32>
    %41 = arith.mulf %36, %40 : vector<8x128xf32>
    %c0_17 = arith.constant 0 : index
    %c1 = arith.constant 1 : index
    %c0_18 = arith.constant 0 : index
    %42 = vector.load %arg1[%c0_17, %c1, %c0_18] : memref<8x6x128xbf16, #tpu.memory_space<vmem>>, vector<8x1x128xbf16>
    %43 = vector.shape_cast %42 : vector<8x1x128xbf16> to vector<8x128xbf16>
    %44 = arith.truncf %41 : vector<8x128xf32> to vector<8x128xbf16>
    %45 = tpu.concatenate %43, %44 in 1 : vector<8x128xbf16>, vector<8x128xbf16> -> vector<8x256xbf16>
    %cst_19 = arith.constant dense<0.000000e+00> : vector<8x512xf32>
    %46 = tpu.matmul %45, %2, %cst_19 {dimension_numbers = #tpu.dot_dimension_numbers<[1], [0], [0], [1], [0, 0, 1, 1], [], []>} : vector<8x256xbf16>, vector<256x512xbf16>, vector<8x512xf32> -> vector<8x512xf32>
    %47 = vector.broadcast %3 : vector<1x512xf32> to vector<8x512xf32>
    %48 = arith.addf %46, %47 : vector<8x512xf32>
    %49 = vector.extract_strided_slice %48 {offsets = [0, 0], sizes = [8, 128], strides = [1, 1]} : vector<8x512xf32> to vector<8x128xf32>
    %cst_20 = arith.constant 5.000000e-01 : f32
    %50 = vector.broadcast %cst_20 : f32 to vector<8x128xf32>
    %51 = arith.mulf %50, %49 : vector<8x128xf32>
    %52 = math.tanh %51 : vector<8x128xf32>
    %cst_21 = arith.constant 1.000000e+00 : f32
    %53 = vector.broadcast %cst_21 : f32 to vector<8x128xf32>
    %54 = arith.addf %52, %53 : vector<8x128xf32>
    %cst_22 = arith.constant 5.000000e-01 : f32
    %55 = vector.broadcast %cst_22 : f32 to vector<8x128xf32>
    %56 = arith.mulf %55, %54 : vector<8x128xf32>
    %57 = vector.extract_strided_slice %48 {offsets = [0, 128], sizes = [8, 128], strides = [1, 1]} : vector<8x512xf32> to vector<8x128xf32>
    %cst_23 = arith.constant 5.000000e-01 : f32
    %58 = vector.broadcast %cst_23 : f32 to vector<8x128xf32>
    %59 = arith.mulf %58, %57 : vector<8x128xf32>
    %60 = math.tanh %59 : vector<8x128xf32>
    %cst_24 = arith.constant 1.000000e+00 : f32
    %61 = vector.broadcast %cst_24 : f32 to vector<8x128xf32>
    %62 = arith.addf %60, %61 : vector<8x128xf32>
    %cst_25 = arith.constant 5.000000e-01 : f32
    %63 = vector.broadcast %cst_25 : f32 to vector<8x128xf32>
    %64 = arith.mulf %63, %62 : vector<8x128xf32>
    %65 = vector.extract_strided_slice %48 {offsets = [0, 256], sizes = [8, 128], strides = [1, 1]} : vector<8x512xf32> to vector<8x128xf32>
    %66 = math.tanh %65 : vector<8x128xf32>
    %67 = vector.extract_strided_slice %48 {offsets = [0, 384], sizes = [8, 128], strides = [1, 1]} : vector<8x512xf32> to vector<8x128xf32>
    %cst_26 = arith.constant 5.000000e-01 : f32
    %68 = vector.broadcast %cst_26 : f32 to vector<8x128xf32>
    %69 = arith.mulf %68, %67 : vector<8x128xf32>
    %70 = math.tanh %69 : vector<8x128xf32>
    %cst_27 = arith.constant 1.000000e+00 : f32
    %71 = vector.broadcast %cst_27 : f32 to vector<8x128xf32>
    %72 = arith.addf %70, %71 : vector<8x128xf32>
    %cst_28 = arith.constant 5.000000e-01 : f32
    %73 = vector.broadcast %cst_28 : f32 to vector<8x128xf32>
    %74 = arith.mulf %73, %72 : vector<8x128xf32>
    %75 = arith.mulf %64, %39 : vector<8x128xf32>
    %76 = arith.mulf %56, %66 : vector<8x128xf32>
    %77 = arith.addf %75, %76 : vector<8x128xf32>
    %78 = math.tanh %77 : vector<8x128xf32>
    %79 = arith.mulf %74, %78 : vector<8x128xf32>
    %c0_29 = arith.constant 0 : index
    %c2 = arith.constant 2 : index
    %c0_30 = arith.constant 0 : index
    %80 = vector.load %arg1[%c0_29, %c2, %c0_30] : memref<8x6x128xbf16, #tpu.memory_space<vmem>>, vector<8x1x128xbf16>
    %81 = vector.shape_cast %80 : vector<8x1x128xbf16> to vector<8x128xbf16>
    %82 = arith.truncf %79 : vector<8x128xf32> to vector<8x128xbf16>
    %83 = tpu.concatenate %81, %82 in 1 : vector<8x128xbf16>, vector<8x128xbf16> -> vector<8x256xbf16>
    %cst_31 = arith.constant dense<0.000000e+00> : vector<8x512xf32>
    %84 = tpu.matmul %83, %2, %cst_31 {dimension_numbers = #tpu.dot_dimension_numbers<[1], [0], [0], [1], [0, 0, 1, 1], [], []>} : vector<8x256xbf16>, vector<256x512xbf16>, vector<8x512xf32> -> vector<8x512xf32>
    %85 = vector.broadcast %3 : vector<1x512xf32> to vector<8x512xf32>
    %86 = arith.addf %84, %85 : vector<8x512xf32>
    %87 = vector.extract_strided_slice %86 {offsets = [0, 0], sizes = [8, 128], strides = [1, 1]} : vector<8x512xf32> to vector<8x128xf32>
    %cst_32 = arith.constant 5.000000e-01 : f32
    %88 = vector.broadcast %cst_32 : f32 to vector<8x128xf32>
    %89 = arith.mulf %88, %87 : vector<8x128xf32>
    %90 = math.tanh %89 : vector<8x128xf32>
    %cst_33 = arith.constant 1.000000e+00 : f32
    %91 = vector.broadcast %cst_33 : f32 to vector<8x128xf32>
    %92 = arith.addf %90, %91 : vector<8x128xf32>
    %cst_34 = arith.constant 5.000000e-01 : f32
    %93 = vector.broadcast %cst_34 : f32 to vector<8x128xf32>
    %94 = arith.mulf %93, %92 : vector<8x128xf32>
    %95 = vector.extract_strided_slice %86 {offsets = [0, 128], sizes = [8, 128], strides = [1, 1]} : vector<8x512xf32> to vector<8x128xf32>
    %cst_35 = arith.constant 5.000000e-01 : f32
    %96 = vector.broadcast %cst_35 : f32 to vector<8x128xf32>
    %97 = arith.mulf %96, %95 : vector<8x128xf32>
    %98 = math.tanh %97 : vector<8x128xf32>
    %cst_36 = arith.constant 1.000000e+00 : f32
    %99 = vector.broadcast %cst_36 : f32 to vector<8x128xf32>
    %100 = arith.addf %98, %99 : vector<8x128xf32>
    %cst_37 = arith.constant 5.000000e-01 : f32
    %101 = vector.broadcast %cst_37 : f32 to vector<8x128xf32>
    %102 = arith.mulf %101, %100 : vector<8x128xf32>
    %103 = vector.extract_strided_slice %86 {offsets = [0, 256], sizes = [8, 128], strides = [1, 1]} : vector<8x512xf32> to vector<8x128xf32>
    %104 = math.tanh %103 : vector<8x128xf32>
    %105 = vector.extract_strided_slice %86 {offsets = [0, 384], sizes = [8, 128], strides = [1, 1]} : vector<8x512xf32> to vector<8x128xf32>
    %cst_38 = arith.constant 5.000000e-01 : f32
    %106 = vector.broadcast %cst_38 : f32 to vector<8x128xf32>
    %107 = arith.mulf %106, %105 : vector<8x128xf32>
    %108 = math.tanh %107 : vector<8x128xf32>
    %cst_39 = arith.constant 1.000000e+00 : f32
    %109 = vector.broadcast %cst_39 : f32 to vector<8x128xf32>
    %110 = arith.addf %108, %109 : vector<8x128xf32>
    %cst_40 = arith.constant 5.000000e-01 : f32
    %111 = vector.broadcast %cst_40 : f32 to vector<8x128xf32>
    %112 = arith.mulf %111, %110 : vector<8x128xf32>
    %113 = arith.mulf %102, %77 : vector<8x128xf32>
    %114 = arith.mulf %94, %104 : vector<8x128xf32>
    %115 = arith.addf %113, %114 : vector<8x128xf32>
    %116 = math.tanh %115 : vector<8x128xf32>
    %117 = arith.mulf %112, %116 : vector<8x128xf32>
    %c0_41 = arith.constant 0 : index
    %c3 = arith.constant 3 : index
    %c0_42 = arith.constant 0 : index
    %118 = vector.load %arg1[%c0_41, %c3, %c0_42] : memref<8x6x128xbf16, #tpu.memory_space<vmem>>, vector<8x1x128xbf16>
    %119 = vector.shape_cast %118 : vector<8x1x128xbf16> to vector<8x128xbf16>
    %120 = arith.truncf %117 : vector<8x128xf32> to vector<8x128xbf16>
    %121 = tpu.concatenate %119, %120 in 1 : vector<8x128xbf16>, vector<8x128xbf16> -> vector<8x256xbf16>
    %cst_43 = arith.constant dense<0.000000e+00> : vector<8x512xf32>
    %122 = tpu.matmul %121, %2, %cst_43 {dimension_numbers = #tpu.dot_dimension_numbers<[1], [0], [0], [1], [0, 0, 1, 1], [], []>} : vector<8x256xbf16>, vector<256x512xbf16>, vector<8x512xf32> -> vector<8x512xf32>
    %123 = vector.broadcast %3 : vector<1x512xf32> to vector<8x512xf32>
    %124 = arith.addf %122, %123 : vector<8x512xf32>
    %125 = vector.extract_strided_slice %124 {offsets = [0, 0], sizes = [8, 128], strides = [1, 1]} : vector<8x512xf32> to vector<8x128xf32>
    %cst_44 = arith.constant 5.000000e-01 : f32
    %126 = vector.broadcast %cst_44 : f32 to vector<8x128xf32>
    %127 = arith.mulf %126, %125 : vector<8x128xf32>
    %128 = math.tanh %127 : vector<8x128xf32>
    %cst_45 = arith.constant 1.000000e+00 : f32
    %129 = vector.broadcast %cst_45 : f32 to vector<8x128xf32>
    %130 = arith.addf %128, %129 : vector<8x128xf32>
    %cst_46 = arith.constant 5.000000e-01 : f32
    %131 = vector.broadcast %cst_46 : f32 to vector<8x128xf32>
    %132 = arith.mulf %131, %130 : vector<8x128xf32>
    %133 = vector.extract_strided_slice %124 {offsets = [0, 128], sizes = [8, 128], strides = [1, 1]} : vector<8x512xf32> to vector<8x128xf32>
    %cst_47 = arith.constant 5.000000e-01 : f32
    %134 = vector.broadcast %cst_47 : f32 to vector<8x128xf32>
    %135 = arith.mulf %134, %133 : vector<8x128xf32>
    %136 = math.tanh %135 : vector<8x128xf32>
    %cst_48 = arith.constant 1.000000e+00 : f32
    %137 = vector.broadcast %cst_48 : f32 to vector<8x128xf32>
    %138 = arith.addf %136, %137 : vector<8x128xf32>
    %cst_49 = arith.constant 5.000000e-01 : f32
    %139 = vector.broadcast %cst_49 : f32 to vector<8x128xf32>
    %140 = arith.mulf %139, %138 : vector<8x128xf32>
    %141 = vector.extract_strided_slice %124 {offsets = [0, 256], sizes = [8, 128], strides = [1, 1]} : vector<8x512xf32> to vector<8x128xf32>
    %142 = math.tanh %141 : vector<8x128xf32>
    %143 = vector.extract_strided_slice %124 {offsets = [0, 384], sizes = [8, 128], strides = [1, 1]} : vector<8x512xf32> to vector<8x128xf32>
    %cst_50 = arith.constant 5.000000e-01 : f32
    %144 = vector.broadcast %cst_50 : f32 to vector<8x128xf32>
    %145 = arith.mulf %144, %143 : vector<8x128xf32>
    %146 = math.tanh %145 : vector<8x128xf32>
    %cst_51 = arith.constant 1.000000e+00 : f32
    %147 = vector.broadcast %cst_51 : f32 to vector<8x128xf32>
    %148 = arith.addf %146, %147 : vector<8x128xf32>
    %cst_52 = arith.constant 5.000000e-01 : f32
    %149 = vector.broadcast %cst_52 : f32 to vector<8x128xf32>
    %150 = arith.mulf %149, %148 : vector<8x128xf32>
    %151 = arith.mulf %140, %115 : vector<8x128xf32>
    %152 = arith.mulf %132, %142 : vector<8x128xf32>
    %153 = arith.addf %151, %152 : vector<8x128xf32>
    %154 = math.tanh %153 : vector<8x128xf32>
    %155 = arith.mulf %150, %154 : vector<8x128xf32>
    %c0_53 = arith.constant 0 : index
    %c4 = arith.constant 4 : index
    %c0_54 = arith.constant 0 : index
    %156 = vector.load %arg1[%c0_53, %c4, %c0_54] : memref<8x6x128xbf16, #tpu.memory_space<vmem>>, vector<8x1x128xbf16>
    %157 = vector.shape_cast %156 : vector<8x1x128xbf16> to vector<8x128xbf16>
    %158 = arith.truncf %155 : vector<8x128xf32> to vector<8x128xbf16>
    %159 = tpu.concatenate %157, %158 in 1 : vector<8x128xbf16>, vector<8x128xbf16> -> vector<8x256xbf16>
    %cst_55 = arith.constant dense<0.000000e+00> : vector<8x512xf32>
    %160 = tpu.matmul %159, %2, %cst_55 {dimension_numbers = #tpu.dot_dimension_numbers<[1], [0], [0], [1], [0, 0, 1, 1], [], []>} : vector<8x256xbf16>, vector<256x512xbf16>, vector<8x512xf32> -> vector<8x512xf32>
    %161 = vector.broadcast %3 : vector<1x512xf32> to vector<8x512xf32>
    %162 = arith.addf %160, %161 : vector<8x512xf32>
    %163 = vector.extract_strided_slice %162 {offsets = [0, 0], sizes = [8, 128], strides = [1, 1]} : vector<8x512xf32> to vector<8x128xf32>
    %cst_56 = arith.constant 5.000000e-01 : f32
    %164 = vector.broadcast %cst_56 : f32 to vector<8x128xf32>
    %165 = arith.mulf %164, %163 : vector<8x128xf32>
    %166 = math.tanh %165 : vector<8x128xf32>
    %cst_57 = arith.constant 1.000000e+00 : f32
    %167 = vector.broadcast %cst_57 : f32 to vector<8x128xf32>
    %168 = arith.addf %166, %167 : vector<8x128xf32>
    %cst_58 = arith.constant 5.000000e-01 : f32
    %169 = vector.broadcast %cst_58 : f32 to vector<8x128xf32>
    %170 = arith.mulf %169, %168 : vector<8x128xf32>
    %171 = vector.extract_strided_slice %162 {offsets = [0, 128], sizes = [8, 128], strides = [1, 1]} : vector<8x512xf32> to vector<8x128xf32>
    %cst_59 = arith.constant 5.000000e-01 : f32
    %172 = vector.broadcast %cst_59 : f32 to vector<8x128xf32>
    %173 = arith.mulf %172, %171 : vector<8x128xf32>
    %174 = math.tanh %173 : vector<8x128xf32>
    %cst_60 = arith.constant 1.000000e+00 : f32
    %175 = vector.broadcast %cst_60 : f32 to vector<8x128xf32>
    %176 = arith.addf %174, %175 : vector<8x128xf32>
    %cst_61 = arith.constant 5.000000e-01 : f32
    %177 = vector.broadcast %cst_61 : f32 to vector<8x128xf32>
    %178 = arith.mulf %177, %176 : vector<8x128xf32>
    %179 = vector.extract_strided_slice %162 {offsets = [0, 256], sizes = [8, 128], strides = [1, 1]} : vector<8x512xf32> to vector<8x128xf32>
    %180 = math.tanh %179 : vector<8x128xf32>
    %181 = vector.extract_strided_slice %162 {offsets = [0, 384], sizes = [8, 128], strides = [1, 1]} : vector<8x512xf32> to vector<8x128xf32>
    %cst_62 = arith.constant 5.000000e-01 : f32
    %182 = vector.broadcast %cst_62 : f32 to vector<8x128xf32>
    %183 = arith.mulf %182, %181 : vector<8x128xf32>
    %184 = math.tanh %183 : vector<8x128xf32>
    %cst_63 = arith.constant 1.000000e+00 : f32
    %185 = vector.broadcast %cst_63 : f32 to vector<8x128xf32>
    %186 = arith.addf %184, %185 : vector<8x128xf32>
    %cst_64 = arith.constant 5.000000e-01 : f32
    %187 = vector.broadcast %cst_64 : f32 to vector<8x128xf32>
    %188 = arith.mulf %187, %186 : vector<8x128xf32>
    %189 = arith.mulf %178, %153 : vector<8x128xf32>
    %190 = arith.mulf %170, %180 : vector<8x128xf32>
    %191 = arith.addf %189, %190 : vector<8x128xf32>
    %192 = math.tanh %191 : vector<8x128xf32>
    %193 = arith.mulf %188, %192 : vector<8x128xf32>
    %c0_65 = arith.constant 0 : index
    %c5 = arith.constant 5 : index
    %c0_66 = arith.constant 0 : index
    %194 = vector.load %arg1[%c0_65, %c5, %c0_66] : memref<8x6x128xbf16, #tpu.memory_space<vmem>>, vector<8x1x128xbf16>
    %195 = vector.shape_cast %194 : vector<8x1x128xbf16> to vector<8x128xbf16>
    %196 = arith.truncf %193 : vector<8x128xf32> to vector<8x128xbf16>
    %197 = tpu.concatenate %195, %196 in 1 : vector<8x128xbf16>, vector<8x128xbf16> -> vector<8x256xbf16>
    %cst_67 = arith.constant dense<0.000000e+00> : vector<8x512xf32>
    %198 = tpu.matmul %197, %2, %cst_67 {dimension_numbers = #tpu.dot_dimension_numbers<[1], [0], [0], [1], [0, 0, 1, 1], [], []>} : vector<8x256xbf16>, vector<256x512xbf16>, vector<8x512xf32> -> vector<8x512xf32>
    %199 = vector.broadcast %3 : vector<1x512xf32> to vector<8x512xf32>
    %200 = arith.addf %198, %199 : vector<8x512xf32>
    %201 = vector.extract_strided_slice %200 {offsets = [0, 0], sizes = [8, 128], strides = [1, 1]} : vector<8x512xf32> to vector<8x128xf32>
    %cst_68 = arith.constant 5.000000e-01 : f32
    %202 = vector.broadcast %cst_68 : f32 to vector<8x128xf32>
    %203 = arith.mulf %202, %201 : vector<8x128xf32>
    %204 = math.tanh %203 : vector<8x128xf32>
    %cst_69 = arith.constant 1.000000e+00 : f32
    %205 = vector.broadcast %cst_69 : f32 to vector<8x128xf32>
    %206 = arith.addf %204, %205 : vector<8x128xf32>
    %cst_70 = arith.constant 5.000000e-01 : f32
    %207 = vector.broadcast %cst_70 : f32 to vector<8x128xf32>
    %208 = arith.mulf %207, %206 : vector<8x128xf32>
    %209 = vector.extract_strided_slice %200 {offsets = [0, 128], sizes = [8, 128], strides = [1, 1]} : vector<8x512xf32> to vector<8x128xf32>
    %cst_71 = arith.constant 5.000000e-01 : f32
    %210 = vector.broadcast %cst_71 : f32 to vector<8x128xf32>
    %211 = arith.mulf %210, %209 : vector<8x128xf32>
    %212 = math.tanh %211 : vector<8x128xf32>
    %cst_72 = arith.constant 1.000000e+00 : f32
    %213 = vector.broadcast %cst_72 : f32 to vector<8x128xf32>
    %214 = arith.addf %212, %213 : vector<8x128xf32>
    %cst_73 = arith.constant 5.000000e-01 : f32
    %215 = vector.broadcast %cst_73 : f32 to vector<8x128xf32>
    %216 = arith.mulf %215, %214 : vector<8x128xf32>
    %217 = vector.extract_strided_slice %200 {offsets = [0, 256], sizes = [8, 128], strides = [1, 1]} : vector<8x512xf32> to vector<8x128xf32>
    %218 = math.tanh %217 : vector<8x128xf32>
    %219 = vector.extract_strided_slice %200 {offsets = [0, 384], sizes = [8, 128], strides = [1, 1]} : vector<8x512xf32> to vector<8x128xf32>
    %cst_74 = arith.constant 5.000000e-01 : f32
    %220 = vector.broadcast %cst_74 : f32 to vector<8x128xf32>
    %221 = arith.mulf %220, %219 : vector<8x128xf32>
    %222 = math.tanh %221 : vector<8x128xf32>
    %cst_75 = arith.constant 1.000000e+00 : f32
    %223 = vector.broadcast %cst_75 : f32 to vector<8x128xf32>
    %224 = arith.addf %222, %223 : vector<8x128xf32>
    %cst_76 = arith.constant 5.000000e-01 : f32
    %225 = vector.broadcast %cst_76 : f32 to vector<8x128xf32>
    %226 = arith.mulf %225, %224 : vector<8x128xf32>
    %227 = arith.mulf %216, %191 : vector<8x128xf32>
    %228 = arith.mulf %208, %218 : vector<8x128xf32>
    %229 = arith.addf %227, %228 : vector<8x128xf32>
    %230 = math.tanh %229 : vector<8x128xf32>
    %231 = arith.mulf %226, %230 : vector<8x128xf32>
    %c0_77 = arith.constant 0 : index
    %c0_78 = arith.constant 0 : index
    %232 = vector.load %arg4[%c0_77, %c0_78] : memref<8x128xf32, #tpu.memory_space<vmem>>, vector<8x128xf32>
    tpu.vector_store %arg4[%c0_77, %c0_78], %231 {strides = array<i32>} : memref<8x128xf32, #tpu.memory_space<vmem>>, vector<8x128xf32>,
    return
  }
  func.func @transform_0(%arg0: i32) -> (i32, i32, i32) {
    %c0_i32 = arith.constant 0 : i32
    %c0_i32_0 = arith.constant 0 : i32
    %c0_i32_1 = arith.constant 0 : i32
    return %arg0, %c0_i32, %c0_i32_0 : i32, i32, i32
  }
  func.func @transform_1(%arg0: i32) -> (i32, i32) {
    %c0_i32 = arith.constant 0 : i32
    %c0_i32_0 = arith.constant 0 : i32
    %c0_i32_1 = arith.constant 0 : i32
    return %c0_i32, %c0_i32_0 : i32, i32
  }
  func.func @transform_2(%arg0: i32) -> (i32, i32) {
    %c0_i32 = arith.constant 0 : i32
    %c0_i32_0 = arith.constant 0 : i32
    %c0_i32_1 = arith.constant 0 : i32
    return %c0_i32, %c0_i32_0 : i32, i32
  }
  func.func @transform_3(%arg0: i32) -> (i32, i32) {
    %c0_i32 = arith.constant 0 : i32
    %c0_i32_0 = arith.constant 0 : i32
    return %arg0, %c0_i32 : i32, i32
  }
}

module attributes {stable_mosaic.version = 11 : i64} {
  func.func @memory_read_kernel(%arg0: i32, %arg1: memref<8x128xf32, #tpu.memory_space<vmem>>, %arg2: memref<128x128xf32, #tpu.memory_space<vmem>>, %arg3: memref<128x6xf32, #tpu.memory_space<vmem>>, %arg4: memref<8x6x128xbf16, #tpu.memory_space<vmem>>, %arg5: memref<8x128xf32, #tpu.memory_space<vmem>>, %arg6: memref<1x1xf32, #tpu.memory_space<vmem>>, %arg7: memref<1x128xf32, #tpu.memory_space<vmem>>, %arg8: memref<1x128xf32, #tpu.memory_space<vmem>>) attributes {dimension_semantics = [#tpu.dimension_semantics<arbitrary>], iteration_bounds = array<i64: 1>, scalar_prefetch = 0 : i64, scratch_operands = 2 : i64, tpu.core_type = #tpu.core_type<tc>, window_params = [{transform_indices = @transform_0, window_bounds = array<i64: 8, 128>}, {pipeline_mode = #tpu.pipeline_mode<synchronous>, transform_indices = @transform_1, window_bounds = array<i64: 128, 128>}, {pipeline_mode = #tpu.pipeline_mode<synchronous>, transform_indices = @transform_2, window_bounds = array<i64: 128, 6>}, {transform_indices = @transform_3, window_bounds = array<i64: 8, 6, 128>}, {transform_indices = @transform_4, window_bounds = array<i64: 8, 128>}, {pipeline_mode = #tpu.pipeline_mode<synchronous>, transform_indices = @transform_5, window_bounds = array<i64: 1, 1>}]} {
    %c0_i32 = arith.constant 0 : i32
    %0 = arith.cmpi eq, %arg0, %c0_i32 : i32
    %1 = arith.extui %0 : i1 to i32
    %c0_i32_0 = arith.constant 0 : i32
    %2 = arith.cmpi ne, %1, %c0_i32_0 : i32
    scf.if %2 {
      %cst_43 = arith.constant 0x7F800000 : f32
      %105 = vector.broadcast %cst_43 : f32 to vector<1x128xf32>
      %c0_44 = arith.constant 0 : index
      %c0_45 = arith.constant 0 : index
      %106 = vector.load %arg7[%c0_44, %c0_45] : memref<1x128xf32, #tpu.memory_space<vmem>>, vector<1x128xf32>
      tpu.vector_store %arg7[%c0_44, %c0_45], %105 {strides = array<i32>} : memref<1x128xf32, #tpu.memory_space<vmem>>, vector<1x128xf32>,
      %cst_46 = arith.constant 0xFF800000 : f32
      %107 = vector.broadcast %cst_46 : f32 to vector<1x128xf32>
      %c0_47 = arith.constant 0 : index
      %c0_48 = arith.constant 0 : index
      %108 = vector.load %arg8[%c0_47, %c0_48] : memref<1x128xf32, #tpu.memory_space<vmem>>, vector<1x128xf32>
      tpu.vector_store %arg8[%c0_47, %c0_48], %107 {strides = array<i32>} : memref<1x128xf32, #tpu.memory_space<vmem>>, vector<1x128xf32>,
    } else {
    }
    %c0 = arith.constant 0 : index
    %c0_1 = arith.constant 0 : index
    %3 = vector.load %arg1[%c0, %c0_1] : memref<8x128xf32, #tpu.memory_space<vmem>>, vector<8x128xf32>
    %4 = arith.mulf %3, %3 : vector<8x128xf32>
    %cst = arith.constant dense<0.000000e+00> : vector<8xf32>
    %5 = vector.multi_reduction <add>, %4, %cst [1] : vector<8x128xf32> to vector<8xf32>
    %6 = vector.shape_cast %5 : vector<8xf32> to vector<8x1xf32>
    %7 = math.sqrt %6 : vector<8x1xf32>
    %cst_2 = arith.constant 9.99999996E-13 : f32
    %8 = vector.broadcast %cst_2 : f32 to vector<8x1xf32>
    %9 = arith.maximumf %7, %8 : vector<8x1xf32>
    %10 = vector.broadcast %9 : vector<8x1xf32> to vector<8x128xf32>
    %11 = arith.divf %3, %10 : vector<8x128xf32>
    %c0_3 = arith.constant 0 : index
    %c0_4 = arith.constant 0 : index
    %12 = vector.load %arg2[%c0_3, %c0_4] : memref<128x128xf32, #tpu.memory_space<vmem>>, vector<128x128xf32>
    %13 = arith.mulf %12, %12 : vector<128x128xf32>
    %cst_5 = arith.constant dense<0.000000e+00> : vector<128xf32>
    %14 = vector.multi_reduction <add>, %13, %cst_5 [0] : vector<128x128xf32> to vector<128xf32>
    %15 = vector.shape_cast %14 : vector<128xf32> to vector<1x128xf32>
    %16 = math.sqrt %15 : vector<1x128xf32>
    %cst_6 = arith.constant 9.99999996E-13 : f32
    %17 = vector.broadcast %cst_6 : f32 to vector<1x128xf32>
    %18 = arith.maximumf %16, %17 : vector<1x128xf32>
    %19 = vector.broadcast %18 : vector<1x128xf32> to vector<8x128xf32>
    %20 = arith.divf %11, %19 : vector<8x128xf32>
    %21 = arith.truncf %20 : vector<8x128xf32> to vector<8x128xbf16>
    %22 = arith.truncf %12 : vector<128x128xf32> to vector<128x128xbf16>
    %cst_7 = arith.constant dense<0.000000e+00> : vector<8x128xf32>
    %23 = tpu.matmul %21, %22, %cst_7 {dimension_numbers = #tpu.dot_dimension_numbers<[1], [1], [0], [0], [0, 0, 1, 0], [], []>} : vector<8x128xbf16>, vector<128x128xbf16>, vector<8x128xf32> -> vector<8x128xf32>
    %cst_8 = arith.constant dense<0xFF800000> : vector<8xf32>
    %24 = vector.multi_reduction <maximumf>, %23, %cst_8 [1] : vector<8x128xf32> to vector<8xf32>
    %25 = vector.shape_cast %24 : vector<8xf32> to vector<8x1xf32>
    %26 = vector.broadcast %25 : vector<8x1xf32> to vector<8x128xf32>
    %27 = arith.subf %23, %26 : vector<8x128xf32>
    %28 = math.exp %27 : vector<8x128xf32>
    %cst_9 = arith.constant dense<0.000000e+00> : vector<8xf32>
    %29 = vector.multi_reduction <add>, %28, %cst_9 [1] : vector<8x128xf32> to vector<8xf32>
    %30 = vector.shape_cast %29 : vector<8xf32> to vector<8x1xf32>
    %31 = tpu.reciprocal %30 {approx = true} : vector<8x1xf32> -> vector<8x1xf32>
    %32 = vector.broadcast %31 : vector<8x1xf32> to vector<8x128xf32>
    %33 = arith.mulf %28, %32 : vector<8x128xf32>
    %34 = arith.truncf %33 : vector<8x128xf32> to vector<8x128xbf16>
    %c0_10 = arith.constant 0 : index
    %c0_11 = arith.constant 0 : index
    %35 = vector.load %arg3[%c0_10, %c0_11] : memref<128x6xf32, #tpu.memory_space<vmem>>, vector<128x6xf32>
    %36 = arith.truncf %35 : vector<128x6xf32> to vector<128x6xbf16>
    %cst_12 = arith.constant dense<0.000000e+00> : vector<8x6xf32>
    %37 = tpu.matmul %34, %36, %cst_12 {dimension_numbers = #tpu.dot_dimension_numbers<[1], [0], [0], [1], [0, 0, 1, 1], [], []>} : vector<8x128xbf16>, vector<128x6xbf16>, vector<8x6xf32> -> vector<8x6xf32>
    %cst_13 = arith.constant dense<0xFF800000> : vector<8xf32>
    %38 = vector.multi_reduction <maximumf>, %37, %cst_13 [1] : vector<8x6xf32> to vector<8xf32>
    %39 = vector.shape_cast %38 : vector<8xf32> to vector<8x1xf32>
    %40 = vector.broadcast %39 : vector<8x1xf32> to vector<8x6xf32>
    %41 = arith.subf %37, %40 : vector<8x6xf32>
    %42 = math.exp %41 : vector<8x6xf32>
    %cst_14 = arith.constant dense<0.000000e+00> : vector<8xf32>
    %43 = vector.multi_reduction <add>, %42, %cst_14 [1] : vector<8x6xf32> to vector<8xf32>
    %44 = vector.shape_cast %43 : vector<8xf32> to vector<8x1xf32>
    %45 = tpu.reciprocal %44 {approx = true} : vector<8x1xf32> -> vector<8x1xf32>
    %46 = vector.broadcast %45 : vector<8x1xf32> to vector<8x6xf32>
    %47 = arith.mulf %42, %46 : vector<8x6xf32>
    %cst_15 = arith.constant 0.000000e+00 : f32
    %48 = vector.broadcast %cst_15 : f32 to vector<8x128xf32>
    %49 = vector.extract_strided_slice %47 {offsets = [0, 0], sizes = [8, 1], strides = [1, 1]} : vector<8x6xf32> to vector<8x1xf32>
    %c0_16 = arith.constant 0 : index
    %c0_17 = arith.constant 0 : index
    %c0_18 = arith.constant 0 : index
    %50 = vector.load %arg4[%c0_16, %c0_17, %c0_18] : memref<8x6x128xbf16, #tpu.memory_space<vmem>>, vector<8x1x128xbf16>
    %51 = vector.shape_cast %50 : vector<8x1x128xbf16> to vector<8x128xbf16>
    %52 = arith.extf %51 : vector<8x128xbf16> to vector<8x128xf32>
    %53 = vector.broadcast %49 : vector<8x1xf32> to vector<8x128xf32>
    %54 = arith.mulf %53, %52 : vector<8x128xf32>
    %55 = arith.addf %48, %54 : vector<8x128xf32>
    %56 = vector.extract_strided_slice %47 {offsets = [0, 1], sizes = [8, 1], strides = [1, 1]} : vector<8x6xf32> to vector<8x1xf32>
    %c0_19 = arith.constant 0 : index
    %c1 = arith.constant 1 : index
    %c0_20 = arith.constant 0 : index
    %57 = vector.load %arg4[%c0_19, %c1, %c0_20] : memref<8x6x128xbf16, #tpu.memory_space<vmem>>, vector<8x1x128xbf16>
    %58 = vector.shape_cast %57 : vector<8x1x128xbf16> to vector<8x128xbf16>
    %59 = arith.extf %58 : vector<8x128xbf16> to vector<8x128xf32>
    %60 = vector.broadcast %56 : vector<8x1xf32> to vector<8x128xf32>
    %61 = arith.mulf %60, %59 : vector<8x128xf32>
    %62 = arith.addf %55, %61 : vector<8x128xf32>
    %63 = vector.extract_strided_slice %47 {offsets = [0, 2], sizes = [8, 1], strides = [1, 1]} : vector<8x6xf32> to vector<8x1xf32>
    %c0_21 = arith.constant 0 : index
    %c2 = arith.constant 2 : index
    %c0_22 = arith.constant 0 : index
    %64 = vector.load %arg4[%c0_21, %c2, %c0_22] : memref<8x6x128xbf16, #tpu.memory_space<vmem>>, vector<8x1x128xbf16>
    %65 = vector.shape_cast %64 : vector<8x1x128xbf16> to vector<8x128xbf16>
    %66 = arith.extf %65 : vector<8x128xbf16> to vector<8x128xf32>
    %67 = vector.broadcast %63 : vector<8x1xf32> to vector<8x128xf32>
    %68 = arith.mulf %67, %66 : vector<8x128xf32>
    %69 = arith.addf %62, %68 : vector<8x128xf32>
    %70 = vector.extract_strided_slice %47 {offsets = [0, 3], sizes = [8, 1], strides = [1, 1]} : vector<8x6xf32> to vector<8x1xf32>
    %c0_23 = arith.constant 0 : index
    %c3 = arith.constant 3 : index
    %c0_24 = arith.constant 0 : index
    %71 = vector.load %arg4[%c0_23, %c3, %c0_24] : memref<8x6x128xbf16, #tpu.memory_space<vmem>>, vector<8x1x128xbf16>
    %72 = vector.shape_cast %71 : vector<8x1x128xbf16> to vector<8x128xbf16>
    %73 = arith.extf %72 : vector<8x128xbf16> to vector<8x128xf32>
    %74 = vector.broadcast %70 : vector<8x1xf32> to vector<8x128xf32>
    %75 = arith.mulf %74, %73 : vector<8x128xf32>
    %76 = arith.addf %69, %75 : vector<8x128xf32>
    %77 = vector.extract_strided_slice %47 {offsets = [0, 4], sizes = [8, 1], strides = [1, 1]} : vector<8x6xf32> to vector<8x1xf32>
    %c0_25 = arith.constant 0 : index
    %c4 = arith.constant 4 : index
    %c0_26 = arith.constant 0 : index
    %78 = vector.load %arg4[%c0_25, %c4, %c0_26] : memref<8x6x128xbf16, #tpu.memory_space<vmem>>, vector<8x1x128xbf16>
    %79 = vector.shape_cast %78 : vector<8x1x128xbf16> to vector<8x128xbf16>
    %80 = arith.extf %79 : vector<8x128xbf16> to vector<8x128xf32>
    %81 = vector.broadcast %77 : vector<8x1xf32> to vector<8x128xf32>
    %82 = arith.mulf %81, %80 : vector<8x128xf32>
    %83 = arith.addf %76, %82 : vector<8x128xf32>
    %84 = vector.extract_strided_slice %47 {offsets = [0, 5], sizes = [8, 1], strides = [1, 1]} : vector<8x6xf32> to vector<8x1xf32>
    %c0_27 = arith.constant 0 : index
    %c5 = arith.constant 5 : index
    %c0_28 = arith.constant 0 : index
    %85 = vector.load %arg4[%c0_27, %c5, %c0_28] : memref<8x6x128xbf16, #tpu.memory_space<vmem>>, vector<8x1x128xbf16>
    %86 = vector.shape_cast %85 : vector<8x1x128xbf16> to vector<8x128xbf16>
    %87 = arith.extf %86 : vector<8x128xbf16> to vector<8x128xf32>
    %88 = vector.broadcast %84 : vector<8x1xf32> to vector<8x128xf32>
    %89 = arith.mulf %88, %87 : vector<8x128xf32>
    %90 = arith.addf %83, %89 : vector<8x128xf32>
    %c0_29 = arith.constant 0 : index
    %c0_30 = arith.constant 0 : index
    %91 = vector.load %arg5[%c0_29, %c0_30] : memref<8x128xf32, #tpu.memory_space<vmem>>, vector<8x128xf32>
    tpu.vector_store %arg5[%c0_29, %c0_30], %90 {strides = array<i32>} : memref<8x128xf32, #tpu.memory_space<vmem>>, vector<8x128xf32>,
    %c0_31 = arith.constant 0 : index
    %c0_32 = arith.constant 0 : index
    %92 = vector.load %arg7[%c0_31, %c0_32] : memref<1x128xf32, #tpu.memory_space<vmem>>, vector<1x128xf32>
    %cst_33 = arith.constant dense<0x7F800000> : vector<128xf32>
    %93 = vector.multi_reduction <minimumf>, %33, %cst_33 [0] : vector<8x128xf32> to vector<128xf32>
    %94 = vector.shape_cast %93 : vector<128xf32> to vector<1x128xf32>
    %95 = arith.minimumf %92, %94 : vector<1x128xf32>
    %c0_34 = arith.constant 0 : index
    %c0_35 = arith.constant 0 : index
    %96 = vector.load %arg7[%c0_34, %c0_35] : memref<1x128xf32, #tpu.memory_space<vmem>>, vector<1x128xf32>
    tpu.vector_store %arg7[%c0_34, %c0_35], %95 {strides = array<i32>} : memref<1x128xf32, #tpu.memory_space<vmem>>, vector<1x128xf32>,
    %c0_36 = arith.constant 0 : index
    %c0_37 = arith.constant 0 : index
    %97 = vector.load %arg8[%c0_36, %c0_37] : memref<1x128xf32, #tpu.memory_space<vmem>>, vector<1x128xf32>
    %cst_38 = arith.constant dense<0xFF800000> : vector<128xf32>
    %98 = vector.multi_reduction <maximumf>, %33, %cst_38 [0] : vector<8x128xf32> to vector<128xf32>
    %99 = vector.shape_cast %98 : vector<128xf32> to vector<1x128xf32>
    %100 = arith.maximumf %97, %99 : vector<1x128xf32>
    %c0_39 = arith.constant 0 : index
    %c0_40 = arith.constant 0 : index
    %101 = vector.load %arg8[%c0_39, %c0_40] : memref<1x128xf32, #tpu.memory_space<vmem>>, vector<1x128xf32>
    tpu.vector_store %arg8[%c0_39, %c0_40], %100 {strides = array<i32>} : memref<1x128xf32, #tpu.memory_space<vmem>>, vector<1x128xf32>,
    %c0_i32_41 = arith.constant 0 : i32
    %102 = arith.cmpi eq, %arg0, %c0_i32_41 : i32
    %103 = arith.extui %102 : i1 to i32
    %c0_i32_42 = arith.constant 0 : i32
    %104 = arith.cmpi ne, %103, %c0_i32_42 : i32
    scf.if %104 {
      %c0_43 = arith.constant 0 : index
      %c0_44 = arith.constant 0 : index
      %105 = vector.load %arg7[%c0_43, %c0_44] : memref<1x128xf32, #tpu.memory_space<vmem>>, vector<1x128xf32>
      %c0_45 = arith.constant 0 : index
      %c0_46 = arith.constant 0 : index
      %106 = vector.load %arg8[%c0_45, %c0_46] : memref<1x128xf32, #tpu.memory_space<vmem>>, vector<1x128xf32>
      %107 = arith.subf %105, %106 : vector<1x128xf32>
      %cst_47 = arith.constant 1.000000e+00 : f32
      %108 = vector.broadcast %cst_47 : f32 to vector<1x128xf32>
      %109 = arith.addf %107, %108 : vector<1x128xf32>
      %cst_48 = arith.constant 0.000000e+00 : f32
      %110 = vector.broadcast %cst_48 : f32 to vector<1x128xf32>
      %111 = arith.maximumf %109, %110 : vector<1x128xf32>
      %cst_49 = arith.constant dense<0.000000e+00> : vector<1xf32>
      %112 = vector.multi_reduction <add>, %111, %cst_49 [1] : vector<1x128xf32> to vector<1xf32>
      %113 = vector.shape_cast %112 : vector<1xf32> to vector<1x1xf32>
      %cst_50 = arith.constant 7.812500e-03 : f32
      %114 = vector.broadcast %cst_50 : f32 to vector<1x1xf32>
      %115 = arith.mulf %113, %114 : vector<1x1xf32>
      %c0_51 = arith.constant 0 : index
      %c0_52 = arith.constant 0 : index
      %116 = vector.load %arg6[%c0_51, %c0_52] : memref<1x1xf32, #tpu.memory_space<vmem>>, vector<1x1xf32>
      tpu.vector_store %arg6[%c0_51, %c0_52], %115 {strides = array<i32>} : memref<1x1xf32, #tpu.memory_space<vmem>>, vector<1x1xf32>,
    } else {
    }
    return
  }
  func.func @transform_0(%arg0: i32) -> (i32, i32) {
    %c0_i32 = arith.constant 0 : i32
    %c0_i32_0 = arith.constant 0 : i32
    return %arg0, %c0_i32 : i32, i32
  }
  func.func @transform_1(%arg0: i32) -> (i32, i32) {
    %c0_i32 = arith.constant 0 : i32
    %c0_i32_0 = arith.constant 0 : i32
    %c0_i32_1 = arith.constant 0 : i32
    return %c0_i32, %c0_i32_0 : i32, i32
  }
  func.func @transform_2(%arg0: i32) -> (i32, i32) {
    %c0_i32 = arith.constant 0 : i32
    %c0_i32_0 = arith.constant 0 : i32
    %c0_i32_1 = arith.constant 0 : i32
    return %c0_i32, %c0_i32_0 : i32, i32
  }
  func.func @transform_3(%arg0: i32) -> (i32, i32, i32) {
    %c0_i32 = arith.constant 0 : i32
    %c0_i32_0 = arith.constant 0 : i32
    %c0_i32_1 = arith.constant 0 : i32
    return %arg0, %c0_i32, %c0_i32_0 : i32, i32, i32
  }
  func.func @transform_4(%arg0: i32) -> (i32, i32) {
    %c0_i32 = arith.constant 0 : i32
    %c0_i32_0 = arith.constant 0 : i32
    return %arg0, %c0_i32 : i32, i32
  }
  func.func @transform_5(%arg0: i32) -> (i32, i32) {
    %c0_i32 = arith.constant 0 : i32
    %c0_i32_0 = arith.constant 0 : i32
    %c0_i32_1 = arith.constant 0 : i32
    return %c0_i32, %c0_i32_0 : i32, i32
  }
}

</mosaic_0001>

<bundles_post_ra>
// kernel: temporal_memory_forward.3
= control target key start
LH: loop header
LB: loop body
LE: loop exit
PB: predicated region body
PF: predicated region fallthrough
CT: control target
= control target key end

     0   :  { %11 = vsyncpa [#allocation5], 0  ;;  %v649_v4 = vmov 0.0   ;;  %s964_s0 = inlined_call_operand.vmem [shape: f32[8,128], index: 0, kind: input, shape index: {}]   ;;  %s965_s1 = inlined_call_operand.vmem [shape: f32[128,128], index: 1, kind: input, shape index: {}]   ;;  %s966_s2 = inlined_call_operand.vmem [shape: f32[128,6], index: 2, kind: input, shape index: {}]   ;;  %s967_s3 = inlined_call_operand.vmem [shape: bf16[8,6,128], index: 3, kind: input, shape index: {}]   ;;  %s968_s4 = inlined_call_operand.hbm [shape: f32[8,128], index: 4, kind: output, shape index: {0}]   ;;  %s969_s5 = inlined_call_operand.hbm [shape: f32[1,1], index: 5, kind: output, shape index: {1}]  }
   0x1   :  { %v694_v0 = vld [vmem:[%s964_s0] sm:$0xff]  ;;  %v43_v2 = vld [vmem:[%s965_s1 + $0x8] sm:$0xff]  ;;  %526 = vmatprep.subr.bf16.mxu0 %v649_v4  ;;  %v44_v8 = vld [vmem:[%s965_s1 + $0x10] sm:$0xff]  ;;  %546 = vmatprep.subr.bf16.mxu1 %v649_v4 }
   0x2   :  { %v42_v1 = vld [vmem:[%s965_s1] sm:$0xff]  ;;  %v29_v3 = vmul.f32 %v694_v0, %v694_v0  ;;  %v59_v6 = vmul.f32 %v43_v2, %v43_v2  ;;  %v45_v9 = vld [vmem:[%s965_s1 + $0x18] sm:$0xff]  ;;  %v60_v10 = vmul.f32 %v44_v8, %v44_v8  ;;  %v47_v14 = vld [vmem:[%s965_s1 + $0x28] sm:$0xff] }
   0x3   :  { %v58_v5 = vmul.f32 %v42_v1, %v42_v1  ;;  %v106_v7 = vpack.c.bf16 %v43_v2, %v42_v1  ;;  %v46_v11 = vld [vmem:[%s965_s1 + $0x20] sm:$0xff]  ;;  %v61_v13 = vmul.f32 %v45_v9, %v45_v9 }
   0x4   :  { %30 = vadd.xlane.f32.xlu0 %v29_v3  ;;  %v62_v16 = vmul.f32 %v46_v11, %v46_v11 }
   0x5   :  { %v74_v12 = vadd.f32 %v59_v6, %v58_v5  ;;  %527 = vmatpush3.bf16.xpose.msra.mxu0 %v106_v7 }
   0x6   :  { %528 = vmatprep.subr.bf16.mxu0 %v649_v4 }
   0x7   :  { %v75_v15 = vadd.f32 %v74_v12, %v60_v10 }
   0x8   :  { %12 = vsyncpa [#allocation7], 0  ;;  %v48_v17 = vld [vmem:[%s965_s1 + $0x30] sm:$0xff]  ;;  %v107_v19 = vpack.c.bf16 %v45_v9, %v44_v8  ;;  %v63_v20 = vmul.f32 %v47_v14, %v47_v14  ;;  %v49_v21 = vld [vmem:[%s965_s1 + $0x38] sm:$0xff]  ;;  %v108_v31 = vpack.c.bf16 %v47_v14, %v46_v11  ;;  %vm650_vm0 = vmmov 0   ;;  %s660_s24 = smov [#allocation4]  }
   0x9   :  { %v76_v18 = vadd.f32 %v75_v15, %v61_v13  ;;  %v64_v23 = vmul.f32 %v48_v17, %v48_v17  ;;  %v50_v24 = vld [vmem:[%s965_s1 + $0x40] sm:$0xff]  ;;  %v65_v26 = vmul.f32 %v49_v21, %v49_v21  ;;  %v51_v27 = vld [vmem:[%s965_s1 + $0x48] sm:$0xff]  ;;  %v52_v30 = vld [vmem:[%s965_s1 + $0x50] sm:$0xff]  ;;  %v109_v44 = vpack.c.bf16 %v49_v21, %v48_v17  ;;  %542 = vmatprep.mubr.msk.bf16.mxu0 %vm650_vm0, %v649_v4  ;;  %s486_s0 = sshll.u32 %s660_s24, 4  ;;  %s487_s0 = int_to_ptr.vmem [resolvable:$true] %s486_s0 }
   0xa   :  { %v66_v29 = vmul.f32 %v50_v24, %v50_v24  ;;  %v67_v33 = vmul.f32 %v51_v27, %v51_v27  ;;  %v53_v34 = vld [vmem:[%s965_s1 + $0x58] sm:$0xff]  ;;  %v68_v36 = vmul.f32 %v52_v30, %v52_v30  ;;  %v54_v37 = vld [vmem:[%s965_s1 + $0x60] sm:$0xff]  ;;  %v55_v40 = vld [vmem:[%s965_s1 + $0x68] sm:$0xff]  ;;  %v110_v53 = vpack.c.bf16 %v51_v27, %v50_v24  ;;  %562 = vmatprep.mubr.msk.bf16.mxu1 %vm650_vm0, %v649_v4 }
   0xb   :  { %v77_v22 = vadd.f32 %v76_v18, %v62_v16  ;;  %v69_v39 = vmul.f32 %v53_v34, %v53_v34  ;;  %v70_v42 = vmul.f32 %v54_v37, %v54_v37  ;;  %v56_v43 = vld [vmem:[%s965_s1 + $0x70] sm:$0xff]  ;;  %v71_v46 = vmul.f32 %v55_v40, %v55_v40  ;;  %v57_v47 = vld [vmem:[%s965_s1 + $0x78] sm:$0xff]  ;;  %v164_v24 = vld [vmem:[%s966_s2] sm:$0xff] }
   0xc   :  { %v72_v49 = vmul.f32 %v56_v43, %v56_v43  ;;  %v73_v51 = vmul.f32 %v57_v47, %v57_v47  ;;  %v111_v55 = vpack.c.bf16 %v53_v34, %v52_v30  ;;  %v112_v56 = vpack.c.bf16 %v55_v40, %v54_v37  ;;  %v167_v27 = vld [vmem:[%s966_s2 + $0x18] sm:$0xff]  ;;  %v169_v30 = vld [vmem:[%s966_s2 + $0x28] sm:$0xff] }
   0xd   :  { %529 = vmatpush3.bf16.xpose.msra.mxu0 %v107_v19  ;;  %v78_v25 = vadd.f32 %v77_v22, %v63_v20  ;;  %v113_v57 = vpack.c.bf16 %v57_v47, %v56_v43  ;;  %v173_v40 = vld [vmem:[%s966_s2 + $0x48] sm:$0xff]  ;;  %v652_v43 = vmov -inf   ;;  %v176_v47 = vld [vmem:[%s966_s2 + $0x60] sm:$0xff]  ;;  %vm228_vm5 = vcmask 48128  }
   0xe   :  { %530 = vmatprep.subr.bf16.mxu0 %v649_v4  ;;  %27 = vst [vmem:[#allocation3] sm:$0x1] %v652_v43  ;;  %vm473_vm6 = vcmask 1040384   ;;  %vm270_vm7 = vcmask 1041409   ;;  %vm273_vm8 = vcmask 1042434   ;;  %vm276_vm9 = vcmask 1043459  }
   0xf   :  { %v79_v28 = vadd.f32 %v78_v25, %v64_v23  ;;  %v165_v25 = vld [vmem:[%s966_s2 + $0x8] sm:$0xff]  ;;  %vm279_vm10 = vcmask 1044484   ;;  %vm282_vm11 = vcmask 1045509   ;;  %vm285_vm12 = vcmask 1046534  }
  0x10   :  { %vm288_vm13 = vcmask 1047559   ;;  %vm478_vm14 = vcmask 0  }
  0x11   :  { %v80_v32 = vadd.f32 %v79_v28, %v65_v26  ;;  %v180_v26 = vpack.c.bf16 %v165_v25, %v164_v24  ;;  %v655_v24 = vmov 3   ;;  %v656_v25 = vmov 2  }
  0x13   :  { %v81_v35 = vadd.f32 %v80_v32, %v66_v29  ;;  %547 = vmatpush3.bf16.msra.mxu1 %v180_v26  ;;  %v168_v29 = vld [vmem:[%s966_s2 + $0x20] sm:$0xff]  ;;  %v170_v32 = vld [vmem:[%s966_s2 + $0x30] sm:$0xff]  ;;  %v658_v26 = vmov 5  }
  0x14   :  { %548 = vmatprep.subr.bf16.mxu1 %v649_v4 }
  0x15   :  { %531 = vmatpush3.bf16.xpose.msra.mxu0 %v108_v31  ;;  %v82_v38 = vadd.f32 %v81_v35, %v67_v33  ;;  %v182_v31 = vpack.c.bf16 %v169_v30, %v168_v29  ;;  %v171_v33 = vld [vmem:[%s966_s2 + $0x38] sm:$0xff] }
  0x16   :  { %532 = vmatprep.subr.bf16.mxu0 %v649_v4  ;;  %v183_v34 = vpack.c.bf16 %v171_v33, %v170_v32  ;;  %v240_v33 = vld [vmem:[%s967_s3] sm:$0x1] }
  0x17   :  { %v83_v41 = vadd.f32 %v82_v38, %v68_v36 }
  0x19   :  { %v84_v45 = vadd.f32 %v83_v41, %v69_v39  ;;  %v172_v39 = vld [vmem:[%s966_s2 + $0x40] sm:$0xff] }
  0x1a   :  { %v184_v41 = vpack.c.bf16 %v173_v40, %v172_v39  ;;  %v243_v40 = vld [vmem:[%s967_s3 + $0xc] sm:$0x1] }
  0x1b   :  { %v85_v48 = vadd.f32 %v84_v45, %v70_v42  ;;  %v651_v42 = vmov inf   ;;  %v175_v45 = vld [vmem:[%s966_s2 + $0x58] sm:$0xff] }
  0x1c   :  { %26 = vst [vmem:[#allocation2] sm:$0x1] %v651_v42 }
  0x1d   :  { %533 = vmatpush3.bf16.xpose.msra.mxu0 %v109_v44  ;;  %v86_v50 = vadd.f32 %v85_v48, %v71_v46  ;;  %v174_v44 = vld [vmem:[%s966_s2 + $0x50] sm:$0xff]  ;;  %v177_v48 = vld [vmem:[%s966_s2 + $0x68] sm:$0xff] }
  0x1e   :  { %534 = vmatprep.subr.bf16.mxu0 %v649_v4  ;;  %v185_v46 = vpack.c.bf16 %v175_v45, %v174_v44  ;;  %v244_v45 = vld [vmem:[%s967_s3 + $0x10] sm:$0x1] }
  0x1f   :  { %v87_v52 = vadd.f32 %v86_v50, %v72_v49  ;;  %v186_v49 = vpack.c.bf16 %v177_v48, %v176_v47  ;;  %v178_v50 = vld [vmem:[%s966_s2 + $0x70] sm:$0xff]  ;;  %v840_v47 = vld [vmem:[%s967_s3 + $0x18] sm:$0x1]  ;;  %v251_v48 = vunpack.c.l.bf16 %v243_v40 }
  0x21   :  { %v88_v54 = vadd.f32 %v87_v52, %v73_v51  ;;  %v179_v51 = vld [vmem:[%s966_s2 + $0x78] sm:$0xff] }
  0x22   :  { %v187_v52 = vpack.c.bf16 %v179_v51, %v178_v50  ;;  %v845_v50 = vld [vmem:[%s967_s3 + $0x1c] sm:$0x1] }
  0x23   :  { %v89_v58 = vrot.slane %v88_v54, 4 }
  0x25   :  { %535 = vmatpush3.bf16.xpose.msra.mxu0 %v110_v53  ;;  %v90_v59 = vadd.f32 %v89_v58, %v88_v54 }
  0x26   :  { %536 = vmatprep.subr.bf16.mxu0 %v649_v4 }
  0x27   :  { %v91_v60 = vrot.slane %v90_v59, 2 }
  0x29   :  { %v92_v61 = vadd.f32 %v91_v60, %v90_v59 }
  0x2b   :  { %v93_v62 = vrot.slane %v92_v61, 1 }
  0x2d   :  { %537 = vmatpush3.bf16.xpose.msra.mxu0 %v111_v55  ;;  %v94_v63 = vadd.f32 %v93_v62, %v92_v61 }
  0x2e   :  { %538 = vmatprep.subr.bf16.mxu0 %v649_v4 }
  0x2f   :  { %585 = vrsqrt.f32 %v94_v63  ;;  %vm97_vm1 = vcmp.eq.f32.partialorder %v94_v63, inf  ;;  %v100_v5 = vand.u32 2147483648, %v94_v63  ;;  %vm99_vm2 = vcmp.eq.f32.partialorder %v94_v63, 0.0 }
  0x35   :  { %539 = vmatpush3.bf16.xpose.msra.mxu0 %v112_v56 }
  0x36   :  { %540 = vmatprep.subr.bf16.mxu0 %v649_v4 }
  0x39   :  { %v586_v1 = vpop.eup %585 }
  0x3a   :  { %v96_v3 = vmul.f32 %v586_v1, %v94_v63 }
  0x3c   :  { %v98_v6 = vsel %vm97_vm1, %v94_v63, %v96_v3  ;;  %v456_v3 = vld [vmem:[#allocation3] sm:$0x1] }
  0x3d   :  { %541 = vmatpush3.bf16.xpose.msra.mxu0 %v113_v57  ;;  %v101_v7 = vsel %vm99_vm2, %v100_v5, %v98_v6 }
  0x3e   :  { %v102_v11 = vmax.f32 %v101_v7, 1e-12 }
  0x91   :  { %v31_v2 = vpop.xlane.xlu0 %30 }
  0x92   :  { %587 = vrsqrt.f32 %v31_v2  ;;  %vm34_vm3 = vcmp.eq.f32.partialorder %v31_v2, inf  ;;  %v37_v10 = vand.u32 2147483648, %v31_v2  ;;  %vm36_vm4 = vcmp.eq.f32.partialorder %v31_v2, 0.0 }
  0x93   :  { %589 = vrcp.f32 %v102_v11 }
  0x9c   :  { %v588_v8 = vpop.eup %587 }
  0x9d   :  { %v33_v9 = vmul.f32 %v588_v8, %v31_v2  ;;  %v590_v15 = vpop.eup %589 }
  0x9f   :  { %v35_v12 = vsel %vm34_vm3, %v31_v2, %v33_v9  ;;  %v447_v2 = vld [vmem:[#allocation2] sm:$0x1] }
  0xa0   :  { %v38_v13 = vsel %vm36_vm4, %v37_v10, %v35_v12 }
  0xa1   :  { %v39_v14 = vmax.f32 %v38_v13, 1e-12 }
  0xa3   :  { %591 = vrcp.f32 %v39_v14 }
  0xad   :  { %v592_v16 = vpop.eup %591 }
  0xae   :  { %v41_v17 = vmul.f32 %v592_v16, %v694_v0  ;;  %v166_v0 = vld [vmem:[%s966_s2 + $0x10] sm:$0xff] }
  0xaf   :  { %v181_v28 = vpack.c.bf16 %v167_v27, %v166_v0  ;;  %v657_v0 = vmov 4  }
  0xb0   :  { %v104_v18 = vmul.f32 %v590_v15, %v41_v17 }
  0xb1   :  { %549 = vmatpush3.bf16.msra.mxu1 %v181_v28 }
  0xb2   :  { %v105_v19 = vpack.c.bf16 %v104_v18, %v104_v18  ;;  %550 = vmatprep.subr.bf16.mxu1 %v649_v4 }
  0xb4   :  { %543 = vmatmul.mubr.bf16.vlgmr.msra.gmra.mrb[0].mxu0 %v105_v19  ;;  %v653_v19 = vmov 1  }
  0xb5   :  { %551 = vmatpush3.bf16.msra.mxu1 %v182_v31  ;;  %579 = vset.pattern.permute.xlu0 %v653_v19 }
  0xb6   :  { %552 = vmatprep.subr.bf16.mxu1 %v649_v4 }
  0xb9   :  { %553 = vmatpush3.bf16.msra.mxu1 %v183_v34  ;;  %v241_v34 = vld [vmem:[%s967_s3 + $0x4] sm:$0x1] }
  0xba   :  { %554 = vmatprep.subr.bf16.mxu1 %v649_v4  ;;  %v249_v39 = vunpack.c.l.bf16 %v241_v34 }
  0xbd   :  { %555 = vmatpush3.bf16.msra.mxu1 %v184_v41 }
  0xbe   :  { %556 = vmatprep.subr.bf16.mxu1 %v649_v4 }
  0xc1   :  { %557 = vmatpush3.bf16.msra.mxu1 %v185_v46  ;;  %v245_v46 = vld [vmem:[%s967_s3 + $0x14] sm:$0x1] }
  0xc2   :  { %558 = vmatprep.subr.bf16.mxu1 %v649_v4 }
  0xc5   :  { %559 = vmatpush3.bf16.msra.mxu1 %v186_v49  ;;  %v269_v49 = vrot.slane %v249_v39, 7 }
  0xc6   :  { %560 = vmatprep.subr.bf16.mxu1 %v649_v4 }
  0xc9   :  { %561 = vmatpush3.bf16.msra.mxu1 %v187_v52  ;;  %v850_v52 = vld [vmem:[%s967_s3 + $0xc] sm:$0x2] }
 0x187   :  { %v148_v20 = vpop.f32.mrb[0].mxu0 }
 0x188   :  { %154 = vmax.xlane.f32.xlu0 %v148_v20  ;;  %v544_v21 = vpop.f32.mrb[1].mxu0 }
 0x189   :  { %v151_v22 = vpop.f32.mrb[2].mxu0 }
 0x18a   :  { %v545_v23 = vpop.f32.mrb[3].mxu0 }
 0x215   :  { %v155_v35 = vpop.xlane.xlu0 %154 }
 0x216   :  { %v156_v36 = vsub.f32 %v148_v20, %v155_v35  ;;  %v654_v20 = vmov 0   ;;  %v242_v35 = vld [vmem:[%s967_s3 + $0x8] sm:$0x1] }
 0x217   :  { %578 = vset.pattern.permute.xlu1 %v654_v20  ;;  %v250_v41 = vunpack.c.l.bf16 %v242_v35 }
 0x218   :  { %v157_v37 = vmul.f32 1.442695, %v156_v36  ;;  %v248_v36 = vunpack.c.l.bf16 %v240_v33 }
 0x219   :  { %v299_v51 = vrot.slane %v250_v41, 7 }
 0x21a   :  { %593 = vpow2.f32 %v157_v37  ;;  %v314_v37 = vld [vmem:[%s967_s3] sm:$0x2]  ;;  %v297_v42 = vrot.slane %v248_v36, 1 }
 0x21b   :  { %v322_v43 = vunpack.c.l.bf16 %v314_v37 }
 0x224   :  { %v594_v38 = vpop.eup %593 }
 0x225   :  { %159 = vadd.xlane.f32.xlu1 %v594_v38 }
 0x2b2   :  { %v160_v53 = vpop.xlane.xlu1 %159 }
 0x2b3   :  { %595 = vrcp.f32 %v160_v53  ;;  %v298_v53 = vsel %vm270_vm7, %v249_v39, %v297_v42  ;;  %v321_v39 = vld [vmem:[%s967_s3 + $0x1c] sm:$0x2] }
 0x2bd   :  { %v596_v54 = vpop.eup %595 }
 0x2be   :  { %v162_v55 = vmul.f32 %v596_v54, %v594_v38  ;;  %v315_v38 = vld [vmem:[%s967_s3 + $0x4] sm:$0x2]  ;;  %v342_v54 = vrot.slane %v322_v43, 2 }
 0x2bf   :  { %v323_v44 = vunpack.c.l.bf16 %v315_v38 }
 0x2c0   :  { %v448_v56 = vrot.slane %v162_v55, 4  ;;  %v163_v57 = vpack.c.bf16 %v162_v55, %v162_v55 }
 0x2c2   :  { %v449_v58 = vmin.f32 %v162_v55, %v448_v56  ;;  %v458_v59 = vmax.f32 %v162_v55, %v448_v56  ;;  %563 = vmatmul.mubr.bf16.vlgmr.msra.gmra.mrb[0].mxu1 %v163_v57  ;;  %v343_v55 = vrot.slane %v323_v44, 1  ;;  %v252_v56 = vunpack.c.l.bf16 %v244_v45 }
 0x2c3   :  { %v253_v57 = vunpack.c.l.bf16 %v245_v46 }
 0x2c4   :  { %v450_v4 = vrot.slane %v449_v58, 2  ;;  %v459_v60 = vrot.slane %v458_v59, 2 }
 0x2c5   :  { %v305_v20 = vrot.slane %v253_v57, 4  ;;  %v281_v33 = vrot.slane %v253_v57, 3 }
 0x2c6   :  { %v451_v61 = vmin.f32 %v449_v58, %v450_v4  ;;  %v460_v62 = vmax.f32 %v458_v59, %v459_v60  ;;  %v254_v58 = vunpack.c.l.bf16 %v840_v47  ;;  %v272_v59 = vrot.slane %v250_v41, 6  ;;  %v380_v4 = vld [vmem:[%s967_s3] sm:$0x4]  ;;  %v381_v60 = vld [vmem:[%s967_s3 + $0x4] sm:$0x4] }
 0x2c8   :  { %v452_v63 = vrot.slane %v451_v61, 1  ;;  %v461_v1 = vrot.slane %v460_v62, 1  ;;  %v284_v47 = vrot.slane %v254_v58, 2 }
 0x2ca   :  { %v453_v5 = vmin.f32 %v451_v61, %v452_v63  ;;  %v462_v6 = vmax.f32 %v460_v62, %v461_v1  ;;  %v255_v61 = vunpack.c.l.bf16 %v845_v50  ;;  %v301_v62 = vrot.slane %v251_v48, 6  ;;  %v316_v1 = vld [vmem:[%s967_s3 + $0x8] sm:$0x2]  ;;  %v385_v50 = vld [vmem:[%s967_s3 + $0x14] sm:$0x4] }
 0x2cb   :  { %v271_v63 = vsel %vm270_vm7, %v269_v49, %v248_v36 }
 0x2cc   :  { %v454_v7 = vmin.f32 %v447_v2, %v453_v5  ;;  %v463_v8 = vmax.f32 %v456_v3, %v462_v6  ;;  %v318_v2 = vld [vmem:[%s967_s3 + $0x10] sm:$0x2]  ;;  %v325_v3 = vunpack.c.l.bf16 %v850_v52  ;;  %v300_v5 = vsel %vm273_vm8, %v299_v51, %v298_v53 }
 0x2cd   :  { %v275_v6 = vrot.slane %v251_v48, 5  ;;  %v309_v37 = vrot.slane %v255_v61, 2  ;;  %v287_v53 = vrot.slane %v255_v61, 1  ;;  %v386_v61 = vld [vmem:[%s967_s3 + $0x18] sm:$0x4] }
 0x2ce   :  { %455 = vst [vmem:[#allocation2] sm:$0x1] %v454_v7  ;;  %464 = vst [vmem:[#allocation3] sm:$0x1] %v463_v8  ;;  %v344_v7 = vsel %vm270_vm7, %v343_v55, %v342_v54  ;;  %v382_v8 = vld [vmem:[%s967_s3 + $0x8] sm:$0x4]  ;;  %v329_v54 = vunpack.c.l.bf16 %v321_v39 }
 0x2cf   :  { %v346_v19 = vrot.slane %v325_v3, 7  ;;  %v384_v55 = vld [vmem:[%s967_s3 + $0x10] sm:$0x4] }
 0x2d0   :  { %v354_v52 = vrot.slane %v329_v54, 3 }
 0x2d5   :  { %v468_v27 = vld [vmem:[#allocation2] sm:$0x1]  ;;  %v469_v28 = vld [vmem:[#allocation3] sm:$0x1] }
 0x2d6   :  { %v470_v29 = vsub.f32 %v468_v27, %v469_v28 }
 0x2d8   :  { %v471_v30 = vadd.f32 1.0, %v470_v29 }
 0x2da   :  { %v472_v31 = vmax.f32 %v471_v30, 0.0  ;;  %v307_v30 = vrot.slane %v254_v58, 3 }
 0x2dc   :  { %v474_v32 = vsel %vm473_vm6, %v472_v31, 0.0 }
 0x395   :  { %v222_v9 = vpop.f32.mrb[0].mxu1 }
 0x396   :  { %v564_v10 = vpop.f32.mrb[1].mxu1  ;;  %v229_v11 = vsel %vm228_vm5, %v222_v9, -inf }
 0x397   :  { %230 = vmax.xlane.f32.xlu1 %v229_v11  ;;  %v225_v12 = vpop.f32.mrb[2].mxu1  ;;  %v389_v10 = vunpack.c.l.bf16 %v381_v60  ;;  %v303_v11 = vrot.slane %v252_v56, 5 }
 0x398   :  { %v565_v13 = vpop.f32.mrb[3].mxu1  ;;  %v274_v12 = vsel %vm273_vm8, %v272_v59, %v271_v63 }
 0x399   :  { %v319_v13 = vld [vmem:[%s967_s3 + $0x14] sm:$0x2]  ;;  %v409_v28 = vrot.slane %v389_v10, 3  ;;  %v430_v45 = vrot.slane %v389_v10, 4 }
 0x424   :  { %v231_v14 = vpop.xlane.xlu1 %230 }
 0x425   :  { %v232_v15 = vsub.f32 %v222_v9, %v231_v14  ;;  %v388_v9 = vunpack.c.l.bf16 %v380_v4  ;;  %v324_v14 = vunpack.c.l.bf16 %v316_v1  ;;  %v393_v1 = vunpack.c.l.bf16 %v385_v50 }
 0x427   :  { %v233_v16 = vmul.f32 1.442695, %v232_v15  ;;  %v326_v15 = vunpack.c.l.bf16 %v318_v2  ;;  %v408_v27 = vrot.slane %v388_v9, 4  ;;  %v366_v31 = vrot.slane %v324_v14, 1 }
 0x429   :  { %597 = vpow2.f32 %v233_v16  ;;  %v302_v16 = vsel %vm276_vm9, %v301_v62, %v300_v5  ;;  %v369_v57 = vrot.slane %v326_v15, 7 }
 0x42a   :  { %v304_v29 = vsel %vm279_vm10, %v303_v11, %v302_v16 }
 0x42b   :  { %v306_v46 = vsel %vm282_vm11, %v305_v20, %v304_v29  ;;  %v375_v29 = vrot.slane %v329_v54, 4 }
 0x42c   :  { %v308_v5 = vsel %vm285_vm12, %v307_v30, %v306_v46 }
 0x42d   :  { %v310_v16 = vsel %vm288_vm13, %v309_v37, %v308_v5 }
 0x433   :  { %v598_v17 = vpop.eup %597 }
 0x434   :  { %v235_v18 = vsel %vm228_vm5, %v598_v17, 0.0 }
 0x435   :  { %236 = vadd.xlane.f32.xlu0 %v235_v18  ;;  %v364_v18 = vrot.slane %v323_v44, 2  ;;  %v429_v44 = vrot.slane %v388_v9, 5 }
 0x437   :  { %v431_v2 = vsel %vm270_vm7, %v430_v45, %v429_v44 }
 0x4c2   :  { %v237_v21 = vpop.xlane.xlu0 %236 }
 0x4c3   :  { %599 = vrcp.f32 %v237_v21  ;;  %v278_v21 = vrot.slane %v252_v56, 4 }
 0x4cd   :  { %v600_v22 = vpop.eup %599 }
 0x4ce   :  { %v239_v23 = vmul.f32 %v600_v22, %v598_v17  ;;  %v363_v17 = vrot.slane %v322_v43, 3  ;;  %v345_v22 = vsel %vm273_vm8, %v324_v14, %v344_v7  ;;  %v410_v43 = vsel %vm270_vm7, %v409_v28, %v408_v27 }
 0x4cf   :  { %v347_v35 = vsel %vm276_vm9, %v346_v19, %v345_v22  ;;  %v392_v7 = vunpack.c.l.bf16 %v384_v55  ;;  %v394_v14 = vunpack.c.l.bf16 %v386_v61 }
 0x4d0   :  { %294 = vperm.xlu0 %579, %v239_v23   ;;  %258 = vperm.xlu1 %578, %v239_v23   ;;  %v365_v34 = vsel %vm270_vm7, %v364_v18, %v363_v17  ;;  %v416_v18 = vrot.slane %v393_v1, 7 }
 0x4d1   :  { %v367_v48 = vsel %vm273_vm8, %v366_v31, %v365_v34  ;;  %v418_v28 = vrot.slane %v394_v14, 6 }
 0x4d2   :  { %v368_v62 = vsel %vm276_vm9, %v325_v3, %v367_v48 }
 0x4d3   :  { %v370_v11 = vsel %vm279_vm10, %v369_v57, %v368_v62 }
 0x4d4   :  { %581 = vset.pattern.permute.xlu0 %v655_v24  ;;  %580 = vset.pattern.permute.xlu1 %v656_v25  ;;  %v390_v24 = vunpack.c.l.bf16 %v382_v8  ;;  %v277_v25 = vsel %vm276_vm9, %v275_v6, %v274_v12 }
 0x4d5   :  { %360 = vperm.xlu0 %581, %v239_v23   ;;  %331 = vperm.xlu1 %580, %v239_v23   ;;  %v280_v38 = vsel %vm279_vm10, %v278_v21, %v277_v25  ;;  %v436_v21 = vrot.slane %v392_v7, 1 }
 0x4d6   :  { %v411_v41 = vrot.slane %v390_v24, 2  ;;  %v283_v51 = vsel %vm282_vm11, %v281_v33, %v280_v38  ;;  %v432_v4 = vrot.slane %v390_v24, 3  ;;  %v439_v38 = vrot.slane %v394_v14, 7 }
 0x4d7   :  { %v286_v6 = vsel %vm285_vm12, %v284_v47, %v283_v51 }
 0x4d8   :  { %v412_v58 = vsel %vm273_vm8, %v411_v41, %v410_v43  ;;  %v289_v17 = vsel %vm288_vm13, %v287_v53, %v286_v6 }
 0x4d9   :  { %582 = vset.pattern.permute.xlu0 %v657_v0  ;;  %583 = vset.pattern.permute.xlu1 %v658_v26  ;;  %v320_v0 = vld [vmem:[%s967_s3 + $0x18] sm:$0x2] }
 0x4da   :  { %397 = vperm.xlu0 %582, %v239_v23   ;;  %v328_v40 = vunpack.c.l.bf16 %v320_v0 }
 0x4dc   :  { %v352_v59 = vrot.slane %v328_v40, 4  ;;  %v373_v19 = vrot.slane %v328_v40, 5 }
 0x4de   :  { %584 = vset.pattern.permute.xlu0 %v658_v26  ;;  %v327_v26 = vunpack.c.l.bf16 %v319_v13  ;;  %v387_v13 = vld [vmem:[%s967_s3 + $0x1c] sm:$0x4] }
 0x4df   :  { %v395_v25 = vunpack.c.l.bf16 %v387_v13 }
 0x4e0   :  { %v350_v42 = vrot.slane %v327_v26, 5  ;;  %v371_v9 = vrot.slane %v327_v26, 6 }
 0x4e1   :  { %v441_v44 = vrot.slane %v395_v25, 6 }
 0x4e2   :  { %v372_v22 = vsel %vm282_vm11, %v371_v9, %v370_v11 }
 0x4f9   :  { %475 = vadd.xlane.f32.xlu1 %v474_v32  ;;  %v348_v32 = vrot.slane %v326_v15, 6  ;;  %v433_v15 = vsel %vm273_vm8, %v432_v4, %v431_v2 }
 0x4fb   :  { %v349_v49 = vsel %vm279_vm10, %v348_v32, %v347_v35  ;;  %v374_v32 = vsel %vm285_vm12, %v373_v19, %v372_v22  ;;  %v420_v35 = vrot.slane %v395_v25, 5 }
 0x4fc   :  { %v351_v63 = vsel %vm282_vm11, %v350_v42, %v349_v49  ;;  %v376_v39 = vsel %vm288_vm13, %v375_v29, %v374_v32 }
 0x4fd   :  { %v353_v12 = vsel %vm285_vm12, %v352_v59, %v351_v63 }
 0x50a   :  { %426 = vperm.xlu1 %583, %v239_v23   ;;  %v383_v23 = vld [vmem:[%s967_s3 + $0xc] sm:$0x4]  ;;  %s659_s3 = smov [#allocation6]  }
 0x50b   :  { %v391_v36 = vunpack.c.l.bf16 %v383_v23  ;;  %v355_v23 = vsel %vm288_vm13, %v354_v52, %v353_v12  ;;  %s496_s23 = sshll.u32 %s659_s3, 4  ;;  %s497_s23 = int_to_ptr.vmem [resolvable:$true] %s496_s23 }
 0x50c   :  { %s601_s1 = scalar_lea.vmem %s497_s23, 16  ;;  %s605_s25 = scalar_lea.vmem %s497_s23, 32 }
 0x50d   :  { %v413_v56 = vrot.slane %v391_v36, 1  ;;  %v434_v10 = vrot.slane %v391_v36, 2  ;;  %p602_p0 = scmp.ne.s32.totalorder %s497_s23, %s601_s1  ;;  %p606_p1 = scmp.lt.s32.totalorder %s497_s23, %s497_s23 }
 0x50e   :  { %p607_p2 = scmp.lt.s32.totalorder %s605_s25, %s601_s1 }
 0x50f   :  { %v414_v3 = vsel %vm276_vm9, %v413_v56, %v412_v58  ;;  %v435_v0 = vsel %vm276_vm9, %v434_v10, %v433_v15 }
 0x510   :  { %v415_v20 = vsel %vm279_vm10, %v392_v7, %v414_v3  ;;  %v437_v34 = vsel %vm279_vm10, %v436_v21, %v435_v0  ;;  %p608_p3 = por %p607_p2, %p606_p1 }
 0x511   :  { %v417_v31 = vsel %vm282_vm11, %v416_v18, %v415_v20  ;;  %v438_v40 = vsel %vm282_vm11, %v393_v1, %v437_v34 }
 0x512   :  { %v419_v37 = vsel %vm285_vm12, %v418_v28, %v417_v31  ;;  %v440_v46 = vsel %vm285_vm12, %v439_v38, %v438_v40  ;;  %p609_p4 = pnand %p608_p3, %p602_p0 }
 0x513   :  { %v421_v42 = vsel %vm288_vm13, %v420_v35, %v419_v37  ;;  %v442_v51 = vsel %vm288_vm13, %v441_v44, %v440_v46 }
 0x54f   :  { %v259_v60 = vpop.permute.xlu1 %258  ;;  %v295_v8 = vpop.permute.xlu0 %294 }
 0x550   :  { %v312_v26 = vmul.f32 %v310_v16, %v295_v8  ;;  %v291_v27 = vmul.f32 %v289_v17, %v259_v60 }
 0x552   :  { %v313_v36 = vadd.f32 %v312_v26, %v291_v27 }
 0x554   :  { %v332_v24 = vpop.permute.xlu1 %331  ;;  %v361_v30 = vpop.permute.xlu0 %360 }
 0x555   :  { %v357_v33 = vmul.f32 %v355_v23, %v332_v24  ;;  %v378_v45 = vmul.f32 %v376_v39, %v361_v30 }
 0x557   :  { %v358_v41 = vadd.f32 %v357_v33, %v313_v36 }
 0x559   :  { %v398_v43 = vpop.permute.xlu0 %397  ;;  %v379_v48 = vadd.f32 %v378_v45, %v358_v41 }
 0x55a   :  { %v423_v49 = vmul.f32 %v421_v42, %v398_v43 }
 0x586   :  { %v476_v47 = vpop.xlane.xlu1 %475 }
 0x587   :  { %v477_v50 = vmul.f32 0.0078125, %v476_v47 }
 0x589   :  { %479 = vst.msk [vmem:[#allocation6] sm:$0x1] %vm478_vm14, %v477_v50 }
 0x58a   :  { %v427_v53 = vpop.permute.xlu1 %426 }
 0x58b   :  { %612 = shalt.err (!%p609_p4)
}
 0x58c   :  { %s613_s28 = scalar_lea.hbm %s969_s5, 16 }
 0x58d   :  { %p614_p5 = scmp.ne.s32.totalorder %s969_s5, %s613_s28  ;;  %p617_p6 = scmp.lt.u32.totalorder %s613_s28, %s969_s5 }
 0x58f   :  { %p619_p7 = pnand %p617_p6, %p614_p5 }
 0x591   :  { %622 = shalt.err (!%p619_p7)
}
 0x592   :  { %499 = dma.vmem_to_hbm [thread:$0]  %s497_s23, 16, %s969_s5, [#allocation7]   ;;  %v424_v54 = vadd.f32 %v423_v49, %v379_v48  ;;  %v444_v55 = vmul.f32 %v442_v51, %v427_v53 }
 0x593   :  { %s623_s9 = scalar_lea.vmem %s487_s0, 128  ;;  %p628_p9 = scmp.lt.s32.totalorder %s487_s0, %s487_s0 }
 0x594   :  { %v445_v56 = vadd.f32 %v444_v55, %v424_v54  ;;  %p624_p8 = scmp.ne.s32.totalorder %s487_s0, %s623_s9  ;;  %p629_p10 = scmp.lt.s32.totalorder %s623_s9, %s623_s9 }
 0x596   :  { %446 = vst [vmem:[#allocation4] sm:$0xff] %v445_v56  ;;  %p630_p11 = por %p629_p10, %p628_p9 }
 0x598   :  { %p631_p12 = pnand %p630_p11, %p624_p8 }
 0x59a   :  { %634 = shalt.err (!%p631_p12)
}
 0x59b   :  { %s635_s12 = scalar_lea.hbm %s968_s4, 128 }
 0x59c   :  { %p636_p13 = scmp.ne.s32.totalorder %s968_s4, %s635_s12  ;;  %p639_p0 = scmp.lt.u32.totalorder %s635_s12, %s968_s4 }
 0x59e   :  { %p641_p1 = pnand %p639_p0, %p636_p13 }
 0x5a0   :  { %644 = shalt.err (!%p641_p1)
}
 0x5a1   :  { %489 = dma.vmem_to_hbm [thread:$0]  %s487_s0, 128, %s968_s4, [#allocation5]  }
 0x5a2   :  { %645 = dma.done.wait [#allocation5], 128  }
 0x5a3   :  { %646 = vsyncadd [#allocation5], 4294967168 }
 0x5a4   :  { %647 = dma.done.wait [#allocation7], 16  }
 0x5a5   :  { %648 = vsyncadd [#allocation7], 4294967280 }
 0x5a6   :  { %506 = vsyncpa [#allocation5], 1 }
 0x5a7   :  { %507 = vsyncpa [#allocation7], 1 }

// kernel: temporal_memory_forward.2
= control target key start
LH: loop header
LB: loop body
LE: loop exit
PB: predicated region body
PF: predicated region fallthrough
CT: control target
= control target key end

     0   :  { %v1643_v1 = vmov 0   ;;  %vm121_vm0 = vcmask 1041409   ;;  %vm124_vm1 = vcmask 1042434   ;;  %vm127_vm2 = vcmask 1043459   ;;  %s2887_s1 = inlined_call_operand.vmem [shape: bf16[256,512], index: 1, kind: input, shape index: {}]   ;;  %s2888_s0 = inlined_call_operand.vmem [shape: bf16[8,6,128], index: 0, kind: input, shape index: {}]   ;;  %s2889_s2 = inlined_call_operand.vmem [shape: f32[1,512], index: 2, kind: input, shape index: {}]   ;;  %s2890_s3 = inlined_call_operand.vmem [shape: f32[8,128], index: 3, kind: output, shape index: {}]  }
   0x1   :  { %v1667_v0 = vld [vmem:[%s2887_s1 + $0x4] ss:$16 sps:$4 sm:$0xff]   ;;  %516 = vmatprep.mubr.bf16.mxu0 %v1643_v1  ;;  %557 = vmatprep.mubr.bf16.mxu1 %v1643_v1  ;;  %v1672_v2 = vld [vmem:[%s2887_s1] ss:$16 sps:$4 sm:$0xff]   ;;  %v1684_v4 = vld [vmem:[%s2887_s1 + $0xc] ss:$16 sps:$4 sm:$0xff]  }
   0x2   :  { %2969 = vst [vmem:[#allocation2_spill] sm:$0xff] %v1667_v0  ;;  %484 = vmatprep.subr.bf16.mxu0 %v1667_v0  ;;  %v1678_v3 = vld [vmem:[%s2887_s1 + $0x24] ss:$16 sps:$4 sm:$0xff]   ;;  %2970 = vst [vmem:[#allocation3_spill] sm:$0xff] %v1684_v4  ;;  %v1689_v5 = vld [vmem:[%s2887_s1 + $0x20] ss:$16 sps:$4 sm:$0xff]   ;;  %525 = vmatprep.subr.bf16.mxu1 %v1684_v4 }
   0x3   :  { %485 = vmatpush1.bf16.msra.mxu0 %v1672_v2  ;;  %v1694_v6 = vld [vmem:[%s2887_s1 + $0x8] ss:$16 sps:$4 sm:$0xff]   ;;  %v1700_v7 = vld [vmem:[%s2887_s1 + $0x44] ss:$16 sps:$4 sm:$0xff]   ;;  %v1706_v8 = vld [vmem:[%s2887_s1 + $0x2c] ss:$16 sps:$4 sm:$0xff]  }
   0x4   :  { %486 = vmatprep.subr.bf16.mxu0 %v1678_v3  ;;  %526 = vmatpush1.bf16.msra.mxu1 %v1694_v6  ;;  %v1712_v9 = vld [vmem:[%s2887_s1 + $0x28] ss:$16 sps:$4 sm:$0xff]   ;;  %v1719_v10 = vld [vmem:[%s2887_s1 + $0x40] ss:$16 sps:$4 sm:$0xff]   ;;  %v1725_v11 = vld [vmem:[%s2887_s1 + $0x64] ss:$16 sps:$4 sm:$0xff]  }
   0x5   :  { %527 = vmatprep.subr.bf16.mxu1 %v1706_v8  ;;  %v1730_v12 = vld [vmem:[%s2887_s1 + $0x4c] ss:$16 sps:$4 sm:$0xff]   ;;  %v1736_v13 = vld [vmem:[%s2887_s1 + $0x48] ss:$16 sps:$4 sm:$0xff]   ;;  %v1743_v14 = vld [vmem:[%s2887_s1 + $0x60] ss:$16 sps:$4 sm:$0xff]  }
   0x6   :  { %v1748_v15 = vld [vmem:[%s2887_s1 + $0x6c] ss:$16 sps:$4 sm:$0xff]   ;;  %v1754_v16 = vld [vmem:[%s2887_s1 + $0x84] ss:$16 sps:$4 sm:$0xff]   ;;  %v1760_v17 = vld [vmem:[%s2887_s1 + $0x80] ss:$16 sps:$4 sm:$0xff]  }
   0x7   :  { %487 = vmatpush1.bf16.msra.mxu0 %v1689_v5  ;;  %v1765_v18 = vld [vmem:[%s2887_s1 + $0x68] ss:$16 sps:$4 sm:$0xff]   ;;  %v1772_v19 = vld [vmem:[%s2887_s1 + $0x8c] ss:$16 sps:$4 sm:$0xff]   ;;  %v1778_v20 = vld [vmem:[%s2887_s1 + $0xa4] ss:$16 sps:$4 sm:$0xff]  }
   0x8   :  { %488 = vmatprep.subr.bf16.mxu0 %v1700_v7  ;;  %528 = vmatpush1.bf16.msra.mxu1 %v1712_v9  ;;  %v1784_v21 = vld [vmem:[%s2887_s1 + $0x88] ss:$16 sps:$4 sm:$0xff]   ;;  %v1791_v22 = vld [vmem:[%s2887_s1 + $0xa0] ss:$16 sps:$4 sm:$0xff]   ;;  %v1796_v23 = vld [vmem:[%s2887_s1 + $0xac] ss:$16 sps:$4 sm:$0xff]  }
   0x9   :  { %529 = vmatprep.subr.bf16.mxu1 %v1730_v12  ;;  %v1802_v24 = vld [vmem:[%s2887_s1 + $0xc4] ss:$16 sps:$4 sm:$0xff]   ;;  %v1808_v25 = vld [vmem:[%s2887_s1 + $0xc0] ss:$16 sps:$4 sm:$0xff]   ;;  %v1813_v26 = vld [vmem:[%s2887_s1 + $0xa8] ss:$16 sps:$4 sm:$0xff]  }
   0xa   :  { %v1820_v27 = vld [vmem:[%s2887_s1 + $0xcc] ss:$16 sps:$4 sm:$0xff]   ;;  %v1826_v28 = vld [vmem:[%s2887_s1 + $0xe4] ss:$16 sps:$4 sm:$0xff]   ;;  %v1832_v29 = vld [vmem:[%s2887_s1 + $0xc8] ss:$16 sps:$4 sm:$0xff]  }
   0xb   :  { %489 = vmatpush1.bf16.msra.mxu0 %v1719_v10  ;;  %v1839_v30 = vld [vmem:[%s2887_s1 + $0xe0] ss:$16 sps:$4 sm:$0xff]   ;;  %v1844_v31 = vld [vmem:[%s2887_s1 + $0xec] ss:$16 sps:$4 sm:$0xff]   ;;  %v1850_v32 = vld [vmem:[%s2887_s1 + $0x104] ss:$16 sps:$4 sm:$0xff]  }
   0xc   :  { %490 = vmatprep.subr.bf16.mxu0 %v1725_v11  ;;  %530 = vmatpush1.bf16.msra.mxu1 %v1736_v13  ;;  %v1856_v33 = vld [vmem:[%s2887_s1 + $0x100] ss:$16 sps:$4 sm:$0xff]   ;;  %v1861_v34 = vld [vmem:[%s2887_s1 + $0xe8] ss:$16 sps:$4 sm:$0xff]   ;;  %v1868_v35 = vld [vmem:[%s2887_s1 + $0x10c] ss:$16 sps:$4 sm:$0xff]  }
   0xd   :  { %531 = vmatprep.subr.bf16.mxu1 %v1748_v15  ;;  %v1874_v36 = vld [vmem:[%s2887_s1 + $0x124] ss:$16 sps:$4 sm:$0xff]   ;;  %v1880_v37 = vld [vmem:[%s2887_s1 + $0x108] ss:$16 sps:$4 sm:$0xff]   ;;  %v1887_v38 = vld [vmem:[%s2887_s1 + $0x120] ss:$16 sps:$4 sm:$0xff]  }
   0xe   :  { %2971 = vst [vmem:[#allocation4_spill] sm:$0xff] %v1887_v38  ;;  %v1892_v39 = vld [vmem:[%s2887_s1 + $0x12c] ss:$16 sps:$4 sm:$0xff]   ;;  %v1898_v40 = vld [vmem:[%s2887_s1 + $0x144] ss:$16 sps:$4 sm:$0xff]   ;;  %vm130_vm3 = vcmask 1044484  }
   0xf   :  { %491 = vmatpush1.bf16.msra.mxu0 %v1743_v14  ;;  %v1904_v41 = vld [vmem:[%s2887_s1 + $0x140] ss:$16 sps:$4 sm:$0xff]   ;;  %v1909_v42 = vld [vmem:[%s2887_s1 + $0x128] ss:$16 sps:$4 sm:$0xff]   ;;  %v1916_v43 = vld [vmem:[%s2887_s1 + $0x14c] ss:$16 sps:$4 sm:$0xff]  }
  0x10   :  { %492 = vmatprep.subr.bf16.mxu0 %v1754_v16  ;;  %532 = vmatpush1.bf16.msra.mxu1 %v1765_v18  ;;  %2972 = vst [vmem:[#allocation5_spill] sm:$0xff] %v1904_v41  ;;  %2973 = vst [vmem:[#allocation6_spill] sm:$0xff] %v1909_v42  ;;  %v1922_v44 = vld [vmem:[%s2887_s1 + $0x164] ss:$16 sps:$4 sm:$0xff]   ;;  %v1927_v45 = vld [vmem:[%s2887_s1 + $0x148] ss:$16 sps:$4 sm:$0xff]  }
  0x11   :  { %533 = vmatprep.subr.bf16.mxu1 %v1772_v19  ;;  %2974 = vst [vmem:[#allocation7_spill] sm:$0xff] %v1916_v43  ;;  %2975 = vst [vmem:[#allocation8_spill] sm:$0xff] %v1922_v44  ;;  %v1932_v46 = vld [vmem:[%s2887_s1 + $0x160] ss:$16 sps:$4 sm:$0xff]   ;;  %v1937_v47 = vld [vmem:[%s2887_s1 + $0x16c] ss:$16 sps:$4 sm:$0xff]  }
  0x12   :  { %2976 = vst [vmem:[#allocation9_spill] sm:$0xff] %v1927_v45  ;;  %2977 = vst [vmem:[#allocation10_spill] sm:$0xff] %v1932_v46  ;;  %v1943_v48 = vld [vmem:[%s2887_s1 + $0x184] ss:$16 sps:$4 sm:$0xff]   ;;  %vm133_vm4 = vcmask 1045509   ;;  %vm136_vm5 = vcmask 1046534  }
  0x13   :  { %493 = vmatpush1.bf16.msra.mxu0 %v1760_v17  ;;  %2978 = vst [vmem:[#allocation11_spill] sm:$0xff] %v1937_v47  ;;  %2979 = vst [vmem:[#allocation12_spill] sm:$0xff] %v1943_v48  ;;  %v1951_v49 = vld [vmem:[%s2887_s1 + $0x168] ss:$16 sps:$4 sm:$0xff]   ;;  %v1962_v52 = vld [vmem:[%s2887_s1 + $0x180] ss:$16 sps:$4 sm:$0xff]  }
  0x14   :  { %494 = vmatprep.subr.bf16.mxu0 %v1778_v20  ;;  %534 = vmatpush1.bf16.msra.mxu1 %v1784_v21  ;;  %2980 = vst [vmem:[#allocation13_spill] sm:$0xff] %v1951_v49  ;;  %v1492_v50 = vld [vmem:[%s2888_s0] ss:$0 sps:$4 sm:$0x11]   ;;  %2981 = vst [vmem:[#allocation14_spill] sm:$0xff] %v1962_v52  ;;  %vm139_vm6 = vcmask 1047559  }
  0x15   :  { %535 = vmatprep.subr.bf16.mxu1 %v1796_v23  ;;  %v1493_v51 = vld [vmem:[%s2888_s0 + $0x4] ss:$0 sps:$4 sm:$0x11]   ;;  %v1967_v53 = vld [vmem:[%s2887_s1 + $0x18c] ss:$16 sps:$4 sm:$0xff]   ;;  %v112_v58 = vunpack.c.l.b16 %v1492_v50 }
  0x16   :  { %2982 = vst [vmem:[#allocation15_spill] sm:$0xff] %v1967_v53  ;;  %v1494_v54 = vld [vmem:[%s2888_s0 + $0x8] ss:$0 sps:$4 sm:$0x11]   ;;  %v113_v59 = vunpack.c.l.b16 %v1493_v51  ;;  %v1994_v1 = vld [vmem:[%s2887_s1 + $0x1a4] ss:$16 sps:$4 sm:$0xff]  }
  0x17   :  { %495 = vmatpush1.bf16.msra.mxu0 %v1791_v22  ;;  %v1495_v55 = vld [vmem:[%s2888_s0 + $0xc] ss:$0 sps:$4 sm:$0x11]   ;;  %v1496_v56 = vld [vmem:[%s2888_s0 + $0x10] ss:$0 sps:$4 sm:$0x11]   ;;  %v114_v62 = vunpack.c.l.b16 %v1494_v54 }
  0x18   :  { %496 = vmatprep.subr.bf16.mxu0 %v1802_v24  ;;  %536 = vmatpush1.bf16.msra.mxu1 %v1813_v26  ;;  %v1497_v57 = vld [vmem:[%s2888_s0 + $0x14] ss:$0 sps:$4 sm:$0x11]   ;;  %v1498_v60 = vld [vmem:[%s2888_s0 + $0x18] ss:$0 sps:$4 sm:$0x11]   ;;  %v115_v63 = vunpack.c.l.b16 %v1495_v55  ;;  %v116_v50 = vunpack.c.l.b16 %v1496_v56 }
  0x19   :  { %537 = vmatprep.subr.bf16.mxu1 %v1820_v27  ;;  %v1499_v61 = vld [vmem:[%s2888_s0 + $0x1c] ss:$0 sps:$4 sm:$0x11]   ;;  %2983 = vst [vmem:[#allocation16_spill] sm:$0xff] %v1994_v1  ;;  %v117_v51 = vunpack.c.l.b16 %v1497_v57  ;;  %v2004_v54 = vld [vmem:[%s2887_s1 + $0x188] ss:$16 sps:$4 sm:$0xff]  }
  0x1a   :  { %2985 = vst [vmem:[#allocation18_spill] sm:$0xff] %v2004_v54  ;;  %v2009_v55 = vld [vmem:[%s2887_s1 + $0x1ac] ss:$16 sps:$4 sm:$0xff]   ;;  %v119_v56 = vunpack.c.l.b16 %v1499_v61  ;;  %v123_v57 = vrot.slane %v114_v62, 6 }
  0x1b   :  { %497 = vmatpush1.bf16.msra.mxu0 %v1808_v25  ;;  %2986 = vst [vmem:[#allocation19_spill] sm:$0xff] %v2009_v55 }
  0x1c   :  { %498 = vmatprep.subr.bf16.mxu0 %v1826_v28  ;;  %538 = vmatpush1.bf16.msra.mxu1 %v1832_v29  ;;  %v138_v62 = vrot.slane %v119_v56, 1 }
  0x1d   :  { %539 = vmatprep.subr.bf16.mxu1 %v1844_v31 }
  0x1f   :  { %499 = vmatpush1.bf16.msra.mxu0 %v1839_v30 }
  0x20   :  { %500 = vmatprep.subr.bf16.mxu0 %v1850_v32  ;;  %540 = vmatpush1.bf16.msra.mxu1 %v1861_v34 }
  0x21   :  { %541 = vmatprep.subr.bf16.mxu1 %v1868_v35 }
  0x23   :  { %501 = vmatpush1.bf16.msra.mxu0 %v1856_v33 }
  0x24   :  { %502 = vmatprep.subr.bf16.mxu0 %v1874_v36  ;;  %542 = vmatpush1.bf16.msra.mxu1 %v1880_v37 }
  0x25   :  { %543 = vmatprep.subr.bf16.mxu1 %v1892_v39 }
  0x27   :  { %503 = vmatpush1.bf16.msra.mxu0 %v1887_v38 }
  0x28   :  { %504 = vmatprep.subr.bf16.mxu0 %v1898_v40  ;;  %544 = vmatpush1.bf16.msra.mxu1 %v1909_v42 }
  0x29   :  { %545 = vmatprep.subr.bf16.mxu1 %v1916_v43  ;;  %v129_v43 = vrot.slane %v116_v50, 4 }
  0x2b   :  { %505 = vmatpush1.bf16.msra.mxu0 %v1904_v41  ;;  %v132_v41 = vrot.slane %v117_v51, 3 }
  0x2c   :  { %506 = vmatprep.subr.bf16.mxu0 %v1922_v44  ;;  %546 = vmatpush1.bf16.msra.mxu1 %v1927_v45  ;;  %v2015_v45 = vld [vmem:[%s2887_s1 + $0x1c4] ss:$16 sps:$4 sm:$0xff]  }
  0x2d   :  { %547 = vmatprep.subr.bf16.mxu1 %v1937_v47  ;;  %v120_v47 = vrot.slane %v113_v59, 7  ;;  %v126_v59 = vrot.slane %v115_v63, 5  ;;  %2987 = vst [vmem:[#allocation20_spill] sm:$0xff] %v2015_v45 }
  0x2f   :  { %507 = vmatpush1.bf16.msra.mxu0 %v1932_v46  ;;  %v1999_v46 = vld [vmem:[%s2887_s1 + $0x1a0] ss:$16 sps:$4 sm:$0xff]   ;;  %v122_v44 = vsel %vm121_vm0, %v120_v47, %v112_v58  ;;  %v585_v42 = vsel %vm124_vm1, %v120_v47, %v112_v58 }
  0x30   :  { %508 = vmatprep.subr.bf16.mxu0 %v1943_v48  ;;  %2984 = vst [vmem:[#allocation17_spill] sm:$0xff] %v1999_v46  ;;  %v118_v48 = vunpack.c.l.b16 %v1498_v60  ;;  %548 = vmatpush1.bf16.msra.mxu1 %v1951_v49  ;;  %v125_v60 = vsel %vm124_vm1, %v123_v57, %v122_v44  ;;  %v586_v63 = vsel %vm127_vm2, %v123_v57, %v585_v42  ;;  %v2027_v49 = vld [vmem:[%s2887_s1 + $0x1a8] ss:$16 sps:$4 sm:$0xff]   ;;  %v2034_v58 = vld [vmem:[%s2887_s1 + $0x1c0] ss:$16 sps:$4 sm:$0xff]  }
  0x31   :  { %549 = vmatprep.subr.bf16.mxu1 %v1967_v53  ;;  %2988 = vst [vmem:[#allocation21_spill] sm:$0xff] %v2027_v49  ;;  %v128_v50 = vsel %vm127_vm2, %v126_v59, %v125_v60  ;;  %v587_v47 = vsel %vm130_vm3, %v126_v59, %v586_v63  ;;  %2989 = vst [vmem:[#allocation22_spill] sm:$0xff] %v2034_v58  ;;  %v2039_v42 = vld [vmem:[%s2887_s1 + $0x1cc] ss:$16 sps:$4 sm:$0xff]   ;;  %v2053_v59 = vld [vmem:[%s2887_s1 + $0x1e4] ss:$16 sps:$4 sm:$0xff]  }
  0x32   :  { %v135_v61 = vrot.slane %v118_v48, 2  ;;  %2990 = vst [vmem:[#allocation23_spill] sm:$0xff] %v2039_v42  ;;  %v131_v44 = vsel %vm130_vm3, %v129_v43, %v128_v50  ;;  %v588_v48 = vsel %vm133_vm4, %v129_v43, %v587_v47  ;;  %2991 = vst [vmem:[#allocation24_spill] sm:$0xff] %v2053_v59  ;;  %v2069_v63 = vld [vmem:[%s2887_s1 + $0x1e0] ss:$16 sps:$4 sm:$0xff]  }
  0x33   :  { %509 = vmatpush1.bf16.msra.mxu0 %v1962_v52  ;;  %v134_v51 = vsel %vm133_vm4, %v132_v41, %v131_v44  ;;  %v589_v56 = vsel %vm136_vm5, %v132_v41, %v588_v48  ;;  %v2062_v41 = vld [vmem:[%s2887_s1 + $0x1c8] ss:$16 sps:$4 sm:$0xff]   ;;  %2993 = vst [vmem:[#allocation26_spill] sm:$0xff] %v2069_v63  ;;  %v2075_v50 = vld [vmem:[%s2887_s1 + $0x1ec] ss:$16 sps:$4 sm:$0xff]  }
  0x34   :  { %510 = vmatprep.subr.bf16.mxu0 %v1994_v1  ;;  %550 = vmatpush1.bf16.msra.mxu1 %v2004_v54  ;;  %v590_v57 = vsel %vm139_vm6, %v135_v61, %v589_v56  ;;  %v137_v43 = vsel %vm136_vm5, %v135_v61, %v134_v51  ;;  %2992 = vst [vmem:[#allocation25_spill] sm:$0xff] %v2062_v41  ;;  %2994 = vst [vmem:[#allocation27_spill] sm:$0xff] %v2075_v50  ;;  %v2082_v44 = vld [vmem:[%s2887_s1 + $0x1e8] ss:$16 sps:$4 sm:$0xff]   ;;  %v2999_v56 = vld [vmem:[#allocation8_spill] sm:$0xff] }
  0x35   :  { %551 = vmatprep.subr.bf16.mxu1 %v2009_v55  ;;  %v2056_v60 = vpack.c.b16 %v138_v62, %v590_v57  ;;  %v140_v61 = vsel %vm139_vm6, %v138_v62, %v137_v43  ;;  %2995 = vst [vmem:[#allocation28_spill] sm:$0xff] %v2082_v44  ;;  %v2996_v62 = vld [vmem:[#allocation6_spill] sm:$0xff]  ;;  %v2997_v48 = vld [vmem:[#allocation5_spill] sm:$0xff]  ;;  %v2998_v51 = vld [vmem:[#allocation7_spill] sm:$0xff] }
  0x36   :  { %v141_v47 = vpack.c.b16 %v140_v61, %v140_v61  ;;  %v3000_v57 = vld [vmem:[#allocation9_spill] sm:$0xff]  ;;  %v3001_v43 = vld [vmem:[#allocation10_spill] sm:$0xff]  ;;  %v3002_v61 = vld [vmem:[#allocation11_spill] sm:$0xff] }
  0x37   :  { %511 = vmatpush1.bf16.msra.mxu0 %v1999_v46 }
  0x38   :  { %512 = vmatprep.subr.bf16.mxu0 %v2015_v45  ;;  %552 = vmatpush1.bf16.msra.mxu1 %v2027_v49 }
  0x39   :  { %553 = vmatprep.subr.bf16.mxu1 %v2039_v42 }
  0x3b   :  { %513 = vmatpush1.bf16.msra.mxu0 %v2034_v58 }
  0x3c   :  { %514 = vmatprep.subr.bf16.mxu0 %v2053_v59  ;;  %554 = vmatpush1.bf16.msra.mxu1 %v2062_v41 }
  0x3d   :  { %555 = vmatprep.subr.bf16.mxu1 %v2075_v50 }
  0x3f   :  { %515 = vmatpush1.bf16.msra.mxu0 %v2069_v63 }
  0x40   :  { %615 = vmatprep.subr.bf16.mxu0 %v1667_v0  ;;  %556 = vmatpush1.bf16.msra.mxu1 %v2082_v44 }
  0x41   :  { %656 = vmatprep.subr.bf16.mxu1 %v1684_v4 }
  0x42   :  { %517 = vmatmul.mubr.bf16.vlgmr.msra.gmra.mrb[0].mxu0 %v141_v47 }
  0x43   :  { %616 = vmatpush1.bf16.msra.mxu0 %v1672_v2  ;;  %558 = vmatmul.mubr.bf16.vlgmr.msra.gmra.mrb[0].mxu1 %v141_v47  ;;  %v3003_v47 = vld [vmem:[#allocation12_spill] sm:$0xff] }
  0x44   :  { %617 = vmatprep.subr.bf16.mxu0 %v1678_v3  ;;  %657 = vmatpush1.bf16.msra.mxu1 %v1694_v6 }
  0x45   :  { %658 = vmatprep.subr.bf16.mxu1 %v1706_v8 }
  0x47   :  { %618 = vmatpush1.bf16.msra.mxu0 %v1689_v5 }
  0x48   :  { %619 = vmatprep.subr.bf16.mxu0 %v1700_v7  ;;  %659 = vmatpush1.bf16.msra.mxu1 %v1712_v9 }
  0x49   :  { %660 = vmatprep.subr.bf16.mxu1 %v1730_v12 }
  0x4b   :  { %620 = vmatpush1.bf16.msra.mxu0 %v1719_v10 }
  0x4c   :  { %621 = vmatprep.subr.bf16.mxu0 %v1725_v11  ;;  %661 = vmatpush1.bf16.msra.mxu1 %v1736_v13 }
  0x4d   :  { %662 = vmatprep.subr.bf16.mxu1 %v1748_v15 }
  0x4f   :  { %622 = vmatpush1.bf16.msra.mxu0 %v1743_v14 }
  0x50   :  { %623 = vmatprep.subr.bf16.mxu0 %v1754_v16  ;;  %663 = vmatpush1.bf16.msra.mxu1 %v1765_v18 }
  0x51   :  { %664 = vmatprep.subr.bf16.mxu1 %v1772_v19 }
  0x53   :  { %624 = vmatpush1.bf16.msra.mxu0 %v1760_v17 }
  0x54   :  { %625 = vmatprep.subr.bf16.mxu0 %v1778_v20  ;;  %665 = vmatpush1.bf16.msra.mxu1 %v1784_v21 }
  0x55   :  { %666 = vmatprep.subr.bf16.mxu1 %v1796_v23 }
  0x57   :  { %626 = vmatpush1.bf16.msra.mxu0 %v1791_v22 }
  0x58   :  { %627 = vmatprep.subr.bf16.mxu0 %v1802_v24  ;;  %667 = vmatpush1.bf16.msra.mxu1 %v1813_v26 }
  0x59   :  { %668 = vmatprep.subr.bf16.mxu1 %v1820_v27 }
  0x5b   :  { %628 = vmatpush1.bf16.msra.mxu0 %v1808_v25 }
  0x5c   :  { %629 = vmatprep.subr.bf16.mxu0 %v1826_v28  ;;  %669 = vmatpush1.bf16.msra.mxu1 %v1832_v29 }
  0x5d   :  { %670 = vmatprep.subr.bf16.mxu1 %v1844_v31 }
  0x5f   :  { %630 = vmatpush1.bf16.msra.mxu0 %v1839_v30 }
  0x60   :  { %631 = vmatprep.subr.bf16.mxu0 %v1850_v32  ;;  %671 = vmatpush1.bf16.msra.mxu1 %v1861_v34 }
  0x61   :  { %672 = vmatprep.subr.bf16.mxu1 %v1868_v35 }
  0x63   :  { %632 = vmatpush1.bf16.msra.mxu0 %v1856_v33 }
  0x64   :  { %633 = vmatprep.subr.bf16.mxu0 %v1874_v36  ;;  %673 = vmatpush1.bf16.msra.mxu1 %v1880_v37 }
  0x65   :  { %674 = vmatprep.subr.bf16.mxu1 %v1892_v39 }
  0x67   :  { %634 = vmatpush1.bf16.msra.mxu0 %v1887_v38  ;;  %v3004_v38 = vld [vmem:[#allocation13_spill] sm:$0xff] }
  0x68   :  { %635 = vmatprep.subr.bf16.mxu0 %v1898_v40  ;;  %675 = vmatpush1.bf16.msra.mxu1 %v2996_v62 }
  0x69   :  { %676 = vmatprep.subr.bf16.mxu1 %v2998_v51 }
  0x6b   :  { %636 = vmatpush1.bf16.msra.mxu0 %v2997_v48 }
  0x6c   :  { %637 = vmatprep.subr.bf16.mxu0 %v2999_v56  ;;  %677 = vmatpush1.bf16.msra.mxu1 %v3000_v57 }
  0x6d   :  { %678 = vmatprep.subr.bf16.mxu1 %v3002_v61 }
  0x6f   :  { %638 = vmatpush1.bf16.msra.mxu0 %v3001_v43 }
  0x70   :  { %639 = vmatprep.subr.bf16.mxu0 %v3003_v47  ;;  %679 = vmatpush1.bf16.msra.mxu1 %v3004_v38 }
  0x71   :  { %680 = vmatprep.subr.bf16.mxu1 %v1967_v53 }
  0x73   :  { %640 = vmatpush1.bf16.msra.mxu0 %v1962_v52 }
  0x74   :  { %641 = vmatprep.subr.bf16.mxu0 %v1994_v1  ;;  %681 = vmatpush1.bf16.msra.mxu1 %v2004_v54 }
  0x75   :  { %682 = vmatprep.subr.bf16.mxu1 %v2009_v55 }
  0x77   :  { %642 = vmatpush1.bf16.msra.mxu0 %v1999_v46 }
  0x78   :  { %643 = vmatprep.subr.bf16.mxu0 %v2015_v45  ;;  %683 = vmatpush1.bf16.msra.mxu1 %v2027_v49  ;;  %v144_v45 = vlaneseq }
  0x79   :  { %684 = vmatprep.subr.bf16.mxu1 %v2039_v42 }
  0x7a   :  { %v145_v49 = vshrl.u32 %v144_v45, 7 }
  0x7b   :  { %644 = vmatpush1.bf16.msra.mxu0 %v2034_v58  ;;  %v79_v58 = vld [vmem:[%s2889_s2] sm:$0xf] }
  0x7c   :  { %645 = vmatprep.subr.bf16.mxu0 %v2053_v59  ;;  %685 = vmatpush1.bf16.msra.mxu1 %v2062_v41  ;;  %v146_v46 = vsub.s32 0, %v145_v49  ;;  %v150_v59 = vsub.s32 1, %v145_v49  ;;  %v154_v42 = vsub.s32 2, %v145_v49 }
  0x7d   :  { %686 = vmatprep.subr.bf16.mxu1 %v2075_v50 }
  0x7e   :  { %v2156_v41 = vrot.slane %v79_v58, %v146_v46  ;;  %v2160_v55 = vrot.slane %v79_v58, %v154_v42 }
  0x7f   :  { %646 = vmatpush1.bf16.msra.mxu0 %v2069_v63  ;;  %v2158_v63 = vrot.slane %v79_v58, %v150_v59 }
  0x80   :  { %776 = vmatprep.subr.bf16.mxu0 %v1667_v0  ;;  %687 = vmatpush1.bf16.msra.mxu1 %v2082_v44  ;;  %3005 = vst [vmem:[#allocation6_spill] sm:$0xff] %v2156_v41  ;;  %3007 = vst [vmem:[#allocation7_spill] sm:$0xff] %v2160_v55 }
  0x81   :  { %817 = vmatprep.subr.bf16.mxu1 %v1684_v4  ;;  %3006 = vst [vmem:[#allocation5_spill] sm:$0xff] %v2158_v63  ;;  %v158_v4 = vsub.s32 3, %v145_v49 }
  0x83   :  { %v2165_v59 = vrot.slane %v79_v58, %v158_v4 }
  0x85   :  { %3008 = vst [vmem:[#allocation8_spill] sm:$0xff] %v2165_v59 }
 0x115   :  { %v518_v50 = vpop.f32.mrb[0].mxu0 }
 0x116   :  { %v519_v0 = vadd.f32 %v518_v50, %v2156_v41  ;;  %v520_v44 = vpop.f32.mrb[1].mxu0  ;;  %v559_v53 = vpop.f32.mrb[0].mxu1 }
 0x117   :  { %v521_v45 = vadd.f32 %v520_v44, %v2158_v63  ;;  %v522_v1 = vpop.f32.mrb[2].mxu0  ;;  %v560_v38 = vadd.f32 %v559_v53, %v2160_v55  ;;  %v561_v46 = vpop.f32.mrb[1].mxu1 }
 0x118   :  { %v566_v54 = vmul.f32 0.5, %v519_v0  ;;  %v523_v52 = vpop.f32.mrb[3].mxu0  ;;  %v563_v43 = vpop.f32.mrb[2].mxu1  ;;  %v562_v50 = vadd.f32 %v561_v46, %v2165_v59 }
 0x119   :  { %v570_v47 = vmul.f32 0.5, %v521_v45  ;;  %v564_v42 = vpop.f32.mrb[3].mxu1 }
 0x11a   :  { %1519 = vtanh.f32 %v566_v54  ;;  %v575_v49 = vmul.f32 0.5, %v562_v50 }
 0x11b   :  { %1521 = vtanh.f32 %v570_v47 }
 0x11c   :  { %1523 = vtanh.f32 %v560_v38 }
 0x11d   :  { %1525 = vtanh.f32 %v575_v49 }
 0x124   :  { %v1520_v41 = vpop.eup %1519 }
 0x125   :  { %v1522_v44 = vpop.eup %1521  ;;  %v568_v1 = vadd.f32 1.0, %v1520_v41  ;;  %v602_v41 = vshll.u32 %v2056_v60, 16 }
 0x126   :  { %v1524_v0 = vpop.eup %1523  ;;  %v572_v52 = vadd.f32 1.0, %v1522_v44 }
 0x127   :  { %v569_v45 = vmul.f32 0.5, %v568_v1  ;;  %v1526_v4 = vpop.eup %1525  ;;  %v600_v1 = vshrl.u32 %v2056_v60, 16  ;;  %v3017_v60 = vld [vmem:[#allocation19_spill] sm:$0xff] }
 0x128   :  { %v573_v63 = vmul.f32 0.5, %v572_v52  ;;  %v577_v58 = vadd.f32 1.0, %v1526_v4  ;;  %v3018_v4 = vld [vmem:[#allocation17_spill] sm:$0xff] }
 0x129   :  { %v580_v53 = vmul.f32 %v1524_v0, %v569_v45  ;;  %v604_v0 = vrot.slane %v602_v41, 1  ;;  %v3025_v41 = vld [vmem:[#allocation27_spill] sm:$0xff] }
 0x12a   :  { %v579_v55 = vmul.f32 0.0, %v573_v63  ;;  %v578_v38 = vmul.f32 0.5, %v577_v58  ;;  %v3019_v58 = vld [vmem:[#allocation21_spill] sm:$0xff] }
 0x12b   :  { %v605_v45 = vor.u32 %v604_v0, %v600_v1  ;;  %v3029_v1 = vld [vmem:[#allocation3_spill] sm:$0xff] }
 0x12c   :  { %v2168_v54 = vadd.f32 %v580_v53, %v579_v55 }
 0x12e   :  { %1527 = vtanh.f32 %v2168_v54 }
 0x138   :  { %v1528_v43 = vpop.eup %1527 }
 0x139   :  { %v583_v47 = vmul.f32 %v1528_v43, %v578_v38  ;;  %v3020_v38 = vld [vmem:[#allocation20_spill] sm:$0xff]  ;;  %v3021_v43 = vld [vmem:[#allocation23_spill] sm:$0xff] }
 0x13b   :  { %v584_v46 = vpack.c.bf16 %v583_v47, %v583_v47  ;;  %v3022_v47 = vld [vmem:[#allocation22_spill] sm:$0xff] }
 0x13d   :  { %v593_v42 = vshrl.u32 %v584_v46, 16  ;;  %v596_v44 = vshll.u32 %v584_v46, 16  ;;  %v3023_v46 = vld [vmem:[#allocation25_spill] sm:$0xff] }
 0x13f   :  { %v595_v50 = vrot.slane %v593_v42, 7  ;;  %v3024_v42 = vld [vmem:[#allocation24_spill] sm:$0xff] }
 0x141   :  { %v598_v49 = vor.u32 %v596_v44, %v595_v50  ;;  %v3026_v50 = vld [vmem:[#allocation26_spill] sm:$0xff]  ;;  %v3027_v44 = vld [vmem:[#allocation28_spill] sm:$0xff] }
 0x143   :  { %v609_v63 = vshll.u32 %v598_v49, 16  ;;  %v607_v55 = vshrl.u32 %v598_v49, 16  ;;  %v3028_v49 = vld [vmem:[#allocation2_spill] sm:$0xff] }
 0x145   :  { %v611_v52 = vrot.slane %v609_v63, 1 }
 0x147   :  { %v612_v53 = vor.u32 %v611_v52, %v607_v55  ;;  %v3030_v55 = vld [vmem:[#allocation6_spill] sm:$0xff] }
 0x149   :  { %647 = vmatprep.mubr.bf16.mxu0 %v612_v53  ;;  %688 = vmatprep.mubr.bf16.mxu1 %v612_v53 }
 0x14a   :  { %648 = vmatmul.mubr.bf16.vlgmr.msra.gmra.mrb[4].mxu0 %v605_v45  ;;  %689 = vmatmul.mubr.bf16.vlgmr.msra.gmra.mrb[4].mxu1 %v605_v45 }
 0x14b   :  { %777 = vmatpush1.bf16.msra.mxu0 %v1672_v2  ;;  %818 = vmatpush1.bf16.msra.mxu1 %v1694_v6  ;;  %v3009_v2 = vld [vmem:[#allocation4_spill] sm:$0xff] }
 0x14c   :  { %778 = vmatprep.subr.bf16.mxu0 %v1678_v3  ;;  %819 = vmatprep.subr.bf16.mxu1 %v1706_v8  ;;  %v3010_v3 = vld [vmem:[#allocation10_spill] sm:$0xff]  ;;  %v3012_v6 = vld [vmem:[#allocation12_spill] sm:$0xff] }
 0x14d   :  { %v3014_v8 = vld [vmem:[#allocation14_spill] sm:$0xff] }
 0x14f   :  { %779 = vmatpush1.bf16.msra.mxu0 %v1689_v5  ;;  %820 = vmatpush1.bf16.msra.mxu1 %v1712_v9  ;;  %v3011_v5 = vld [vmem:[#allocation13_spill] sm:$0xff]  ;;  %v3015_v9 = vld [vmem:[#allocation18_spill] sm:$0xff] }
 0x150   :  { %780 = vmatprep.subr.bf16.mxu0 %v1700_v7  ;;  %821 = vmatprep.subr.bf16.mxu1 %v1730_v12  ;;  %v3013_v7 = vld [vmem:[#allocation15_spill] sm:$0xff] }
 0x153   :  { %781 = vmatpush1.bf16.msra.mxu0 %v1719_v10  ;;  %822 = vmatpush1.bf16.msra.mxu1 %v1736_v13  ;;  %v3016_v10 = vld [vmem:[#allocation16_spill] sm:$0xff] }
 0x154   :  { %782 = vmatprep.subr.bf16.mxu0 %v1725_v11  ;;  %823 = vmatprep.subr.bf16.mxu1 %v1748_v15 }
 0x157   :  { %783 = vmatpush1.bf16.msra.mxu0 %v1743_v14  ;;  %824 = vmatpush1.bf16.msra.mxu1 %v1765_v18 }
 0x158   :  { %784 = vmatprep.subr.bf16.mxu0 %v1754_v16  ;;  %825 = vmatprep.subr.bf16.mxu1 %v1772_v19 }
 0x15b   :  { %785 = vmatpush1.bf16.msra.mxu0 %v1760_v17  ;;  %826 = vmatpush1.bf16.msra.mxu1 %v1784_v21 }
 0x15c   :  { %786 = vmatprep.subr.bf16.mxu0 %v1778_v20  ;;  %827 = vmatprep.subr.bf16.mxu1 %v1796_v23 }
 0x15f   :  { %787 = vmatpush1.bf16.msra.mxu0 %v1791_v22  ;;  %828 = vmatpush1.bf16.msra.mxu1 %v1813_v26 }
 0x160   :  { %788 = vmatprep.subr.bf16.mxu0 %v1802_v24  ;;  %829 = vmatprep.subr.bf16.mxu1 %v1820_v27 }
 0x163   :  { %789 = vmatpush1.bf16.msra.mxu0 %v1808_v25  ;;  %830 = vmatpush1.bf16.msra.mxu1 %v1832_v29 }
 0x164   :  { %790 = vmatprep.subr.bf16.mxu0 %v1826_v28  ;;  %831 = vmatprep.subr.bf16.mxu1 %v1844_v31 }
 0x167   :  { %791 = vmatpush1.bf16.msra.mxu0 %v1839_v30  ;;  %832 = vmatpush1.bf16.msra.mxu1 %v1861_v34 }
 0x168   :  { %792 = vmatprep.subr.bf16.mxu0 %v1850_v32  ;;  %833 = vmatprep.subr.bf16.mxu1 %v1868_v35 }
 0x16b   :  { %793 = vmatpush1.bf16.msra.mxu0 %v1856_v33  ;;  %834 = vmatpush1.bf16.msra.mxu1 %v1880_v37 }
 0x16c   :  { %794 = vmatprep.subr.bf16.mxu0 %v1874_v36  ;;  %835 = vmatprep.subr.bf16.mxu1 %v1892_v39 }
 0x16f   :  { %795 = vmatpush1.bf16.msra.mxu0 %v3009_v2  ;;  %836 = vmatpush1.bf16.msra.mxu1 %v2996_v62 }
 0x170   :  { %796 = vmatprep.subr.bf16.mxu0 %v1898_v40  ;;  %837 = vmatprep.subr.bf16.mxu1 %v2998_v51 }
 0x173   :  { %797 = vmatpush1.bf16.msra.mxu0 %v2997_v48  ;;  %838 = vmatpush1.bf16.msra.mxu1 %v3000_v57 }
 0x174   :  { %798 = vmatprep.subr.bf16.mxu0 %v2999_v56  ;;  %839 = vmatprep.subr.bf16.mxu1 %v3002_v61 }
 0x177   :  { %799 = vmatpush1.bf16.msra.mxu0 %v3010_v3  ;;  %840 = vmatpush1.bf16.msra.mxu1 %v3011_v5 }
 0x178   :  { %800 = vmatprep.subr.bf16.mxu0 %v3012_v6  ;;  %841 = vmatprep.subr.bf16.mxu1 %v3013_v7 }
 0x17b   :  { %801 = vmatpush1.bf16.msra.mxu0 %v3014_v8  ;;  %842 = vmatpush1.bf16.msra.mxu1 %v3015_v9 }
 0x17c   :  { %802 = vmatprep.subr.bf16.mxu0 %v3016_v10  ;;  %843 = vmatprep.subr.bf16.mxu1 %v3017_v60 }
 0x17f   :  { %803 = vmatpush1.bf16.msra.mxu0 %v3018_v4  ;;  %844 = vmatpush1.bf16.msra.mxu1 %v3019_v58  ;;  %v3032_v58 = vld [vmem:[#allocation7_spill] sm:$0xff] }
 0x180   :  { %804 = vmatprep.subr.bf16.mxu0 %v3020_v38  ;;  %845 = vmatprep.subr.bf16.mxu1 %v3021_v43 }
 0x183   :  { %805 = vmatpush1.bf16.msra.mxu0 %v3022_v47  ;;  %846 = vmatpush1.bf16.msra.mxu1 %v3023_v46  ;;  %v3031_v47 = vld [vmem:[#allocation5_spill] sm:$0xff] }
 0x184   :  { %806 = vmatprep.subr.bf16.mxu0 %v3024_v42  ;;  %847 = vmatprep.subr.bf16.mxu1 %v3025_v41 }
 0x187   :  { %807 = vmatpush1.bf16.msra.mxu0 %v3026_v50  ;;  %848 = vmatpush1.bf16.msra.mxu1 %v3027_v44 }
 0x188   :  { %910 = vmatprep.subr.bf16.mxu0 %v3028_v49  ;;  %951 = vmatprep.subr.bf16.mxu1 %v3029_v1  ;;  %v1504_v1 = vld [vmem:[%s2888_s0 + $0x4] ss:$0 sps:$4 sm:$0x22]  }
 0x21d   :  { %v649_v0 = vpop.f32.mrb[4].mxu0  ;;  %v690_v63 = vpop.f32.mrb[4].mxu1 }
 0x21e   :  { %v650_v52 = vadd.f32 %v649_v0, %v3030_v55  ;;  %v651_v45 = vpop.f32.mrb[5].mxu0  ;;  %v692_v53 = vpop.f32.mrb[5].mxu1  ;;  %v691_v50 = vadd.f32 %v690_v63, %v3032_v58 }
 0x21f   :  { %v652_v46 = vadd.f32 %v651_v45, %v3031_v47  ;;  %v653_v43 = vpop.f32.mrb[6].mxu0  ;;  %v694_v42 = vpop.f32.mrb[6].mxu1  ;;  %v693_v49 = vadd.f32 %v692_v53, %v2165_v59 }
 0x220   :  { %v697_v38 = vmul.f32 0.5, %v650_v52  ;;  %v654_v41 = vpop.f32.mrb[7].mxu0  ;;  %v695_v4 = vpop.f32.mrb[7].mxu1  ;;  %v1505_v43 = vld [vmem:[%s2888_s0 + $0x8] ss:$0 sps:$4 sm:$0x22]  }
 0x221   :  { %v701_v44 = vmul.f32 0.5, %v652_v46  ;;  %v706_v0 = vmul.f32 0.5, %v693_v49  ;;  %v2250_v42 = vld [vmem:[%s2888_s0] ss:$0 sps:$4 sm:$0x22]   ;;  %v749_v4 = vunpack.c.l.b16 %v1504_v1  ;;  %v750_v52 = vunpack.c.l.b16 %v1505_v43 }
 0x222   :  { %1529 = vtanh.f32 %v697_v38  ;;  %3033 = vst [vmem:[#allocation9_spill] sm:$0xff] %v2250_v42  ;;  %v2952_v53 = vunpack.c.l.b16 %v2250_v42  ;;  %v1507_v1 = vld [vmem:[%s2888_s0 + $0x10] ss:$0 sps:$4 sm:$0x22]  }
 0x223   :  { %1531 = vtanh.f32 %v701_v44  ;;  %v2256_v49 = vrot.slane %v749_v4, 7  ;;  %v1509_v43 = vld [vmem:[%s2888_s0 + $0x18] ss:$0 sps:$4 sm:$0x22]  }
 0x224   :  { %1533 = vtanh.f32 %v691_v50  ;;  %v1506_v50 = vld [vmem:[%s2888_s0 + $0xc] ss:$0 sps:$4 sm:$0x22]   ;;  %v1510_v4 = vld [vmem:[%s2888_s0 + $0x1c] ss:$0 sps:$4 sm:$0x22]  }
 0x225   :  { %1535 = vtanh.f32 %v706_v0  ;;  %v2265_v0 = vrot.slane %v750_v52, 6  ;;  %v754_v52 = vunpack.c.l.b16 %v1509_v43 }
 0x22c   :  { %v1530_v38 = vpop.eup %1529 }
 0x22d   :  { %v1532_v46 = vpop.eup %1531  ;;  %v699_v41 = vadd.f32 1.0, %v1530_v38  ;;  %v751_v38 = vunpack.c.l.b16 %v1506_v50 }
 0x22e   :  { %v1534_v44 = vpop.eup %1533  ;;  %v703_v63 = vadd.f32 1.0, %v1532_v46  ;;  %v1508_v46 = vld [vmem:[%s2888_s0 + $0x14] ss:$0 sps:$4 sm:$0x22]  }
 0x22f   :  { %v700_v45 = vmul.f32 0.5, %v699_v41  ;;  %v757_v41 = vsel %vm127_vm2, %v2256_v49, %v2952_v53  ;;  %v2279_v50 = vrot.slane %v751_v38, 5  ;;  %v1536_v55 = vpop.eup %1535 }
 0x230   :  { %v704_v59 = vmul.f32 0.5, %v703_v63  ;;  %v753_v63 = vunpack.c.l.b16 %v1508_v46  ;;  %v708_v53 = vadd.f32 1.0, %v1536_v55 }
 0x231   :  { %v711_v58 = vmul.f32 %v1534_v44, %v700_v45  ;;  %3034 = vst [vmem:[#allocation11_spill] sm:$0xff] %v2279_v50  ;;  %v759_v44 = vsel %vm130_vm3, %v2265_v0, %v757_v41  ;;  %v755_v45 = vunpack.c.l.b16 %v1510_v4 }
 0x232   :  { %v710_v47 = vmul.f32 %v704_v59, %v2168_v54  ;;  %v752_v54 = vunpack.c.l.b16 %v1507_v1  ;;  %v761_v42 = vsel %vm133_vm4, %v2279_v50, %v759_v44  ;;  %v709_v41 = vmul.f32 0.5, %v708_v53  ;;  %v2310_v53 = vld [vmem:[%s2887_s1 + $0x8] ss:$16 sps:$4 sm:$0xff]  }
 0x233   :  { %v2292_v1 = vrot.slane %v755_v45, 1  ;;  %v2322_v45 = vld [vmem:[%s2887_s1 + $0x2c] ss:$16 sps:$4 sm:$0xff]  }
 0x234   :  { %v2277_v59 = vadd.f32 %v711_v58, %v710_v47  ;;  %v2284_v60 = vrot.slane %v752_v54, 4  ;;  %v2288_v58 = vrot.slane %v753_v63, 3  ;;  %v2290_v47 = vrot.slane %v754_v52, 2 }
 0x236   :  { %1537 = vtanh.f32 %v2277_v59  ;;  %v763_v38 = vsel %vm136_vm5, %v2284_v60, %v761_v42  ;;  %v768_v43 = vsel %vm121_vm0, %v2292_v1, %v2290_v47  ;;  %v2304_v42 = vld [vmem:[%s2887_s1] ss:$16 sps:$4 sm:$0xff]  }
 0x237   :  { %v765_v46 = vsel %vm139_vm6, %v2288_v58, %v763_v38  ;;  %v2328_v38 = vld [vmem:[%s2887_s1 + $0x20] ss:$16 sps:$4 sm:$0xff]  }
 0x238   :  { %v769_v55 = vpack.c.b16 %v768_v43, %v765_v46  ;;  %v2340_v46 = vld [vmem:[%s2887_s1 + $0x44] ss:$16 sps:$4 sm:$0xff]   ;;  %v2347_v43 = vld [vmem:[%s2887_s1 + $0x40] ss:$16 sps:$4 sm:$0xff]  }
 0x23a   :  { %v772_v52 = vrot.slane %v769_v55, 1 }
 0x240   :  { %v1538_v4 = vpop.eup %1537 }
 0x241   :  { %v714_v54 = vmul.f32 %v1538_v4, %v709_v41  ;;  %v2334_v41 = vld [vmem:[%s2887_s1 + $0x28] ss:$16 sps:$4 sm:$0xff]  }
 0x242   :  { %v3050_v4 = vld [vmem:[#allocation9_spill] sm:$0xff] }
 0x243   :  { %v723_v44 = vpack.c.bf16 %v714_v54, %v714_v54  ;;  %v3051_v54 = vunpack.c.l.b16 %v3050_v4  ;;  %v2491_v4 = vld [vmem:[%s2887_s1 + $0x8c] ss:$16 sps:$4 sm:$0xff]  }
 0x245   :  { %v771_v63 = vrot.slane %v723_v44, 7  ;;  %v877_v55 = vsel %vm130_vm3, %v2256_v49, %v3051_v54  ;;  %v2497_v54 = vld [vmem:[%s2887_s1 + $0x80] ss:$16 sps:$4 sm:$0xff]  }
 0x247   :  { %v773_v50 = vrot.slane %v771_v63, 1  ;;  %v878_v63 = vsel %vm133_vm4, %v2265_v0, %v877_v55  ;;  %v2503_v55 = vld [vmem:[%s2887_s1 + $0x88] ss:$16 sps:$4 sm:$0xff]  }
 0x249   :  { %808 = vmatprep.mubr.bf16.mxu0 %v773_v50  ;;  %849 = vmatprep.mubr.bf16.mxu1 %v773_v50  ;;  %v2316_v50 = vld [vmem:[%s2887_s1 + $0x24] ss:$16 sps:$4 sm:$0xff]  }
 0x24a   :  { %809 = vmatmul.mubr.bf16.vlgmr.msra.gmra.mrb[8].mxu0 %v772_v52  ;;  %850 = vmatmul.mubr.bf16.vlgmr.msra.gmra.mrb[8].mxu1 %v772_v52 }
 0x24b   :  { %911 = vmatpush1.bf16.msra.mxu0 %v2304_v42  ;;  %952 = vmatpush1.bf16.msra.mxu1 %v2310_v53 }
 0x24c   :  { %912 = vmatprep.subr.bf16.mxu0 %v2316_v50  ;;  %953 = vmatprep.subr.bf16.mxu1 %v2322_v45 }
 0x24f   :  { %913 = vmatpush1.bf16.msra.mxu0 %v2328_v38  ;;  %954 = vmatpush1.bf16.msra.mxu1 %v2334_v41 }
 0x250   :  { %914 = vmatprep.subr.bf16.mxu0 %v2340_v46  ;;  %955 = vmatprep.subr.bf16.mxu1 %v1730_v12  ;;  %v3036_v12 = vld [vmem:[#allocation17_spill] sm:$0xff] }
 0x253   :  { %915 = vmatpush1.bf16.msra.mxu0 %v2347_v43  ;;  %956 = vmatpush1.bf16.msra.mxu1 %v1736_v13  ;;  %v3037_v13 = vld [vmem:[#allocation21_spill] sm:$0xff] }
 0x254   :  { %916 = vmatprep.subr.bf16.mxu0 %v1725_v11  ;;  %957 = vmatprep.subr.bf16.mxu1 %v1748_v15  ;;  %v3035_v11 = vld [vmem:[#allocation19_spill] sm:$0xff] }
 0x255   :  { %v3039_v15 = vld [vmem:[#allocation23_spill] sm:$0xff] }
 0x257   :  { %917 = vmatpush1.bf16.msra.mxu0 %v1743_v14  ;;  %958 = vmatpush1.bf16.msra.mxu1 %v1765_v18  ;;  %v3038_v14 = vld [vmem:[#allocation20_spill] sm:$0xff] }
 0x258   :  { %918 = vmatprep.subr.bf16.mxu0 %v1754_v16  ;;  %959 = vmatprep.subr.bf16.mxu1 %v1772_v19  ;;  %v3040_v16 = vld [vmem:[#allocation22_spill] sm:$0xff]  ;;  %v3042_v18 = vld [vmem:[#allocation24_spill] sm:$0xff]  ;;  %v3043_v19 = vld [vmem:[#allocation27_spill] sm:$0xff] }
 0x25b   :  { %919 = vmatpush1.bf16.msra.mxu0 %v1760_v17  ;;  %960 = vmatpush1.bf16.msra.mxu1 %v1784_v21  ;;  %v3041_v17 = vld [vmem:[#allocation25_spill] sm:$0xff]  ;;  %v3045_v21 = vld [vmem:[#allocation28_spill] sm:$0xff] }
 0x25c   :  { %920 = vmatprep.subr.bf16.mxu0 %v1778_v20  ;;  %961 = vmatprep.subr.bf16.mxu1 %v1796_v23  ;;  %v3044_v20 = vld [vmem:[#allocation26_spill] sm:$0xff]  ;;  %v2412_v23 = vld [vmem:[%s2887_s1 + $0xc] ss:$16 sps:$4 sm:$0xff]  }
 0x25f   :  { %921 = vmatpush1.bf16.msra.mxu0 %v1791_v22  ;;  %962 = vmatpush1.bf16.msra.mxu1 %v1813_v26  ;;  %v2406_v22 = vld [vmem:[%s2887_s1 + $0x4] ss:$16 sps:$4 sm:$0xff]  }
 0x260   :  { %922 = vmatprep.subr.bf16.mxu0 %v1802_v24  ;;  %963 = vmatprep.subr.bf16.mxu1 %v1820_v27  ;;  %v3046_v26 = vld [vmem:[#allocation6_spill] sm:$0xff] }
 0x263   :  { %923 = vmatpush1.bf16.msra.mxu0 %v1808_v25  ;;  %964 = vmatpush1.bf16.msra.mxu1 %v1832_v29 }
 0x264   :  { %924 = vmatprep.subr.bf16.mxu0 %v1826_v28  ;;  %965 = vmatprep.subr.bf16.mxu1 %v1844_v31 }
 0x267   :  { %925 = vmatpush1.bf16.msra.mxu0 %v1839_v30  ;;  %966 = vmatpush1.bf16.msra.mxu1 %v1861_v34  ;;  %v3047_v30 = vld [vmem:[#allocation5_spill] sm:$0xff] }
 0x268   :  { %926 = vmatprep.subr.bf16.mxu0 %v1850_v32  ;;  %967 = vmatprep.subr.bf16.mxu1 %v1868_v35 }
 0x26b   :  { %927 = vmatpush1.bf16.msra.mxu0 %v1856_v33  ;;  %968 = vmatpush1.bf16.msra.mxu1 %v1880_v37 }
 0x26c   :  { %928 = vmatprep.subr.bf16.mxu0 %v1874_v36  ;;  %969 = vmatprep.subr.bf16.mxu1 %v1892_v39  ;;  %v3048_v36 = vld [vmem:[#allocation7_spill] sm:$0xff] }
 0x26f   :  { %929 = vmatpush1.bf16.msra.mxu0 %v3009_v2  ;;  %970 = vmatpush1.bf16.msra.mxu1 %v2996_v62  ;;  %v3049_v62 = vld [vmem:[#allocation8_spill] sm:$0xff] }
 0x270   :  { %930 = vmatprep.subr.bf16.mxu0 %v1898_v40  ;;  %971 = vmatprep.subr.bf16.mxu1 %v2998_v51 }
 0x273   :  { %931 = vmatpush1.bf16.msra.mxu0 %v2997_v48  ;;  %972 = vmatpush1.bf16.msra.mxu1 %v3000_v57 }
 0x274   :  { %932 = vmatprep.subr.bf16.mxu0 %v2999_v56  ;;  %973 = vmatprep.subr.bf16.mxu1 %v3002_v61 }
 0x277   :  { %933 = vmatpush1.bf16.msra.mxu0 %v3010_v3  ;;  %974 = vmatpush1.bf16.msra.mxu1 %v3011_v5 }
 0x278   :  { %934 = vmatprep.subr.bf16.mxu0 %v3012_v6  ;;  %975 = vmatprep.subr.bf16.mxu1 %v3013_v7 }
 0x27b   :  { %935 = vmatpush1.bf16.msra.mxu0 %v3014_v8  ;;  %976 = vmatpush1.bf16.msra.mxu1 %v3015_v9 }
 0x27c   :  { %936 = vmatprep.subr.bf16.mxu0 %v3016_v10  ;;  %977 = vmatprep.subr.bf16.mxu1 %v3035_v11 }
 0x27f   :  { %937 = vmatpush1.bf16.msra.mxu0 %v3036_v12  ;;  %978 = vmatpush1.bf16.msra.mxu1 %v3037_v13  ;;  %v3052_v12 = vld [vmem:[#allocation11_spill] sm:$0xff] }
 0x280   :  { %938 = vmatprep.subr.bf16.mxu0 %v3038_v14  ;;  %979 = vmatprep.subr.bf16.mxu1 %v3039_v15 }
 0x283   :  { %939 = vmatpush1.bf16.msra.mxu0 %v3040_v16  ;;  %980 = vmatpush1.bf16.msra.mxu1 %v3041_v17 }
 0x284   :  { %940 = vmatprep.subr.bf16.mxu0 %v3042_v18  ;;  %981 = vmatprep.subr.bf16.mxu1 %v3043_v19 }
 0x287   :  { %941 = vmatpush1.bf16.msra.mxu0 %v3044_v20  ;;  %982 = vmatpush1.bf16.msra.mxu1 %v3045_v21 }
 0x288   :  { %1071 = vmatprep.subr.bf16.mxu0 %v2406_v22  ;;  %1112 = vmatprep.subr.bf16.mxu1 %v2412_v23 }
 0x31d   :  { %v810_v24 = vpop.f32.mrb[8].mxu0  ;;  %v851_v25 = vpop.f32.mrb[8].mxu1 }
 0x31e   :  { %v811_v27 = vadd.f32 %v810_v24, %v3046_v26  ;;  %v812_v28 = vpop.f32.mrb[9].mxu0  ;;  %v853_v29 = vpop.f32.mrb[9].mxu1  ;;  %v852_v37 = vadd.f32 %v851_v25, %v3048_v36  ;;  %v879_v24 = vsel %vm136_vm5, %v3052_v12, %v878_v63  ;;  %v2515_v63 = vld [vmem:[%s2887_s1 + $0xac] ss:$16 sps:$4 sm:$0xff]   ;;  %v2527_v12 = vld [vmem:[%s2887_s1 + $0xa8] ss:$16 sps:$4 sm:$0xff]  }
 0x31f   :  { %v813_v31 = vadd.f32 %v812_v28, %v3047_v30  ;;  %v814_v32 = vpop.f32.mrb[10].mxu0  ;;  %v855_v33 = vpop.f32.mrb[10].mxu1  ;;  %v854_v48 = vadd.f32 %v853_v29, %v3049_v62 }
 0x320   :  { %v858_v34 = vmul.f32 0.5, %v811_v27  ;;  %v815_v35 = vpop.f32.mrb[11].mxu0  ;;  %v856_v39 = vpop.f32.mrb[11].mxu1  ;;  %v880_v27 = vsel %vm139_vm6, %v2284_v60, %v879_v24  ;;  %v2533_v24 = vld [vmem:[%s2887_s1 + $0xc4] ss:$16 sps:$4 sm:$0xff]  }
 0x321   :  { %v862_v40 = vmul.f32 0.5, %v813_v31  ;;  %v867_v51 = vmul.f32 0.5, %v854_v48 }
 0x322   :  { %1539 = vtanh.f32 %v858_v34 }
 0x323   :  { %1541 = vtanh.f32 %v862_v40 }
 0x324   :  { %1543 = vtanh.f32 %v852_v37 }
 0x325   :  { %1545 = vtanh.f32 %v867_v51 }
 0x32c   :  { %v1540_v56 = vpop.eup %1539 }
 0x32d   :  { %v1542_v57 = vpop.eup %1541  ;;  %v860_v61 = vadd.f32 1.0, %v1540_v56 }
 0x32e   :  { %v1544_v2 = vpop.eup %1543  ;;  %v864_v3 = vadd.f32 1.0, %v1542_v57 }
 0x32f   :  { %v861_v5 = vmul.f32 0.5, %v860_v61  ;;  %v1546_v44 = vpop.eup %1545 }
 0x330   :  { %v865_v6 = vmul.f32 0.5, %v864_v3  ;;  %v869_v52 = vadd.f32 1.0, %v1546_v44  ;;  %v2461_v3 = vld [vmem:[%s2887_s1 + $0x64] ss:$16 sps:$4 sm:$0xff]  }
 0x331   :  { %v872_v7 = vmul.f32 %v1544_v2, %v861_v5  ;;  %v2455_v2 = vld [vmem:[%s2887_s1 + $0x48] ss:$16 sps:$4 sm:$0xff]   ;;  %v2467_v5 = vld [vmem:[%s2887_s1 + $0x6c] ss:$16 sps:$4 sm:$0xff]   ;;  %v2509_v44 = vld [vmem:[%s2887_s1 + $0xa4] ss:$16 sps:$4 sm:$0xff]  }
 0x332   :  { %v871_v8 = vmul.f32 %v865_v6, %v2277_v59  ;;  %v881_v59 = vsel %vm121_vm0, %v2290_v47, %v2288_v58  ;;  %v870_v25 = vmul.f32 0.5, %v869_v52  ;;  %v2473_v6 = vld [vmem:[%s2887_s1 + $0x60] ss:$16 sps:$4 sm:$0xff]  }
 0x333   :  { %v882_v28 = vsel %vm124_vm1, %v2292_v1, %v881_v59  ;;  %v2448_v1 = vld [vmem:[%s2887_s1 + $0x4c] ss:$16 sps:$4 sm:$0xff]   ;;  %v2521_v52 = vld [vmem:[%s2887_s1 + $0xa0] ss:$16 sps:$4 sm:$0xff]  }
 0x334   :  { %v2420_v10 = vadd.f32 %v872_v7, %v871_v8  ;;  %v883_v31 = vpack.c.b16 %v882_v28, %v880_v27  ;;  %v2479_v7 = vld [vmem:[%s2887_s1 + $0x68] ss:$16 sps:$4 sm:$0xff]   ;;  %v2485_v8 = vld [vmem:[%s2887_s1 + $0x84] ss:$16 sps:$4 sm:$0xff]   ;;  %v2539_v59 = vld [vmem:[%s2887_s1 + $0xcc] ss:$16 sps:$4 sm:$0xff]  }
 0x335   :  { %v2551_v27 = vld [vmem:[%s2887_s1 + $0xc8] ss:$16 sps:$4 sm:$0xff]   ;;  %v2557_v28 = vld [vmem:[%s2887_s1 + $0xe4] ss:$16 sps:$4 sm:$0xff]  }
 0x336   :  { %1547 = vtanh.f32 %v2420_v10  ;;  %v893_v34 = vshrl.u32 %v883_v31, 16  ;;  %v896_v35 = vshll.u32 %v883_v31, 16  ;;  %v2575_v31 = vld [vmem:[%s2887_s1 + $0xe8] ss:$16 sps:$4 sm:$0xff]  }
 0x338   :  { %v895_v48 = vrot.slane %v893_v34, 1  ;;  %v898_v58 = vrot.slane %v896_v35, 2  ;;  %v2599_v34 = vld [vmem:[%s2887_s1 + $0x108] ss:$16 sps:$4 sm:$0xff]   ;;  %v2605_v35 = vld [vmem:[%s2887_s1 + $0x124] ss:$16 sps:$4 sm:$0xff]  }
 0x33a   :  { %v899_v57 = vor.u32 %v898_v58, %v895_v48  ;;  %v2629_v48 = vld [vmem:[%s2887_s1 + $0x144] ss:$16 sps:$4 sm:$0xff]   ;;  %v2635_v58 = vld [vmem:[%s2887_s1 + $0x14c] ss:$16 sps:$4 sm:$0xff]  }
 0x340   :  { %v1548_v49 = vpop.eup %1547 }
 0x341   :  { %v875_v29 = vmul.f32 %v1548_v49, %v870_v25  ;;  %v2545_v25 = vld [vmem:[%s2887_s1 + $0xc0] ss:$16 sps:$4 sm:$0xff]   ;;  %v2563_v49 = vld [vmem:[%s2887_s1 + $0xec] ss:$16 sps:$4 sm:$0xff]  }
 0x343   :  { %v876_v32 = vpack.c.bf16 %v875_v29, %v875_v29  ;;  %v2569_v29 = vld [vmem:[%s2887_s1 + $0xe0] ss:$16 sps:$4 sm:$0xff]  }
 0x345   :  { %v885_v0 = vshrl.u32 %v876_v32, 16  ;;  %v888_v33 = vshll.u32 %v876_v32, 16  ;;  %v2581_v32 = vld [vmem:[%s2887_s1 + $0x104] ss:$16 sps:$4 sm:$0xff]  }
 0x347   :  { %v887_v37 = vrot.slane %v885_v0, 6  ;;  %v890_v39 = vrot.slane %v888_v33, 7  ;;  %v2587_v0 = vld [vmem:[%s2887_s1 + $0x10c] ss:$16 sps:$4 sm:$0xff]   ;;  %v2593_v33 = vld [vmem:[%s2887_s1 + $0x100] ss:$16 sps:$4 sm:$0xff]  }
 0x349   :  { %v891_v40 = vor.u32 %v890_v39, %v887_v37  ;;  %v2611_v37 = vld [vmem:[%s2887_s1 + $0x12c] ss:$16 sps:$4 sm:$0xff]   ;;  %v2617_v39 = vld [vmem:[%s2887_s1 + $0x120] ss:$16 sps:$4 sm:$0xff]  }
 0x34b   :  { %v901_v47 = vshrl.u32 %v891_v40, 16  ;;  %v904_v51 = vshll.u32 %v891_v40, 16  ;;  %v2623_v40 = vld [vmem:[%s2887_s1 + $0x128] ss:$16 sps:$4 sm:$0xff]  }
 0x34d   :  { %v903_v56 = vrot.slane %v901_v47, 1  ;;  %v906_v60 = vrot.slane %v904_v51, 2  ;;  %v2641_v47 = vld [vmem:[%s2887_s1 + $0x140] ss:$16 sps:$4 sm:$0xff]   ;;  %v2647_v51 = vld [vmem:[%s2887_s1 + $0x148] ss:$16 sps:$4 sm:$0xff]  }
 0x34e   :  { %3053 = vst [vmem:[#allocation4_spill] sm:$0xff] %v2647_v51 }
 0x34f   :  { %v907_v61 = vor.u32 %v906_v60, %v903_v56  ;;  %v2653_v56 = vld [vmem:[%s2887_s1 + $0x164] ss:$16 sps:$4 sm:$0xff]   ;;  %v2659_v60 = vld [vmem:[%s2887_s1 + $0x16c] ss:$16 sps:$4 sm:$0xff]  }
 0x350   :  { %3054 = vst [vmem:[#allocation10_spill] sm:$0xff] %v2653_v56  ;;  %3055 = vst [vmem:[#allocation13_spill] sm:$0xff] %v2659_v60 }
 0x351   :  { %942 = vmatprep.mubr.bf16.mxu0 %v907_v61  ;;  %983 = vmatprep.mubr.bf16.mxu1 %v907_v61  ;;  %v2671_v61 = vld [vmem:[%s2887_s1 + $0x168] ss:$16 sps:$4 sm:$0xff]  }
 0x352   :  { %943 = vmatmul.mubr.bf16.vlgmr.msra.gmra.mrb[12].mxu0 %v899_v57  ;;  %984 = vmatmul.mubr.bf16.vlgmr.msra.gmra.mrb[12].mxu1 %v899_v57  ;;  %v2665_v57 = vld [vmem:[%s2887_s1 + $0x160] ss:$16 sps:$4 sm:$0xff]   ;;  %3057 = vst [vmem:[#allocation15_spill] sm:$0xff] %v2671_v61 }
 0x353   :  { %1072 = vmatpush1.bf16.msra.mxu0 %v2304_v42  ;;  %1113 = vmatpush1.bf16.msra.mxu1 %v2310_v53  ;;  %3056 = vst [vmem:[#allocation12_spill] sm:$0xff] %v2665_v57 }
 0x354   :  { %1073 = vmatprep.subr.bf16.mxu0 %v2316_v50  ;;  %1114 = vmatprep.subr.bf16.mxu1 %v2322_v45 }
 0x357   :  { %1074 = vmatpush1.bf16.msra.mxu0 %v2328_v38  ;;  %1115 = vmatpush1.bf16.msra.mxu1 %v2334_v41 }
 0x358   :  { %1075 = vmatprep.subr.bf16.mxu0 %v2340_v46  ;;  %1116 = vmatprep.subr.bf16.mxu1 %v2448_v1 }
 0x35b   :  { %1076 = vmatpush1.bf16.msra.mxu0 %v2347_v43  ;;  %1117 = vmatpush1.bf16.msra.mxu1 %v2455_v2 }
 0x35c   :  { %1077 = vmatprep.subr.bf16.mxu0 %v2461_v3  ;;  %1118 = vmatprep.subr.bf16.mxu1 %v2467_v5 }
 0x35f   :  { %1078 = vmatpush1.bf16.msra.mxu0 %v2473_v6  ;;  %1119 = vmatpush1.bf16.msra.mxu1 %v2479_v7 }
 0x360   :  { %1079 = vmatprep.subr.bf16.mxu0 %v2485_v8  ;;  %1120 = vmatprep.subr.bf16.mxu1 %v2491_v4 }
 0x363   :  { %1080 = vmatpush1.bf16.msra.mxu0 %v2497_v54  ;;  %1121 = vmatpush1.bf16.msra.mxu1 %v2503_v55 }
 0x364   :  { %1081 = vmatprep.subr.bf16.mxu0 %v2509_v44  ;;  %1122 = vmatprep.subr.bf16.mxu1 %v2515_v63 }
 0x367   :  { %1082 = vmatpush1.bf16.msra.mxu0 %v2521_v52  ;;  %1123 = vmatpush1.bf16.msra.mxu1 %v2527_v12 }
 0x368   :  { %1083 = vmatprep.subr.bf16.mxu0 %v2533_v24  ;;  %1124 = vmatprep.subr.bf16.mxu1 %v2539_v59 }
 0x36b   :  { %1084 = vmatpush1.bf16.msra.mxu0 %v2545_v25  ;;  %1125 = vmatpush1.bf16.msra.mxu1 %v2551_v27 }
 0x36c   :  { %1085 = vmatprep.subr.bf16.mxu0 %v2557_v28  ;;  %1126 = vmatprep.subr.bf16.mxu1 %v2563_v49 }
 0x36f   :  { %1086 = vmatpush1.bf16.msra.mxu0 %v2569_v29  ;;  %1127 = vmatpush1.bf16.msra.mxu1 %v2575_v31 }
 0x370   :  { %1087 = vmatprep.subr.bf16.mxu0 %v2581_v32  ;;  %1128 = vmatprep.subr.bf16.mxu1 %v2587_v0 }
 0x373   :  { %1088 = vmatpush1.bf16.msra.mxu0 %v2593_v33  ;;  %1129 = vmatpush1.bf16.msra.mxu1 %v2599_v34 }
 0x374   :  { %1089 = vmatprep.subr.bf16.mxu0 %v2605_v35  ;;  %1130 = vmatprep.subr.bf16.mxu1 %v2611_v37 }
 0x377   :  { %1090 = vmatpush1.bf16.msra.mxu0 %v2617_v39  ;;  %1131 = vmatpush1.bf16.msra.mxu1 %v2623_v40 }
 0x378   :  { %1091 = vmatprep.subr.bf16.mxu0 %v2629_v48  ;;  %1132 = vmatprep.subr.bf16.mxu1 %v2635_v58 }
 0x37b   :  { %1092 = vmatpush1.bf16.msra.mxu0 %v2641_v47  ;;  %1133 = vmatpush1.bf16.msra.mxu1 %v2647_v51 }
 0x37c   :  { %1093 = vmatprep.subr.bf16.mxu0 %v2653_v56  ;;  %1134 = vmatprep.subr.bf16.mxu1 %v2659_v60  ;;  %v2677_v56 = vld [vmem:[%s2887_s1 + $0x184] ss:$16 sps:$4 sm:$0xff]   ;;  %v2683_v60 = vld [vmem:[%s2887_s1 + $0x18c] ss:$16 sps:$4 sm:$0xff]  }
 0x37d   :  { %3058 = vst [vmem:[#allocation14_spill] sm:$0xff] %v2677_v56  ;;  %3059 = vst [vmem:[#allocation18_spill] sm:$0xff] %v2683_v60 }
 0x37f   :  { %1094 = vmatpush1.bf16.msra.mxu0 %v2665_v57  ;;  %1135 = vmatpush1.bf16.msra.mxu1 %v2671_v61  ;;  %v2689_v57 = vld [vmem:[%s2887_s1 + $0x180] ss:$16 sps:$4 sm:$0xff]  }
 0x380   :  { %1095 = vmatprep.subr.bf16.mxu0 %v2677_v56  ;;  %1136 = vmatprep.subr.bf16.mxu1 %v2683_v60  ;;  %3060 = vst [vmem:[#allocation16_spill] sm:$0xff] %v2689_v57  ;;  %v2696_v56 = vld [vmem:[%s2887_s1 + $0x1a4] ss:$16 sps:$4 sm:$0xff]   ;;  %v2703_v60 = vld [vmem:[%s2887_s1 + $0x1a0] ss:$16 sps:$4 sm:$0xff]  }
 0x381   :  { %3061 = vst [vmem:[#allocation2_spill] sm:$0xff] %v2696_v56  ;;  %3062 = vst [vmem:[#allocation3_spill] sm:$0xff] %v2703_v60 }
 0x383   :  { %1096 = vmatpush1.bf16.msra.mxu0 %v2689_v57  ;;  %1137 = vmatpush1.bf16.msra.mxu1 %v3015_v9  ;;  %v1514_v9 = vld [vmem:[%s2888_s0 + $0xc] ss:$0 sps:$4 sm:$0x44]  }
 0x384   :  { %1097 = vmatprep.subr.bf16.mxu0 %v2696_v56  ;;  %1138 = vmatprep.subr.bf16.mxu1 %v3035_v11  ;;  %v1515_v11 = vld [vmem:[%s2888_s0 + $0x10] ss:$0 sps:$4 sm:$0x44]  }
 0x387   :  { %1098 = vmatpush1.bf16.msra.mxu0 %v2703_v60  ;;  %1139 = vmatpush1.bf16.msra.mxu1 %v3037_v13  ;;  %v1046_v13 = vunpack.c.l.b16 %v1514_v9 }
 0x388   :  { %1099 = vmatprep.subr.bf16.mxu0 %v3038_v14  ;;  %1140 = vmatprep.subr.bf16.mxu1 %v3039_v15  ;;  %v1047_v14 = vunpack.c.l.b16 %v1515_v11 }
 0x389   :  { %v1055_v15 = vrot.slane %v1046_v13, 5 }
 0x38b   :  { %1100 = vmatpush1.bf16.msra.mxu0 %v3040_v16  ;;  %1141 = vmatpush1.bf16.msra.mxu1 %v3041_v17  ;;  %v1057_v16 = vrot.slane %v1047_v14, 4 }
 0x38c   :  { %1101 = vmatprep.subr.bf16.mxu0 %v3042_v18  ;;  %1142 = vmatprep.subr.bf16.mxu1 %v3043_v19 }
 0x38d   :  { %v2724_v17 = vsel %vm121_vm0, %v1057_v16, %v1055_v15 }
 0x38e   :  { %3063 = vst [vmem:[#allocation19_spill] sm:$0xff] %v2724_v17 }
 0x38f   :  { %1102 = vmatpush1.bf16.msra.mxu0 %v3044_v20  ;;  %1143 = vmatpush1.bf16.msra.mxu1 %v3045_v21 }
 0x390   :  { %1205 = vmatprep.subr.bf16.mxu0 %v2406_v22  ;;  %1246 = vmatprep.subr.bf16.mxu1 %v2412_v23 }
 0x425   :  { %v944_v18 = vpop.f32.mrb[12].mxu0  ;;  %v985_v19 = vpop.f32.mrb[12].mxu1 }
 0x426   :  { %v945_v20 = vadd.f32 %v944_v18, %v3046_v26  ;;  %v946_v21 = vpop.f32.mrb[13].mxu0  ;;  %v987_v22 = vpop.f32.mrb[13].mxu1  ;;  %v986_v9 = vadd.f32 %v985_v19, %v3048_v36  ;;  %v1512_v18 = vld [vmem:[%s2888_s0 + $0x4] ss:$0 sps:$4 sm:$0x44]  }
 0x427   :  { %v947_v23 = vadd.f32 %v946_v21, %v3047_v30  ;;  %v948_v60 = vpop.f32.mrb[14].mxu0  ;;  %v989_v56 = vpop.f32.mrb[14].mxu1  ;;  %v988_v14 = vadd.f32 %v987_v22, %v3049_v62 }
 0x428   :  { %v992_v57 = vmul.f32 0.5, %v945_v20  ;;  %v949_v61 = vpop.f32.mrb[15].mxu0  ;;  %v990_v11 = vpop.f32.mrb[15].mxu1  ;;  %v1516_v56 = vld [vmem:[%s2888_s0 + $0x14] ss:$0 sps:$4 sm:$0x44]  }
 0x429   :  { %v996_v13 = vmul.f32 0.5, %v947_v23  ;;  %v1001_v17 = vmul.f32 0.5, %v988_v14  ;;  %v1513_v20 = vld [vmem:[%s2888_s0 + $0x8] ss:$0 sps:$4 sm:$0x44]   ;;  %v1044_v11 = vunpack.c.l.b16 %v1512_v18 }
 0x42a   :  { %1549 = vtanh.f32 %v992_v57  ;;  %v1517_v23 = vld [vmem:[%s2888_s0 + $0x18] ss:$0 sps:$4 sm:$0x44]   ;;  %v1518_v14 = vld [vmem:[%s2888_s0 + $0x1c] ss:$0 sps:$4 sm:$0x44]  }
 0x42b   :  { %1551 = vtanh.f32 %v996_v13  ;;  %v1048_v13 = vunpack.c.l.b16 %v1516_v56  ;;  %v1050_v18 = vunpack.c.l.b16 %v1518_v14 }
 0x42c   :  { %1553 = vtanh.f32 %v986_v9 }
 0x42d   :  { %1555 = vtanh.f32 %v1001_v17 }
 0x434   :  { %v1550_v51 = vpop.eup %1549 }
 0x435   :  { %v1552_v21 = vpop.eup %1551  ;;  %v994_v60 = vadd.f32 1.0, %v1550_v51  ;;  %v2745_v51 = vld [vmem:[%s2888_s0] ss:$0 sps:$4 sm:$0x44]  }
 0x436   :  { %v1554_v61 = vpop.eup %1553  ;;  %v998_v19 = vadd.f32 1.0, %v1552_v21  ;;  %3064 = vst [vmem:[#allocation17_spill] sm:$0xff] %v2745_v51  ;;  %v2966_v62 = vunpack.c.l.b16 %v2745_v51 }
 0x437   :  { %v995_v57 = vmul.f32 0.5, %v994_v60  ;;  %v1045_v60 = vunpack.c.l.b16 %v1513_v20  ;;  %v1556_v56 = vpop.eup %1555 }
 0x438   :  { %v999_v22 = vmul.f32 0.5, %v998_v19  ;;  %v1049_v19 = vunpack.c.l.b16 %v1517_v23  ;;  %v1003_v23 = vadd.f32 1.0, %v1556_v56 }
 0x439   :  { %v1006_v9 = vmul.f32 %v1554_v61, %v995_v57  ;;  %v2754_v61 = vrot.slane %v1044_v11, 7  ;;  %v2756_v57 = vrot.slane %v1048_v13, 3  ;;  %v2759_v36 = vrot.slane %v1045_v60, 6 }
 0x43a   :  { %v1005_v17 = vmul.f32 %v999_v22, %v2420_v10  ;;  %v2761_v10 = vrot.slane %v1049_v19, 2 }
 0x43b   :  { %3065 = vst [vmem:[#allocation21_spill] sm:$0xff] %v2754_v61  ;;  %v1052_v20 = vsel %vm133_vm4, %v2754_v61, %v2966_v62  ;;  %v1059_v22 = vsel %vm121_vm0, %v2756_v57, %v1057_v16 }
 0x43c   :  { %v2751_v21 = vadd.f32 %v1006_v9, %v1005_v17  ;;  %v2769_v9 = vrot.slane %v1050_v18, 1  ;;  %v1054_v11 = vsel %vm136_vm5, %v2759_v36, %v1052_v20  ;;  %v1061_v13 = vsel %vm124_vm1, %v2761_v10, %v1059_v22 }
 0x43d   :  { %v1004_v17 = vmul.f32 0.5, %v1003_v23  ;;  %v1056_v14 = vsel %vm139_vm6, %v1055_v15, %v1054_v11 }
 0x43e   :  { %1557 = vtanh.f32 %v2751_v21  ;;  %v1063_v60 = vsel %vm127_vm2, %v2769_v9, %v1061_v13  ;;  %v3078_v13 = vld [vmem:[#allocation19_spill] sm:$0xff] }
 0x43f   :  { %v1064_v61 = vpack.c.b16 %v1063_v60, %v1056_v14  ;;  %v3079_v60 = vld [vmem:[#allocation17_spill] sm:$0xff] }
 0x441   :  { %v1067_v56 = vrot.slane %v1064_v61, 2 }
 0x448   :  { %v1558_v19 = vpop.eup %1557 }
 0x449   :  { %v1009_v62 = vmul.f32 %v1558_v19, %v1004_v17  ;;  %v1175_v17 = vsel %vm124_vm1, %v2756_v57, %v3078_v13  ;;  %v3080_v19 = vunpack.c.l.b16 %v3079_v60 }
 0x44b   :  { %v1018_v51 = vpack.c.bf16 %v1009_v62, %v1009_v62  ;;  %v1632_v62 = vld [vmem:[%s2887_s1 + $0x188] ss:$16 sps:$4 sm:$0xff]  }
 0x44d   :  { %v1066_v16 = vrot.slane %v1018_v51, 6 }
 0x44f   :  { %v1068_v18 = vrot.slane %v1066_v16, 2  ;;  %v3081_v16 = vld [vmem:[#allocation21_spill] sm:$0xff] }
 0x451   :  { %1103 = vmatprep.mubr.bf16.mxu0 %v1068_v18  ;;  %1144 = vmatprep.mubr.bf16.mxu1 %v1068_v18  ;;  %v1176_v18 = vsel %vm127_vm2, %v2761_v10, %v1175_v17 }
 0x452   :  { %1104 = vmatmul.mubr.bf16.vlgmr.msra.gmra.mrb[16].mxu0 %v1067_v56  ;;  %1145 = vmatmul.mubr.bf16.vlgmr.msra.gmra.mrb[16].mxu1 %v1067_v56  ;;  %v1172_v56 = vsel %vm136_vm5, %v3081_v16, %v3080_v19 }
 0x453   :  { %1206 = vmatpush1.bf16.msra.mxu0 %v2304_v42  ;;  %1247 = vmatpush1.bf16.msra.mxu1 %v2310_v53  ;;  %v3066_v42 = vld [vmem:[#allocation4_spill] sm:$0xff]  ;;  %v3067_v53 = vld [vmem:[#allocation10_spill] sm:$0xff] }
 0x454   :  { %1207 = vmatprep.subr.bf16.mxu0 %v2316_v50  ;;  %1248 = vmatprep.subr.bf16.mxu1 %v2322_v45  ;;  %v3068_v50 = vld [vmem:[#allocation13_spill] sm:$0xff]  ;;  %v3069_v45 = vld [vmem:[#allocation12_spill] sm:$0xff] }
 0x457   :  { %1208 = vmatpush1.bf16.msra.mxu0 %v2328_v38  ;;  %1249 = vmatpush1.bf16.msra.mxu1 %v2334_v41  ;;  %v3070_v38 = vld [vmem:[#allocation15_spill] sm:$0xff]  ;;  %v3071_v41 = vld [vmem:[#allocation14_spill] sm:$0xff] }
 0x458   :  { %1209 = vmatprep.subr.bf16.mxu0 %v2340_v46  ;;  %1250 = vmatprep.subr.bf16.mxu1 %v2448_v1  ;;  %v3072_v46 = vld [vmem:[#allocation18_spill] sm:$0xff] }
 0x459   :  { %v3074_v1 = vld [vmem:[#allocation2_spill] sm:$0xff] }
 0x45b   :  { %1210 = vmatpush1.bf16.msra.mxu0 %v2347_v43  ;;  %1251 = vmatpush1.bf16.msra.mxu1 %v2455_v2  ;;  %v3073_v43 = vld [vmem:[#allocation16_spill] sm:$0xff]  ;;  %v1633_v2 = vld [vmem:[%s2887_s1 + $0x1ac] ss:$16 sps:$4 sm:$0xff]  }
 0x45c   :  { %1211 = vmatprep.subr.bf16.mxu0 %v2461_v3  ;;  %1252 = vmatprep.subr.bf16.mxu1 %v2467_v5  ;;  %v3075_v3 = vld [vmem:[#allocation3_spill] sm:$0xff] }
 0x45d   :  { %v1634_v5 = vld [vmem:[%s2887_s1 + $0x1a8] ss:$16 sps:$4 sm:$0xff]  }
 0x45f   :  { %1212 = vmatpush1.bf16.msra.mxu0 %v2473_v6  ;;  %1253 = vmatpush1.bf16.msra.mxu1 %v2479_v7  ;;  %v1635_v6 = vld [vmem:[%s2887_s1 + $0x1c4] ss:$16 sps:$4 sm:$0xff]   ;;  %v1636_v7 = vld [vmem:[%s2887_s1 + $0x1cc] ss:$16 sps:$4 sm:$0xff]  }
 0x460   :  { %1213 = vmatprep.subr.bf16.mxu0 %v2485_v8  ;;  %1254 = vmatprep.subr.bf16.mxu1 %v2491_v4  ;;  %v1637_v8 = vld [vmem:[%s2887_s1 + $0x1c0] ss:$16 sps:$4 sm:$0xff]   ;;  %v1638_v4 = vld [vmem:[%s2887_s1 + $0x1c8] ss:$16 sps:$4 sm:$0xff]  }
 0x463   :  { %1214 = vmatpush1.bf16.msra.mxu0 %v2497_v54  ;;  %1255 = vmatpush1.bf16.msra.mxu1 %v2503_v55  ;;  %v1639_v54 = vld [vmem:[%s2887_s1 + $0x1e4] ss:$16 sps:$4 sm:$0xff]   ;;  %v1640_v55 = vld [vmem:[%s2887_s1 + $0x1ec] ss:$16 sps:$4 sm:$0xff]  }
 0x464   :  { %1215 = vmatprep.subr.bf16.mxu0 %v2509_v44  ;;  %1256 = vmatprep.subr.bf16.mxu1 %v2515_v63  ;;  %v1641_v44 = vld [vmem:[%s2887_s1 + $0x1e0] ss:$16 sps:$4 sm:$0xff]   ;;  %v1642_v63 = vld [vmem:[%s2887_s1 + $0x1e8] ss:$16 sps:$4 sm:$0xff]  }
 0x467   :  { %1216 = vmatpush1.bf16.msra.mxu0 %v2521_v52  ;;  %1257 = vmatpush1.bf16.msra.mxu1 %v2527_v12 }
 0x468   :  { %1217 = vmatprep.subr.bf16.mxu0 %v2533_v24  ;;  %1258 = vmatprep.subr.bf16.mxu1 %v2539_v59 }
 0x46b   :  { %1218 = vmatpush1.bf16.msra.mxu0 %v2545_v25  ;;  %1259 = vmatpush1.bf16.msra.mxu1 %v2551_v27 }
 0x46c   :  { %1219 = vmatprep.subr.bf16.mxu0 %v2557_v28  ;;  %1260 = vmatprep.subr.bf16.mxu1 %v2563_v49 }
 0x46f   :  { %1220 = vmatpush1.bf16.msra.mxu0 %v2569_v29  ;;  %1261 = vmatpush1.bf16.msra.mxu1 %v2575_v31 }
 0x470   :  { %1221 = vmatprep.subr.bf16.mxu0 %v2581_v32  ;;  %1262 = vmatprep.subr.bf16.mxu1 %v2587_v0  ;;  %v3076_v32 = vld [vmem:[#allocation7_spill] sm:$0xff] }
 0x473   :  { %1222 = vmatpush1.bf16.msra.mxu0 %v2593_v33  ;;  %1263 = vmatpush1.bf16.msra.mxu1 %v2599_v34 }
 0x474   :  { %1223 = vmatprep.subr.bf16.mxu0 %v2605_v35  ;;  %1264 = vmatprep.subr.bf16.mxu1 %v2611_v37  ;;  %v3077_v35 = vld [vmem:[#allocation8_spill] sm:$0xff] }
 0x477   :  { %1224 = vmatpush1.bf16.msra.mxu0 %v2617_v39  ;;  %1265 = vmatpush1.bf16.msra.mxu1 %v2623_v40 }
 0x478   :  { %1225 = vmatprep.subr.bf16.mxu0 %v2629_v48  ;;  %1266 = vmatprep.subr.bf16.mxu1 %v2635_v58 }
 0x47b   :  { %1226 = vmatpush1.bf16.msra.mxu0 %v2641_v47  ;;  %1267 = vmatpush1.bf16.msra.mxu1 %v3066_v42 }
 0x47c   :  { %1227 = vmatprep.subr.bf16.mxu0 %v3067_v53  ;;  %1268 = vmatprep.subr.bf16.mxu1 %v3068_v50  ;;  %v1177_v53 = vsel %vm130_vm3, %v2769_v9, %v1176_v18 }
 0x47f   :  { %1228 = vmatpush1.bf16.msra.mxu0 %v3069_v45  ;;  %1269 = vmatpush1.bf16.msra.mxu1 %v3070_v38 }
 0x480   :  { %1229 = vmatprep.subr.bf16.mxu0 %v3071_v41  ;;  %1270 = vmatprep.subr.bf16.mxu1 %v3072_v46 }
 0x483   :  { %1230 = vmatpush1.bf16.msra.mxu0 %v3073_v43  ;;  %1271 = vmatpush1.bf16.msra.mxu1 %v1632_v62 }
 0x484   :  { %1231 = vmatprep.subr.bf16.mxu0 %v3074_v1  ;;  %1272 = vmatprep.subr.bf16.mxu1 %v1633_v2 }
 0x487   :  { %1232 = vmatpush1.bf16.msra.mxu0 %v3075_v3  ;;  %1273 = vmatpush1.bf16.msra.mxu1 %v1634_v5 }
 0x488   :  { %1233 = vmatprep.subr.bf16.mxu0 %v1635_v6  ;;  %1274 = vmatprep.subr.bf16.mxu1 %v1636_v7 }
 0x48b   :  { %1234 = vmatpush1.bf16.msra.mxu0 %v1637_v8  ;;  %1275 = vmatpush1.bf16.msra.mxu1 %v1638_v4 }
 0x48c   :  { %1235 = vmatprep.subr.bf16.mxu0 %v1639_v54  ;;  %1276 = vmatprep.subr.bf16.mxu1 %v1640_v55 }
 0x48f   :  { %1236 = vmatpush1.bf16.msra.mxu0 %v1641_v44  ;;  %1277 = vmatpush1.bf16.msra.mxu1 %v1642_v63 }
 0x525   :  { %v1105_v52 = vpop.f32.mrb[16].mxu0  ;;  %v1146_v12 = vpop.f32.mrb[16].mxu1 }
 0x526   :  { %v1106_v24 = vadd.f32 %v1105_v52, %v3046_v26  ;;  %v1107_v59 = vpop.f32.mrb[17].mxu0  ;;  %v1148_v25 = vpop.f32.mrb[17].mxu1  ;;  %v1147_v0 = vadd.f32 %v1146_v12, %v3076_v32 }
 0x527   :  { %v1108_v27 = vadd.f32 %v1107_v59, %v3047_v30  ;;  %v1109_v28 = vpop.f32.mrb[18].mxu0  ;;  %v1150_v49 = vpop.f32.mrb[18].mxu1  ;;  %v1149_v37 = vadd.f32 %v1148_v25, %v3077_v35 }
 0x528   :  { %v1153_v29 = vmul.f32 0.5, %v1106_v24  ;;  %v1110_v31 = vpop.f32.mrb[19].mxu0  ;;  %v1151_v33 = vpop.f32.mrb[19].mxu1 }
 0x529   :  { %v1157_v34 = vmul.f32 0.5, %v1108_v27  ;;  %v1162_v39 = vmul.f32 0.5, %v1149_v37 }
 0x52a   :  { %1559 = vtanh.f32 %v1153_v29 }
 0x52b   :  { %1561 = vtanh.f32 %v1157_v34 }
 0x52c   :  { %1563 = vtanh.f32 %v1147_v0 }
 0x52d   :  { %1565 = vtanh.f32 %v1162_v39 }
 0x534   :  { %v1560_v40 = vpop.eup %1559 }
 0x535   :  { %v1562_v48 = vpop.eup %1561  ;;  %v1155_v58 = vadd.f32 1.0, %v1560_v40 }
 0x536   :  { %v1564_v47 = vpop.eup %1563  ;;  %v1159_v15 = vadd.f32 1.0, %v1562_v48 }
 0x537   :  { %v1156_v51 = vmul.f32 0.5, %v1155_v58  ;;  %v1566_v11 = vpop.eup %1565 }
 0x538   :  { %v1160_v61 = vmul.f32 0.5, %v1159_v15  ;;  %v1164_v14 = vadd.f32 1.0, %v1566_v11 }
 0x539   :  { %v1167_v20 = vmul.f32 %v1564_v47, %v1156_v51 }
 0x53a   :  { %v1166_v22 = vmul.f32 %v1160_v61, %v2751_v21  ;;  %v1165_v42 = vmul.f32 0.5, %v1164_v14  ;;  %v1173_v21 = vsel %vm139_vm6, %v2759_v36, %v1172_v56 }
 0x53b   :  { %v1178_v38 = vpack.c.b16 %v1177_v53, %v1173_v21 }
 0x53c   :  { %v1168_v23 = vadd.f32 %v1167_v20, %v1166_v22 }
 0x53d   :  { %v1188_v43 = vshrl.u32 %v1178_v38, 16  ;;  %v1191_v62 = vshll.u32 %v1178_v38, 16 }
 0x53e   :  { %1567 = vtanh.f32 %v1168_v23 }
 0x53f   :  { %v1190_v5 = vrot.slane %v1188_v43, 2  ;;  %v1193_v10 = vrot.slane %v1191_v62, 3 }
 0x541   :  { %v1194_v4 = vor.u32 %v1193_v10, %v1190_v5 }
 0x548   :  { %v1568_v50 = vpop.eup %1567 }
 0x549   :  { %v1170_v45 = vmul.f32 %v1568_v50, %v1165_v42 }
 0x54b   :  { %v1171_v57 = vpack.c.bf16 %v1170_v45, %v1170_v45 }
 0x54d   :  { %v1180_v41 = vshrl.u32 %v1171_v57, 16  ;;  %v1183_v46 = vshll.u32 %v1171_v57, 16 }
 0x54f   :  { %v1182_v1 = vrot.slane %v1180_v41, 5  ;;  %v1185_v2 = vrot.slane %v1183_v46, 6 }
 0x551   :  { %v1186_v3 = vor.u32 %v1185_v2, %v1182_v1 }
 0x553   :  { %v1196_v6 = vshrl.u32 %v1186_v3, 16  ;;  %v1199_v7 = vshll.u32 %v1186_v3, 16 }
 0x555   :  { %v1198_v8 = vrot.slane %v1196_v6, 2  ;;  %v1201_v36 = vrot.slane %v1199_v7, 3 }
 0x557   :  { %v1202_v54 = vor.u32 %v1201_v36, %v1198_v8 }
 0x559   :  { %1237 = vmatprep.mubr.bf16.mxu0 %v1202_v54  ;;  %1278 = vmatprep.mubr.bf16.mxu1 %v1202_v54 }
 0x55a   :  { %1238 = vmatmul.mubr.bf16.vlgmr.msra.gmra.mrb[20].mxu0 %v1194_v4  ;;  %1279 = vmatmul.mubr.bf16.vlgmr.msra.gmra.mrb[20].mxu1 %v1194_v4 }
 0x62d   :  { %v1239_v9 = vpop.f32.mrb[20].mxu0  ;;  %v1280_v55 = vpop.f32.mrb[20].mxu1 }
 0x62e   :  { %v1240_v44 = vadd.f32 %v1239_v9, %v3046_v26  ;;  %v1241_v63 = vpop.f32.mrb[21].mxu0  ;;  %v1282_v52 = vpop.f32.mrb[21].mxu1  ;;  %v1281_v28 = vadd.f32 %v1280_v55, %v3076_v32 }
 0x62f   :  { %v1242_v12 = vadd.f32 %v1241_v63, %v3047_v30  ;;  %v1243_v24 = vpop.f32.mrb[22].mxu0  ;;  %v1284_v59 = vpop.f32.mrb[22].mxu1  ;;  %v1283_v31 = vadd.f32 %v1282_v52, %v3077_v35 }
 0x630   :  { %v1287_v25 = vmul.f32 0.5, %v1240_v44  ;;  %v1244_v27 = vpop.f32.mrb[23].mxu0  ;;  %v1285_v49 = vpop.f32.mrb[23].mxu1 }
 0x631   :  { %v1291_v29 = vmul.f32 0.5, %v1242_v12  ;;  %v1296_v0 = vmul.f32 0.5, %v1283_v31 }
 0x632   :  { %1569 = vtanh.f32 %v1287_v25 }
 0x633   :  { %1571 = vtanh.f32 %v1291_v29 }
 0x634   :  { %1573 = vtanh.f32 %v1281_v28 }
 0x635   :  { %1575 = vtanh.f32 %v1296_v0 }
 0x63c   :  { %v1570_v33 = vpop.eup %1569 }
 0x63d   :  { %v1572_v26 = vpop.eup %1571  ;;  %v1289_v34 = vadd.f32 1.0, %v1570_v33 }
 0x63e   :  { %v1574_v37 = vpop.eup %1573  ;;  %v1293_v39 = vadd.f32 1.0, %v1572_v26 }
 0x63f   :  { %v1290_v30 = vmul.f32 0.5, %v1289_v34  ;;  %v1576_v32 = vpop.eup %1575 }
 0x640   :  { %v1294_v40 = vmul.f32 0.5, %v1293_v39  ;;  %v1298_v15 = vadd.f32 1.0, %v1576_v32 }
 0x641   :  { %v1301_v48 = vmul.f32 %v1574_v37, %v1290_v30 }
 0x642   :  { %v1300_v58 = vmul.f32 %v1294_v40, %v1168_v23  ;;  %v1299_v51 = vmul.f32 0.5, %v1298_v15 }
 0x644   :  { %v1302_v47 = vadd.f32 %v1301_v48, %v1300_v58 }
 0x646   :  { %1577 = vtanh.f32 %v1302_v47 }
 0x650   :  { %v1578_v61 = vpop.eup %1577 }
 0x651   :  { %v1304_v20 = vmul.f32 %v1578_v61, %v1299_v51 }
 0x653   :  { %1305 = vst [vmem:[%s2890_s3] sm:$0xff] %v1304_v20 }

</bundles_post_ra>
